<compile_context>
chip_gen: v6e
topology: v6e:2x2x1
jax: 0.10.0
libtpu: 0.0.40
codegen_flags: <defaults>
</compile_context>

<pallas_src>
import functools

import jax
import jax.numpy as jnp
from jax.experimental import pallas as pl
from jax.experimental.pallas import tpu as pltpu

KSIZE = 7
PAD = (KSIZE - 1) // 2
BN_EPS = 1e-5

_LANE = 128
_MAX_BLOCK_VREGS = 16          # cap on vregs of one (nb, H, W) f32 tensor
_UNROLL_CHANNEL_LIMIT = 32     # unroll channel loops up to this C, else lax.fori_loop


# --------------------------------------------------------------------------------------
# host-side planning helpers
# --------------------------------------------------------------------------------------
def _cdiv(a, b):
    return -(-a // b)


def _round_up(a, b):
    return _cdiv(a, b) * b


def _sublane_tile(itemsize):
    return {4: 8, 2: 16, 1: 32}.get(itemsize, 8)


def _device_kind():
    try:
        return jax.devices()[0].device_kind.lower()
    except Exception:
        return ""


def _has_bf16_valu():
    """v6e / v7x have a bf16 VPU; v5e and older do not (keep f32 math there)."""
    kind = _device_kind()
    if not kind:
        return False
    for old in ("v2", "v3", "v4", "v5"):
        if old in kind:
            return False
    return any(tag in kind for tag in ("v6", "v7", "6e", "6p", "7x", "7p"))


def _vmem_plan():
    """(vmem_limit_bytes, block_budget_bytes) derived from the physical VMEM."""
    cap = None
    try:
        cap = int(pltpu.get_tpu_info().vmem_capacity_bytes)
    except Exception:
        cap = None
    if not cap or cap <= 0:
        kind = _device_kind()
        if "v7" in kind or "7x" in kind or "7p" in kind:
            cap = 64 * 1024 * 1024
        elif "v5" in kind or "v6" in kind or "6e" in kind:
            cap = 128 * 1024 * 1024
        else:
            cap = 64 * 1024 * 1024          # conservative default
    limit = max(32 * 1024 * 1024, min(cap * 3 // 4, 96 * 1024 * 1024))
    budget = limit // 2                     # double-buffered I/O + scratch must fit here
    return limit, budget


def _group_for(nb, w):
    """Images packed per lane group: largest divisor of nb that fits 128 lanes."""
    wp = w + 2 * PAD
    gmax = max(1, _LANE // wp)
    g = 1
    for d in range(1, nb + 1):
        if nb % d == 0 and d <= gmax:
            g = d
    return g


def _footprint_bytes(nb, c, h, w, itemsize, group):
    """Real (tile-padded) VMEM bytes for one grid step."""
    hpad = _round_up(h, _sublane_tile(itemsize))
    wpad = _round_up(w, _LANE)
    io = 2 * 2 * nb * c * hpad * wpad * itemsize        # x + out blocks, double-buffered
    wp = w + 2 * PAD
    ngroups = nb // group
    scratch = 2 * ngroups * _round_up(h + 2 * PAD, 8) * _round_up(group * wp, _LANE) * 4
    return io + scratch


def _pick_batch_block(n, c, h, w, itemsize, budget):
    """Largest divisor of N that fits the padded VMEM budget, the vreg cap, and grid>=2."""
    nb = 1
    for d in range(1, n + 1):
        if n % d:
            continue
        if n >= 2 and n // d < 2:
            continue          # keep >= 2 (parallel) grid steps so both v7x TCs get work
        if d * _cdiv(h, 8) * _cdiv(w, _LANE) > _MAX_BLOCK_VREGS:
            continue          # bound live f32 (nb,H,W) vregs across the unrolled conv
        g = _group_for(d, w)
        if _footprint_bytes(d, c, h, w, itemsize, g) <= budget:
            nb = d
    # TODO(synk): if even nb=1 exceeds the budget (large C*H*W, esp. v7x 64 MiB VMEM),
    # add an H-tiled grid axis with a PAD-row halo instead of relying on this fallback.
    return nb, _group_for(nb, w)


# --------------------------------------------------------------------------------------
# kernel
# --------------------------------------------------------------------------------------
def _attention_gate_kernel(w_ref, b_ref, x_ref, o_ref, pad_ref, *,
                           group, low_precision_gate):
    """One grid step processes a (nb, C, H, W) batch block.

    w_ref:   (2*K*K,) f32 SMEM  -- BN-folded conv weights; mean channel pre-scaled by 1/C
    b_ref:   (1,)     f32 SMEM  -- BN-folded bias
    x_ref:   (nb, C, H, W) VMEM input block
    o_ref:   (nb, C, H, W) VMEM output block
    pad_ref: (2, nb//group, H+2*PAD, group*(W+2*PAD)) f32 VMEM scratch
             (`group` images packed along lanes, each with its own zero halo)
    """
    nb, c, h, w = x_ref.shape
    wp = w + 2 * PAD
    ngroups = nb // group
    l_pad = group * wp                    # scratch lane extent
    l_acc = (group - 1) * wp + w          # conv-accumulator lane extent

    # ---- ZPool: channel max / channel sum, one channel at a time (f32 accumulation,
    #      bounded vreg pressure; 1/C is folded into the mean-tap weights on the host) ----
    x0 = x_ref[:, 0].astype(jnp.float32)          # (nb, h, w)
    if c <= _UNROLL_CHANNEL_LIMIT:
        x_max, x_sum = x0, x0
        for ci in range(1, c):
            xc = x_ref[:, ci].astype(jnp.float32)
            x_max = jnp.maximum(x_max, xc)
            x_sum = x_sum + xc
    else:
        def zpool_body(ci, carry):
            m, s = carry
            xc = x_ref[:, ci].astype(jnp.float32)
            return jnp.maximum(m, xc), s + xc
        x_max, x_sum = jax.lax.fori_loop(1, c, zpool_body, (x0, x0))

    # ---- pack `group` images side by side along lanes, each with a PAD-wide zero halo ----
    x_max = x_max.reshape(ngroups, group, h, w)
    x_sum = x_sum.reshape(ngroups, group, h, w)
    zero_cols = jnp.zeros((ngroups, h, PAD), jnp.float32)

    def pack_lanes(m):                           # (ngroups, group, h, w) -> (ngroups, h, l_pad)
        pieces = []
        for g in range(group):
            pieces += [zero_cols, m[:, g], zero_cols]
        return jnp.concatenate(pieces, axis=-1)

    packed = jnp.stack([pack_lanes(x_max), pack_lanes(x_sum)], axis=0)  # (2,ng,h,l_pad)

    # Every scratch byte is written exactly once per step: zero halo rows + packed body.
    # (A zero-once guard would be unsafe: the batch axis is "parallel", so each core has a
    #  private scratch and may never execute step 0.)
    zero_rows = jnp.zeros((2, ngroups, PAD, l_pad), jnp.float32)
    pad_ref[:, :, pl.ds(0, PAD), :] = zero_rows
    pad_ref[:, :, pl.ds(PAD, h), :] = packed
    pad_ref[:, :, pl.ds(PAD + h, PAD), :] = zero_rows

    # ---- 7x7 "same" conv, 2 -> 1 channels: 49 static-slice taps over the packed maps ----
    # TODO(synk): hoist the kw lane shift (7 pre-shifted map copies) if the bundle dump
    # shows per-tap lane rotates binding on the XLU.
    acc = jnp.zeros((ngroups, h, l_acc), jnp.float32)
    for kh in range(KSIZE):
        for kw in range(KSIZE):
            tap = pad_ref[:, :, pl.ds(kh, h), pl.ds(kw, l_acc)]   # (2, ngroups, h, l_acc)
            acc = (acc
                   + tap[0] * w_ref[0 * KSIZE * KSIZE + kh * KSIZE + kw]
                   + tap[1] * w_ref[1 * KSIZE * KSIZE + kh * KSIZE + kw])

    # ---- BN (already folded into w/b) + sigmoid, then un-pack per-image scale columns ----
    scale_packed = jax.nn.sigmoid(acc + b_ref[0])                  # (ngroups, h, l_acc) f32
    cols = [scale_packed[:, :, g * wp: g * wp + w] for g in range(group)]
    scale_f32 = jnp.stack(cols, axis=1).reshape(nb, h, w)          # (nb, h, w) f32

    # ---- gate: out = x * scale, streamed one channel at a time ----
    if low_precision_gate:
        scale_gate = scale_f32.astype(o_ref.dtype)                 # bf16 VPU on v6e/v7x

        def gate_one(ci):
            o_ref[:, ci] = x_ref[:, ci] * scale_gate
    else:
        def gate_one(ci):
            o_ref[:, ci] = (x_ref[:, ci].astype(jnp.float32) * scale_f32).astype(o_ref.dtype)

    if c <= _UNROLL_CHANNEL_LIMIT:
        for ci in range(c):
            gate_one(ci)
    else:
        def gate_body(ci, carry):
            gate_one(ci)
            return carry
        jax.lax.fori_loop(0, c, gate_body, 0)


# --------------------------------------------------------------------------------------
# wrapper
# --------------------------------------------------------------------------------------
def attention_gate(x, w_eff, b_eff, *, alias_input=False):
    """x: (N, C, H, W).  w_eff: (1, 2, K, K) BN-folded conv weight.  b_eff: scalar.

    alias_input=True reuses x's HBM buffer for the output (caller must not use x again).
    """
    n, c, h, w = x.shape
    itemsize = jnp.dtype(x.dtype).itemsize

    # Fold 1/C into the mean-channel weights so the kernel only needs a channel sum.
    w2 = w_eff.astype(jnp.float32).reshape(2, KSIZE, KSIZE)
    w2 = w2.at[1].multiply(1.0 / c)
    w_flat = w2.reshape(-1)                                        # (2*K*K,)
    b = jnp.reshape(b_eff, (1,)).astype(jnp.float32)

    vmem_limit, budget = _vmem_plan()
    nb, group = _pick_batch_block(n, c, h, w, itemsize, budget)
    ngroups = nb // group
    wp = w + 2 * PAD

    low_precision_gate = (x.dtype == jnp.bfloat16) and _has_bf16_valu()

    kernel = functools.partial(_attention_gate_kernel,
                               group=group,
                               low_precision_gate=low_precision_gate)

    cost = pl.CostEstimate(
        flops=int(n * h * w * (3 * c + 4 * KSIZE * KSIZE + 2)),
        transcendentals=int(n * h * w),
        bytes_accessed=int(2 * n * c * h * w * itemsize + w_flat.size * 4 + 4),
    )

    return pl.pallas_call(
        kernel,
        out_shape=jax.ShapeDtypeStruct((n, c, h, w), x.dtype),
        grid=(n // nb,),
        in_specs=[
            pl.BlockSpec(memory_space=pltpu.MemorySpace.SMEM),          # folded weights
            pl.BlockSpec(memory_space=pltpu.MemorySpace.SMEM),          # folded bias
            pl.BlockSpec((nb, c, h, w), lambda i: (i, 0, 0, 0)),        # x
        ],
        out_specs=pl.BlockSpec((nb, c, h, w), lambda i: (i, 0, 0, 0)),
        scratch_shapes=[
            pltpu.VMEM((2, ngroups, h + 2 * PAD, group * wp), jnp.float32),
        ],
        compiler_params=pltpu.CompilerParams(
            dimension_semantics=("parallel",),
            vmem_limit_bytes=vmem_limit,
        ),
        cost_estimate=cost,
        input_output_aliases=({2: 0} if alias_input else {}),
    )(w_flat, b, x)


# --------------------------------------------------------------------------------------
# pure-JAX reference (BN in eval mode, folded) and self-test
# --------------------------------------------------------------------------------------
def reference(x, w, b):
    x_max = jnp.max(x, axis=1, keepdims=True)
    x_mean = jnp.mean(x, axis=1, keepdims=True)
    pooled = jnp.concatenate([x_max, x_mean], axis=1)               # (N, 2, H, W)
    conv = jax.lax.conv_general_dilated(
        pooled, w, window_strides=(1, 1),
        padding=((PAD, PAD), (PAD, PAD)),
        dimension_numbers=("NCHW", "OIHW", "NCHW"),
        precision=jax.lax.Precision.HIGHEST)
    scale = jax.nn.sigmoid(conv + b)
    return x * scale


if __name__ == "__main__":
    key = jax.random.PRNGKey(0)
    kx, kw_key = jax.random.split(key, 2)

    # Conv2d(2, 1, kernel_size=7, bias=False) weight (OIHW) + BatchNorm2d(1) eval-mode
    # parameters / running stats, folded into an effective weight and bias.
    # TODO(synk): training-mode BN (batch statistics) not implemented; eval-mode BN folded.
    conv_w = jax.random.normal(kw_key, (1, 2, KSIZE, KSIZE), dtype=jnp.float32) * 0.1
    gamma = jnp.array([1.3], dtype=jnp.float32)
    beta = jnp.array([-0.2], dtype=jnp.float32)
    running_mean = jnp.array([0.05], dtype=jnp.float32)
    running_var = jnp.array([0.9], dtype=jnp.float32)

    bn_scale = gamma / jnp.sqrt(running_var + BN_EPS)               # (1,)
    w_eff = conv_w * bn_scale[:, None, None, None]                  # fold BN scale
    b_eff = (beta - running_mean * bn_scale)[0]                     # folded bias (scalar)

    configs = [
        ((8, 4, 16, 16), jnp.float32),    # lane-packed path: several images per group
        ((2, 4, 16, 16), jnp.float32),    # degenerate path: 1 image per lane group
        ((8, 4, 16, 16), jnp.bfloat16),   # low-precision gate multiply on v6e / v7x
    ]
    for shape, dtype in configs:
        x = jax.random.normal(kx, shape, dtype=jnp.float32).astype(dtype)
        out = jax.block_until_ready(attention_gate(x, w_eff, b_eff))
        ref = reference(x.astype(jnp.float32), w_eff, jnp.reshape(b_eff, (1, 1, 1, 1)))
        assert out.shape == shape and out.dtype == dtype
        err = jnp.max(jnp.abs(out.astype(jnp.float32) - ref))
        tol = 1e-5 if dtype == jnp.float32 else 4e-2
        assert err <= tol, f"{shape} {jnp.dtype(dtype).name}: max abs err = {err}"

    print("KERNEL_OK")
</pallas_src>

<mosaic_0001>
module attributes {stable_mosaic.version = 11 : i64} {
  func.func @_attention_gate_kernel(%arg0: i32, %arg1: memref<98xf32, #tpu.memory_space<smem>>, %arg2: memref<1xf32, #tpu.memory_space<smem>>, %arg3: memref<4x4x16x16xf32, #tpu.memory_space<vmem>>, %arg4: memref<4x4x16x16xf32, #tpu.memory_space<vmem>>, %arg5: memref<2x1x22x88xf32, #tpu.memory_space<vmem>>) attributes {dimension_semantics = [#tpu.dimension_semantics<parallel>], iteration_bounds = array<i64: 2>, scalar_prefetch = 0 : i64, scratch_operands = 1 : i64, tpu.core_type = #tpu.core_type<tc>, window_params = [{transform_indices = @transform_0, window_bounds = array<i64: 98>}, {transform_indices = @transform_1, window_bounds = array<i64: 1>}, {transform_indices = @transform_2, window_bounds = array<i64: 4, 4, 16, 16>}, {transform_indices = @transform_3, window_bounds = array<i64: 4, 4, 16, 16>}]} {
    %c0 = arith.constant 0 : index
    %c0_0 = arith.constant 0 : index
    %c0_1 = arith.constant 0 : index
    %c0_2 = arith.constant 0 : index
    %0 = vector.load %arg3[%c0, %c0_0, %c0_1, %c0_2] : memref<4x4x16x16xf32, #tpu.memory_space<vmem>>, vector<4x1x16x16xf32>
    %1 = vector.shape_cast %0 : vector<4x1x16x16xf32> to vector<4x16x16xf32>
    %c0_3 = arith.constant 0 : index
    %c1 = arith.constant 1 : index
    %c0_4 = arith.constant 0 : index
    %c0_5 = arith.constant 0 : index
    %2 = vector.load %arg3[%c0_3, %c1, %c0_4, %c0_5] : memref<4x4x16x16xf32, #tpu.memory_space<vmem>>, vector<4x1x16x16xf32>
    %3 = vector.shape_cast %2 : vector<4x1x16x16xf32> to vector<4x16x16xf32>
    %4 = arith.maximumf %1, %3 : vector<4x16x16xf32>
    %5 = arith.addf %1, %3 : vector<4x16x16xf32>
    %c0_6 = arith.constant 0 : index
    %c2 = arith.constant 2 : index
    %c0_7 = arith.constant 0 : index
    %c0_8 = arith.constant 0 : index
    %6 = vector.load %arg3[%c0_6, %c2, %c0_7, %c0_8] : memref<4x4x16x16xf32, #tpu.memory_space<vmem>>, vector<4x1x16x16xf32>
    %7 = vector.shape_cast %6 : vector<4x1x16x16xf32> to vector<4x16x16xf32>
    %8 = arith.maximumf %4, %7 : vector<4x16x16xf32>
    %9 = arith.addf %5, %7 : vector<4x16x16xf32>
    %c0_9 = arith.constant 0 : index
    %c3 = arith.constant 3 : index
    %c0_10 = arith.constant 0 : index
    %c0_11 = arith.constant 0 : index
    %10 = vector.load %arg3[%c0_9, %c3, %c0_10, %c0_11] : memref<4x4x16x16xf32, #tpu.memory_space<vmem>>, vector<4x1x16x16xf32>
    %11 = vector.shape_cast %10 : vector<4x1x16x16xf32> to vector<4x16x16xf32>
    %12 = arith.maximumf %8, %11 : vector<4x16x16xf32>
    %13 = arith.addf %9, %11 : vector<4x16x16xf32>
    %14 = vector.shape_cast %12 : vector<4x16x16xf32> to vector<1x4x16x16xf32>
    %15 = vector.shape_cast %13 : vector<4x16x16xf32> to vector<1x4x16x16xf32>
    %cst = arith.constant 0.000000e+00 : f32
    %16 = vector.broadcast %cst : f32 to vector<1x16x3xf32>
    %17 = vector.extract_strided_slice %14 {offsets = [0, 0, 0, 0], sizes = [1, 1, 16, 16], strides = [1, 1, 1, 1]} : vector<1x4x16x16xf32> to vector<1x1x16x16xf32>
    %18 = vector.shape_cast %17 : vector<1x1x16x16xf32> to vector<1x16x16xf32>
    %19 = vector.extract_strided_slice %14 {offsets = [0, 1, 0, 0], sizes = [1, 1, 16, 16], strides = [1, 1, 1, 1]} : vector<1x4x16x16xf32> to vector<1x1x16x16xf32>
    %20 = vector.shape_cast %19 : vector<1x1x16x16xf32> to vector<1x16x16xf32>
    %21 = vector.extract_strided_slice %14 {offsets = [0, 2, 0, 0], sizes = [1, 1, 16, 16], strides = [1, 1, 1, 1]} : vector<1x4x16x16xf32> to vector<1x1x16x16xf32>
    %22 = vector.shape_cast %21 : vector<1x1x16x16xf32> to vector<1x16x16xf32>
    %23 = vector.extract_strided_slice %14 {offsets = [0, 3, 0, 0], sizes = [1, 1, 16, 16], strides = [1, 1, 1, 1]} : vector<1x4x16x16xf32> to vector<1x1x16x16xf32>
    %24 = vector.shape_cast %23 : vector<1x1x16x16xf32> to vector<1x16x16xf32>
    %25 = tpu.concatenate %16, %18, %16, %16, %20, %16, %16, %22, %16, %16, %24, %16 in 2 : vector<1x16x3xf32>, vector<1x16x16xf32>, vector<1x16x3xf32>, vector<1x16x3xf32>, vector<1x16x16xf32>, vector<1x16x3xf32>, vector<1x16x3xf32>, vector<1x16x16xf32>, vector<1x16x3xf32>, vector<1x16x3xf32>, vector<1x16x16xf32>, vector<1x16x3xf32> -> vector<1x16x88xf32>
    %26 = vector.extract_strided_slice %15 {offsets = [0, 0, 0, 0], sizes = [1, 1, 16, 16], strides = [1, 1, 1, 1]} : vector<1x4x16x16xf32> to vector<1x1x16x16xf32>
    %27 = vector.shape_cast %26 : vector<1x1x16x16xf32> to vector<1x16x16xf32>
    %28 = vector.extract_strided_slice %15 {offsets = [0, 1, 0, 0], sizes = [1, 1, 16, 16], strides = [1, 1, 1, 1]} : vector<1x4x16x16xf32> to vector<1x1x16x16xf32>
    %29 = vector.shape_cast %28 : vector<1x1x16x16xf32> to vector<1x16x16xf32>
    %30 = vector.extract_strided_slice %15 {offsets = [0, 2, 0, 0], sizes = [1, 1, 16, 16], strides = [1, 1, 1, 1]} : vector<1x4x16x16xf32> to vector<1x1x16x16xf32>
    %31 = vector.shape_cast %30 : vector<1x1x16x16xf32> to vector<1x16x16xf32>
    %32 = vector.extract_strided_slice %15 {offsets = [0, 3, 0, 0], sizes = [1, 1, 16, 16], strides = [1, 1, 1, 1]} : vector<1x4x16x16xf32> to vector<1x1x16x16xf32>
    %33 = vector.shape_cast %32 : vector<1x1x16x16xf32> to vector<1x16x16xf32>
    %34 = tpu.concatenate %16, %27, %16, %16, %29, %16, %16, %31, %16, %16, %33, %16 in 2 : vector<1x16x3xf32>, vector<1x16x16xf32>, vector<1x16x3xf32>, vector<1x16x3xf32>, vector<1x16x16xf32>, vector<1x16x3xf32>, vector<1x16x3xf32>, vector<1x16x16xf32>, vector<1x16x3xf32>, vector<1x16x3xf32>, vector<1x16x16xf32>, vector<1x16x3xf32> -> vector<1x16x88xf32>
    %35 = vector.shape_cast %25 : vector<1x16x88xf32> to vector<1x1x16x88xf32>
    %36 = vector.shape_cast %34 : vector<1x16x88xf32> to vector<1x1x16x88xf32>
    %37 = tpu.concatenate %35, %36 in 0 : vector<1x1x16x88xf32>, vector<1x1x16x88xf32> -> vector<2x1x16x88xf32>
    %cst_12 = arith.constant 0.000000e+00 : f32
    %38 = vector.broadcast %cst_12 : f32 to vector<2x1x3x88xf32>
    %c0_13 = arith.constant 0 : index
    %c0_14 = arith.constant 0 : index
    %c0_15 = arith.constant 0 : index
    %c0_16 = arith.constant 0 : index
    %39 = vector.load %arg5[%c0_13, %c0_14, %c0_15, %c0_16] : memref<2x1x22x88xf32, #tpu.memory_space<vmem>>, vector<2x1x3x88xf32>
    tpu.vector_store %arg5[%c0_13, %c0_14, %c0_15, %c0_16], %38 {strides = array<i32>} : memref<2x1x22x88xf32, #tpu.memory_space<vmem>>, vector<2x1x3x88xf32>,
    %c0_17 = arith.constant 0 : index
    %c0_18 = arith.constant 0 : index
    %c3_19 = arith.constant 3 : index
    %c0_20 = arith.constant 0 : index
    %40 = vector.load %arg5[%c0_17, %c0_18, %c3_19, %c0_20] : memref<2x1x22x88xf32, #tpu.memory_space<vmem>>, vector<2x1x16x88xf32>
    tpu.vector_store %arg5[%c0_17, %c0_18, %c3_19, %c0_20], %37 {strides = array<i32>} : memref<2x1x22x88xf32, #tpu.memory_space<vmem>>, vector<2x1x16x88xf32>,
    %c0_21 = arith.constant 0 : index
    %c0_22 = arith.constant 0 : index
    %c19 = arith.constant 19 : index
    %c0_23 = arith.constant 0 : index
    %41 = vector.load %arg5[%c0_21, %c0_22, %c19, %c0_23] : memref<2x1x22x88xf32, #tpu.memory_space<vmem>>, vector<2x1x3x88xf32>
    tpu.vector_store %arg5[%c0_21, %c0_22, %c19, %c0_23], %38 {strides = array<i32>} : memref<2x1x22x88xf32, #tpu.memory_space<vmem>>, vector<2x1x3x88xf32>,
    %cst_24 = arith.constant 0.000000e+00 : f32
    %42 = vector.broadcast %cst_24 : f32 to vector<1x16x82xf32>
    %c0_25 = arith.constant 0 : index
    %c0_26 = arith.constant 0 : index
    %c0_27 = arith.constant 0 : index
    %c0_28 = arith.constant 0 : index
    %43 = vector.load %arg5[%c0_25, %c0_26, %c0_27, %c0_28] : memref<2x1x22x88xf32, #tpu.memory_space<vmem>>, vector<2x1x16x82xf32>
    %44 = vector.extract_strided_slice %43 {offsets = [0, 0, 0, 0], sizes = [1, 1, 16, 82], strides = [1, 1, 1, 1]} : vector<2x1x16x82xf32> to vector<1x1x16x82xf32>
    %45 = vector.shape_cast %44 : vector<1x1x16x82xf32> to vector<1x16x82xf32>
    %c0_29 = arith.constant 0 : index
    %46 = memref.load %arg1[%c0_29] : memref<98xf32, #tpu.memory_space<smem>>
    %47 = vector.broadcast %46 : f32 to vector<1x16x82xf32>
    %48 = arith.mulf %45, %47 : vector<1x16x82xf32>
    %49 = arith.addf %42, %48 : vector<1x16x82xf32>
    %50 = vector.extract_strided_slice %43 {offsets = [1, 0, 0, 0], sizes = [1, 1, 16, 82], strides = [1, 1, 1, 1]} : vector<2x1x16x82xf32> to vector<1x1x16x82xf32>
    %51 = vector.shape_cast %50 : vector<1x1x16x82xf32> to vector<1x16x82xf32>
    %c49 = arith.constant 49 : index
    %52 = memref.load %arg1[%c49] : memref<98xf32, #tpu.memory_space<smem>>
    %53 = vector.broadcast %52 : f32 to vector<1x16x82xf32>
    %54 = arith.mulf %51, %53 : vector<1x16x82xf32>
    %55 = arith.addf %49, %54 : vector<1x16x82xf32>
    %c0_30 = arith.constant 0 : index
    %c0_31 = arith.constant 0 : index
    %c0_32 = arith.constant 0 : index
    %c1_33 = arith.constant 1 : index
    %56 = vector.load %arg5[%c0_30, %c0_31, %c0_32, %c1_33] : memref<2x1x22x88xf32, #tpu.memory_space<vmem>>, vector<2x1x16x82xf32>
    %57 = vector.extract_strided_slice %56 {offsets = [0, 0, 0, 0], sizes = [1, 1, 16, 82], strides = [1, 1, 1, 1]} : vector<2x1x16x82xf32> to vector<1x1x16x82xf32>
    %58 = vector.shape_cast %57 : vector<1x1x16x82xf32> to vector<1x16x82xf32>
    %c1_34 = arith.constant 1 : index
    %59 = memref.load %arg1[%c1_34] : memref<98xf32, #tpu.memory_space<smem>>
    %60 = vector.broadcast %59 : f32 to vector<1x16x82xf32>
    %61 = arith.mulf %58, %60 : vector<1x16x82xf32>
    %62 = arith.addf %55, %61 : vector<1x16x82xf32>
    %63 = vector.extract_strided_slice %56 {offsets = [1, 0, 0, 0], sizes = [1, 1, 16, 82], strides = [1, 1, 1, 1]} : vector<2x1x16x82xf32> to vector<1x1x16x82xf32>
    %64 = vector.shape_cast %63 : vector<1x1x16x82xf32> to vector<1x16x82xf32>
    %c50 = arith.constant 50 : index
    %65 = memref.load %arg1[%c50] : memref<98xf32, #tpu.memory_space<smem>>
    %66 = vector.broadcast %65 : f32 to vector<1x16x82xf32>
    %67 = arith.mulf %64, %66 : vector<1x16x82xf32>
    %68 = arith.addf %62, %67 : vector<1x16x82xf32>
    %c0_35 = arith.constant 0 : index
    %c0_36 = arith.constant 0 : index
    %c0_37 = arith.constant 0 : index
    %c2_38 = arith.constant 2 : index
    %69 = vector.load %arg5[%c0_35, %c0_36, %c0_37, %c2_38] : memref<2x1x22x88xf32, #tpu.memory_space<vmem>>, vector<2x1x16x82xf32>
    %70 = vector.extract_strided_slice %69 {offsets = [0, 0, 0, 0], sizes = [1, 1, 16, 82], strides = [1, 1, 1, 1]} : vector<2x1x16x82xf32> to vector<1x1x16x82xf32>
    %71 = vector.shape_cast %70 : vector<1x1x16x82xf32> to vector<1x16x82xf32>
    %c2_39 = arith.constant 2 : index
    %72 = memref.load %arg1[%c2_39] : memref<98xf32, #tpu.memory_space<smem>>
    %73 = vector.broadcast %72 : f32 to vector<1x16x82xf32>
    %74 = arith.mulf %71, %73 : vector<1x16x82xf32>
    %75 = arith.addf %68, %74 : vector<1x16x82xf32>
    %76 = vector.extract_strided_slice %69 {offsets = [1, 0, 0, 0], sizes = [1, 1, 16, 82], strides = [1, 1, 1, 1]} : vector<2x1x16x82xf32> to vector<1x1x16x82xf32>
    %77 = vector.shape_cast %76 : vector<1x1x16x82xf32> to vector<1x16x82xf32>
    %c51 = arith.constant 51 : index
    %78 = memref.load %arg1[%c51] : memref<98xf32, #tpu.memory_space<smem>>
    %79 = vector.broadcast %78 : f32 to vector<1x16x82xf32>
    %80 = arith.mulf %77, %79 : vector<1x16x82xf32>
    %81 = arith.addf %75, %80 : vector<1x16x82xf32>
    %c0_40 = arith.constant 0 : index
    %c0_41 = arith.constant 0 : index
    %c0_42 = arith.constant 0 : index
    %c3_43 = arith.constant 3 : index
    %82 = vector.load %arg5[%c0_40, %c0_41, %c0_42, %c3_43] : memref<2x1x22x88xf32, #tpu.memory_space<vmem>>, vector<2x1x16x82xf32>
    %83 = vector.extract_strided_slice %82 {offsets = [0, 0, 0, 0], sizes = [1, 1, 16, 82], strides = [1, 1, 1, 1]} : vector<2x1x16x82xf32> to vector<1x1x16x82xf32>
    %84 = vector.shape_cast %83 : vector<1x1x16x82xf32> to vector<1x16x82xf32>
    %c3_44 = arith.constant 3 : index
    %85 = memref.load %arg1[%c3_44] : memref<98xf32, #tpu.memory_space<smem>>
    %86 = vector.broadcast %85 : f32 to vector<1x16x82xf32>
    %87 = arith.mulf %84, %86 : vector<1x16x82xf32>
    %88 = arith.addf %81, %87 : vector<1x16x82xf32>
    %89 = vector.extract_strided_slice %82 {offsets = [1, 0, 0, 0], sizes = [1, 1, 16, 82], strides = [1, 1, 1, 1]} : vector<2x1x16x82xf32> to vector<1x1x16x82xf32>
    %90 = vector.shape_cast %89 : vector<1x1x16x82xf32> to vector<1x16x82xf32>
    %c52 = arith.constant 52 : index
    %91 = memref.load %arg1[%c52] : memref<98xf32, #tpu.memory_space<smem>>
    %92 = vector.broadcast %91 : f32 to vector<1x16x82xf32>
    %93 = arith.mulf %90, %92 : vector<1x16x82xf32>
    %94 = arith.addf %88, %93 : vector<1x16x82xf32>
    %c0_45 = arith.constant 0 : index
    %c0_46 = arith.constant 0 : index
    %c0_47 = arith.constant 0 : index
    %c4 = arith.constant 4 : index
    %95 = vector.load %arg5[%c0_45, %c0_46, %c0_47, %c4] : memref<2x1x22x88xf32, #tpu.memory_space<vmem>>, vector<2x1x16x82xf32>
    %96 = vector.extract_strided_slice %95 {offsets = [0, 0, 0, 0], sizes = [1, 1, 16, 82], strides = [1, 1, 1, 1]} : vector<2x1x16x82xf32> to vector<1x1x16x82xf32>
    %97 = vector.shape_cast %96 : vector<1x1x16x82xf32> to vector<1x16x82xf32>
    %c4_48 = arith.constant 4 : index
    %98 = memref.load %arg1[%c4_48] : memref<98xf32, #tpu.memory_space<smem>>
    %99 = vector.broadcast %98 : f32 to vector<1x16x82xf32>
    %100 = arith.mulf %97, %99 : vector<1x16x82xf32>
    %101 = arith.addf %94, %100 : vector<1x16x82xf32>
    %102 = vector.extract_strided_slice %95 {offsets = [1, 0, 0, 0], sizes = [1, 1, 16, 82], strides = [1, 1, 1, 1]} : vector<2x1x16x82xf32> to vector<1x1x16x82xf32>
    %103 = vector.shape_cast %102 : vector<1x1x16x82xf32> to vector<1x16x82xf32>
    %c53 = arith.constant 53 : index
    %104 = memref.load %arg1[%c53] : memref<98xf32, #tpu.memory_space<smem>>
    %105 = vector.broadcast %104 : f32 to vector<1x16x82xf32>
    %106 = arith.mulf %103, %105 : vector<1x16x82xf32>
    %107 = arith.addf %101, %106 : vector<1x16x82xf32>
    %c0_49 = arith.constant 0 : index
    %c0_50 = arith.constant 0 : index
    %c0_51 = arith.constant 0 : index
    %c5 = arith.constant 5 : index
    %108 = vector.load %arg5[%c0_49, %c0_50, %c0_51, %c5] : memref<2x1x22x88xf32, #tpu.memory_space<vmem>>, vector<2x1x16x82xf32>
    %109 = vector.extract_strided_slice %108 {offsets = [0, 0, 0, 0], sizes = [1, 1, 16, 82], strides = [1, 1, 1, 1]} : vector<2x1x16x82xf32> to vector<1x1x16x82xf32>
    %110 = vector.shape_cast %109 : vector<1x1x16x82xf32> to vector<1x16x82xf32>
    %c5_52 = arith.constant 5 : index
    %111 = memref.load %arg1[%c5_52] : memref<98xf32, #tpu.memory_space<smem>>
    %112 = vector.broadcast %111 : f32 to vector<1x16x82xf32>
    %113 = arith.mulf %110, %112 : vector<1x16x82xf32>
    %114 = arith.addf %107, %113 : vector<1x16x82xf32>
    %115 = vector.extract_strided_slice %108 {offsets = [1, 0, 0, 0], sizes = [1, 1, 16, 82], strides = [1, 1, 1, 1]} : vector<2x1x16x82xf32> to vector<1x1x16x82xf32>
    %116 = vector.shape_cast %115 : vector<1x1x16x82xf32> to vector<1x16x82xf32>
    %c54 = arith.constant 54 : index
    %117 = memref.load %arg1[%c54] : memref<98xf32, #tpu.memory_space<smem>>
    %118 = vector.broadcast %117 : f32 to vector<1x16x82xf32>
    %119 = arith.mulf %116, %118 : vector<1x16x82xf32>
    %120 = arith.addf %114, %119 : vector<1x16x82xf32>
    %c0_53 = arith.constant 0 : index
    %c0_54 = arith.constant 0 : index
    %c0_55 = arith.constant 0 : index
    %c6 = arith.constant 6 : index
    %121 = vector.load %arg5[%c0_53, %c0_54, %c0_55, %c6] : memref<2x1x22x88xf32, #tpu.memory_space<vmem>>, vector<2x1x16x82xf32>
    %122 = vector.extract_strided_slice %121 {offsets = [0, 0, 0, 0], sizes = [1, 1, 16, 82], strides = [1, 1, 1, 1]} : vector<2x1x16x82xf32> to vector<1x1x16x82xf32>
    %123 = vector.shape_cast %122 : vector<1x1x16x82xf32> to vector<1x16x82xf32>
    %c6_56 = arith.constant 6 : index
    %124 = memref.load %arg1[%c6_56] : memref<98xf32, #tpu.memory_space<smem>>
    %125 = vector.broadcast %124 : f32 to vector<1x16x82xf32>
    %126 = arith.mulf %123, %125 : vector<1x16x82xf32>
    %127 = arith.addf %120, %126 : vector<1x16x82xf32>
    %128 = vector.extract_strided_slice %121 {offsets = [1, 0, 0, 0], sizes = [1, 1, 16, 82], strides = [1, 1, 1, 1]} : vector<2x1x16x82xf32> to vector<1x1x16x82xf32>
    %129 = vector.shape_cast %128 : vector<1x1x16x82xf32> to vector<1x16x82xf32>
    %c55 = arith.constant 55 : index
    %130 = memref.load %arg1[%c55] : memref<98xf32, #tpu.memory_space<smem>>
    %131 = vector.broadcast %130 : f32 to vector<1x16x82xf32>
    %132 = arith.mulf %129, %131 : vector<1x16x82xf32>
    %133 = arith.addf %127, %132 : vector<1x16x82xf32>
    %c0_57 = arith.constant 0 : index
    %c0_58 = arith.constant 0 : index
    %c1_59 = arith.constant 1 : index
    %c0_60 = arith.constant 0 : index
    %134 = vector.load %arg5[%c0_57, %c0_58, %c1_59, %c0_60] : memref<2x1x22x88xf32, #tpu.memory_space<vmem>>, vector<2x1x16x82xf32>
    %135 = vector.extract_strided_slice %134 {offsets = [0, 0, 0, 0], sizes = [1, 1, 16, 82], strides = [1, 1, 1, 1]} : vector<2x1x16x82xf32> to vector<1x1x16x82xf32>
    %136 = vector.shape_cast %135 : vector<1x1x16x82xf32> to vector<1x16x82xf32>
    %c7 = arith.constant 7 : index
    %137 = memref.load %arg1[%c7] : memref<98xf32, #tpu.memory_space<smem>>
    %138 = vector.broadcast %137 : f32 to vector<1x16x82xf32>
    %139 = arith.mulf %136, %138 : vector<1x16x82xf32>
    %140 = arith.addf %133, %139 : vector<1x16x82xf32>
    %141 = vector.extract_strided_slice %134 {offsets = [1, 0, 0, 0], sizes = [1, 1, 16, 82], strides = [1, 1, 1, 1]} : vector<2x1x16x82xf32> to vector<1x1x16x82xf32>
    %142 = vector.shape_cast %141 : vector<1x1x16x82xf32> to vector<1x16x82xf32>
    %c56 = arith.constant 56 : index
    %143 = memref.load %arg1[%c56] : memref<98xf32, #tpu.memory_space<smem>>
    %144 = vector.broadcast %143 : f32 to vector<1x16x82xf32>
    %145 = arith.mulf %142, %144 : vector<1x16x82xf32>
    %146 = arith.addf %140, %145 : vector<1x16x82xf32>
    %c0_61 = arith.constant 0 : index
    %c0_62 = arith.constant 0 : index
    %c1_63 = arith.constant 1 : index
    %c1_64 = arith.constant 1 : index
    %147 = vector.load %arg5[%c0_61, %c0_62, %c1_63, %c1_64] : memref<2x1x22x88xf32, #tpu.memory_space<vmem>>, vector<2x1x16x82xf32>
    %148 = vector.extract_strided_slice %147 {offsets = [0, 0, 0, 0], sizes = [1, 1, 16, 82], strides = [1, 1, 1, 1]} : vector<2x1x16x82xf32> to vector<1x1x16x82xf32>
    %149 = vector.shape_cast %148 : vector<1x1x16x82xf32> to vector<1x16x82xf32>
    %c8 = arith.constant 8 : index
    %150 = memref.load %arg1[%c8] : memref<98xf32, #tpu.memory_space<smem>>
    %151 = vector.broadcast %150 : f32 to vector<1x16x82xf32>
    %152 = arith.mulf %149, %151 : vector<1x16x82xf32>
    %153 = arith.addf %146, %152 : vector<1x16x82xf32>
    %154 = vector.extract_strided_slice %147 {offsets = [1, 0, 0, 0], sizes = [1, 1, 16, 82], strides = [1, 1, 1, 1]} : vector<2x1x16x82xf32> to vector<1x1x16x82xf32>
    %155 = vector.shape_cast %154 : vector<1x1x16x82xf32> to vector<1x16x82xf32>
    %c57 = arith.constant 57 : index
    %156 = memref.load %arg1[%c57] : memref<98xf32, #tpu.memory_space<smem>>
    %157 = vector.broadcast %156 : f32 to vector<1x16x82xf32>
    %158 = arith.mulf %155, %157 : vector<1x16x82xf32>
    %159 = arith.addf %153, %158 : vector<1x16x82xf32>
    %c0_65 = arith.constant 0 : index
    %c0_66 = arith.constant 0 : index
    %c1_67 = arith.constant 1 : index
    %c2_68 = arith.constant 2 : index
    %160 = vector.load %arg5[%c0_65, %c0_66, %c1_67, %c2_68] : memref<2x1x22x88xf32, #tpu.memory_space<vmem>>, vector<2x1x16x82xf32>
    %161 = vector.extract_strided_slice %160 {offsets = [0, 0, 0, 0], sizes = [1, 1, 16, 82], strides = [1, 1, 1, 1]} : vector<2x1x16x82xf32> to vector<1x1x16x82xf32>
    %162 = vector.shape_cast %161 : vector<1x1x16x82xf32> to vector<1x16x82xf32>
    %c9 = arith.constant 9 : index
    %163 = memref.load %arg1[%c9] : memref<98xf32, #tpu.memory_space<smem>>
    %164 = vector.broadcast %163 : f32 to vector<1x16x82xf32>
    %165 = arith.mulf %162, %164 : vector<1x16x82xf32>
    %166 = arith.addf %159, %165 : vector<1x16x82xf32>
    %167 = vector.extract_strided_slice %160 {offsets = [1, 0, 0, 0], sizes = [1, 1, 16, 82], strides = [1, 1, 1, 1]} : vector<2x1x16x82xf32> to vector<1x1x16x82xf32>
    %168 = vector.shape_cast %167 : vector<1x1x16x82xf32> to vector<1x16x82xf32>
    %c58 = arith.constant 58 : index
    %169 = memref.load %arg1[%c58] : memref<98xf32, #tpu.memory_space<smem>>
    %170 = vector.broadcast %169 : f32 to vector<1x16x82xf32>
    %171 = arith.mulf %168, %170 : vector<1x16x82xf32>
    %172 = arith.addf %166, %171 : vector<1x16x82xf32>
    %c0_69 = arith.constant 0 : index
    %c0_70 = arith.constant 0 : index
    %c1_71 = arith.constant 1 : index
    %c3_72 = arith.constant 3 : index
    %173 = vector.load %arg5[%c0_69, %c0_70, %c1_71, %c3_72] : memref<2x1x22x88xf32, #tpu.memory_space<vmem>>, vector<2x1x16x82xf32>
    %174 = vector.extract_strided_slice %173 {offsets = [0, 0, 0, 0], sizes = [1, 1, 16, 82], strides = [1, 1, 1, 1]} : vector<2x1x16x82xf32> to vector<1x1x16x82xf32>
    %175 = vector.shape_cast %174 : vector<1x1x16x82xf32> to vector<1x16x82xf32>
    %c10 = arith.constant 10 : index
    %176 = memref.load %arg1[%c10] : memref<98xf32, #tpu.memory_space<smem>>
    %177 = vector.broadcast %176 : f32 to vector<1x16x82xf32>
    %178 = arith.mulf %175, %177 : vector<1x16x82xf32>
    %179 = arith.addf %172, %178 : vector<1x16x82xf32>
    %180 = vector.extract_strided_slice %173 {offsets = [1, 0, 0, 0], sizes = [1, 1, 16, 82], strides = [1, 1, 1, 1]} : vector<2x1x16x82xf32> to vector<1x1x16x82xf32>
    %181 = vector.shape_cast %180 : vector<1x1x16x82xf32> to vector<1x16x82xf32>
    %c59 = arith.constant 59 : index
    %182 = memref.load %arg1[%c59] : memref<98xf32, #tpu.memory_space<smem>>
    %183 = vector.broadcast %182 : f32 to vector<1x16x82xf32>
    %184 = arith.mulf %181, %183 : vector<1x16x82xf32>
    %185 = arith.addf %179, %184 : vector<1x16x82xf32>
    %c0_73 = arith.constant 0 : index
    %c0_74 = arith.constant 0 : index
    %c1_75 = arith.constant 1 : index
    %c4_76 = arith.constant 4 : index
    %186 = vector.load %arg5[%c0_73, %c0_74, %c1_75, %c4_76] : memref<2x1x22x88xf32, #tpu.memory_space<vmem>>, vector<2x1x16x82xf32>
    %187 = vector.extract_strided_slice %186 {offsets = [0, 0, 0, 0], sizes = [1, 1, 16, 82], strides = [1, 1, 1, 1]} : vector<2x1x16x82xf32> to vector<1x1x16x82xf32>
    %188 = vector.shape_cast %187 : vector<1x1x16x82xf32> to vector<1x16x82xf32>
    %c11 = arith.constant 11 : index
    %189 = memref.load %arg1[%c11] : memref<98xf32, #tpu.memory_space<smem>>
    %190 = vector.broadcast %189 : f32 to vector<1x16x82xf32>
    %191 = arith.mulf %188, %190 : vector<1x16x82xf32>
    %192 = arith.addf %185, %191 : vector<1x16x82xf32>
    %193 = vector.extract_strided_slice %186 {offsets = [1, 0, 0, 0], sizes = [1, 1, 16, 82], strides = [1, 1, 1, 1]} : vector<2x1x16x82xf32> to vector<1x1x16x82xf32>
    %194 = vector.shape_cast %193 : vector<1x1x16x82xf32> to vector<1x16x82xf32>
    %c60 = arith.constant 60 : index
    %195 = memref.load %arg1[%c60] : memref<98xf32, #tpu.memory_space<smem>>
    %196 = vector.broadcast %195 : f32 to vector<1x16x82xf32>
    %197 = arith.mulf %194, %196 : vector<1x16x82xf32>
    %198 = arith.addf %192, %197 : vector<1x16x82xf32>
    %c0_77 = arith.constant 0 : index
    %c0_78 = arith.constant 0 : index
    %c1_79 = arith.constant 1 : index
    %c5_80 = arith.constant 5 : index
    %199 = vector.load %arg5[%c0_77, %c0_78, %c1_79, %c5_80] : memref<2x1x22x88xf32, #tpu.memory_space<vmem>>, vector<2x1x16x82xf32>
    %200 = vector.extract_strided_slice %199 {offsets = [0, 0, 0, 0], sizes = [1, 1, 16, 82], strides = [1, 1, 1, 1]} : vector<2x1x16x82xf32> to vector<1x1x16x82xf32>
    %201 = vector.shape_cast %200 : vector<1x1x16x82xf32> to vector<1x16x82xf32>
    %c12 = arith.constant 12 : index
    %202 = memref.load %arg1[%c12] : memref<98xf32, #tpu.memory_space<smem>>
    %203 = vector.broadcast %202 : f32 to vector<1x16x82xf32>
    %204 = arith.mulf %201, %203 : vector<1x16x82xf32>
    %205 = arith.addf %198, %204 : vector<1x16x82xf32>
    %206 = vector.extract_strided_slice %199 {offsets = [1, 0, 0, 0], sizes = [1, 1, 16, 82], strides = [1, 1, 1, 1]} : vector<2x1x16x82xf32> to vector<1x1x16x82xf32>
    %207 = vector.shape_cast %206 : vector<1x1x16x82xf32> to vector<1x16x82xf32>
    %c61 = arith.constant 61 : index
    %208 = memref.load %arg1[%c61] : memref<98xf32, #tpu.memory_space<smem>>
    %209 = vector.broadcast %208 : f32 to vector<1x16x82xf32>
    %210 = arith.mulf %207, %209 : vector<1x16x82xf32>
    %211 = arith.addf %205, %210 : vector<1x16x82xf32>
    %c0_81 = arith.constant 0 : index
    %c0_82 = arith.constant 0 : index
    %c1_83 = arith.constant 1 : index
    %c6_84 = arith.constant 6 : index
    %212 = vector.load %arg5[%c0_81, %c0_82, %c1_83, %c6_84] : memref<2x1x22x88xf32, #tpu.memory_space<vmem>>, vector<2x1x16x82xf32>
    %213 = vector.extract_strided_slice %212 {offsets = [0, 0, 0, 0], sizes = [1, 1, 16, 82], strides = [1, 1, 1, 1]} : vector<2x1x16x82xf32> to vector<1x1x16x82xf32>
    %214 = vector.shape_cast %213 : vector<1x1x16x82xf32> to vector<1x16x82xf32>
    %c13 = arith.constant 13 : index
    %215 = memref.load %arg1[%c13] : memref<98xf32, #tpu.memory_space<smem>>
    %216 = vector.broadcast %215 : f32 to vector<1x16x82xf32>
    %217 = arith.mulf %214, %216 : vector<1x16x82xf32>
    %218 = arith.addf %211, %217 : vector<1x16x82xf32>
    %219 = vector.extract_strided_slice %212 {offsets = [1, 0, 0, 0], sizes = [1, 1, 16, 82], strides = [1, 1, 1, 1]} : vector<2x1x16x82xf32> to vector<1x1x16x82xf32>
    %220 = vector.shape_cast %219 : vector<1x1x16x82xf32> to vector<1x16x82xf32>
    %c62 = arith.constant 62 : index
    %221 = memref.load %arg1[%c62] : memref<98xf32, #tpu.memory_space<smem>>
    %222 = vector.broadcast %221 : f32 to vector<1x16x82xf32>
    %223 = arith.mulf %220, %222 : vector<1x16x82xf32>
    %224 = arith.addf %218, %223 : vector<1x16x82xf32>
    %c0_85 = arith.constant 0 : index
    %c0_86 = arith.constant 0 : index
    %c2_87 = arith.constant 2 : index
    %c0_88 = arith.constant 0 : index
    %225 = vector.load %arg5[%c0_85, %c0_86, %c2_87, %c0_88] : memref<2x1x22x88xf32, #tpu.memory_space<vmem>>, vector<2x1x16x82xf32>
    %226 = vector.extract_strided_slice %225 {offsets = [0, 0, 0, 0], sizes = [1, 1, 16, 82], strides = [1, 1, 1, 1]} : vector<2x1x16x82xf32> to vector<1x1x16x82xf32>
    %227 = vector.shape_cast %226 : vector<1x1x16x82xf32> to vector<1x16x82xf32>
    %c14 = arith.constant 14 : index
    %228 = memref.load %arg1[%c14] : memref<98xf32, #tpu.memory_space<smem>>
    %229 = vector.broadcast %228 : f32 to vector<1x16x82xf32>
    %230 = arith.mulf %227, %229 : vector<1x16x82xf32>
    %231 = arith.addf %224, %230 : vector<1x16x82xf32>
    %232 = vector.extract_strided_slice %225 {offsets = [1, 0, 0, 0], sizes = [1, 1, 16, 82], strides = [1, 1, 1, 1]} : vector<2x1x16x82xf32> to vector<1x1x16x82xf32>
    %233 = vector.shape_cast %232 : vector<1x1x16x82xf32> to vector<1x16x82xf32>
    %c63 = arith.constant 63 : index
    %234 = memref.load %arg1[%c63] : memref<98xf32, #tpu.memory_space<smem>>
    %235 = vector.broadcast %234 : f32 to vector<1x16x82xf32>
    %236 = arith.mulf %233, %235 : vector<1x16x82xf32>
    %237 = arith.addf %231, %236 : vector<1x16x82xf32>
    %c0_89 = arith.constant 0 : index
    %c0_90 = arith.constant 0 : index
    %c2_91 = arith.constant 2 : index
    %c1_92 = arith.constant 1 : index
    %238 = vector.load %arg5[%c0_89, %c0_90, %c2_91, %c1_92] : memref<2x1x22x88xf32, #tpu.memory_space<vmem>>, vector<2x1x16x82xf32>
    %239 = vector.extract_strided_slice %238 {offsets = [0, 0, 0, 0], sizes = [1, 1, 16, 82], strides = [1, 1, 1, 1]} : vector<2x1x16x82xf32> to vector<1x1x16x82xf32>
    %240 = vector.shape_cast %239 : vector<1x1x16x82xf32> to vector<1x16x82xf32>
    %c15 = arith.constant 15 : index
    %241 = memref.load %arg1[%c15] : memref<98xf32, #tpu.memory_space<smem>>
    %242 = vector.broadcast %241 : f32 to vector<1x16x82xf32>
    %243 = arith.mulf %240, %242 : vector<1x16x82xf32>
    %244 = arith.addf %237, %243 : vector<1x16x82xf32>
    %245 = vector.extract_strided_slice %238 {offsets = [1, 0, 0, 0], sizes = [1, 1, 16, 82], strides = [1, 1, 1, 1]} : vector<2x1x16x82xf32> to vector<1x1x16x82xf32>
    %246 = vector.shape_cast %245 : vector<1x1x16x82xf32> to vector<1x16x82xf32>
    %c64 = arith.constant 64 : index
    %247 = memref.load %arg1[%c64] : memref<98xf32, #tpu.memory_space<smem>>
    %248 = vector.broadcast %247 : f32 to vector<1x16x82xf32>
    %249 = arith.mulf %246, %248 : vector<1x16x82xf32>
    %250 = arith.addf %244, %249 : vector<1x16x82xf32>
    %c0_93 = arith.constant 0 : index
    %c0_94 = arith.constant 0 : index
    %c2_95 = arith.constant 2 : index
    %c2_96 = arith.constant 2 : index
    %251 = vector.load %arg5[%c0_93, %c0_94, %c2_95, %c2_96] : memref<2x1x22x88xf32, #tpu.memory_space<vmem>>, vector<2x1x16x82xf32>
    %252 = vector.extract_strided_slice %251 {offsets = [0, 0, 0, 0], sizes = [1, 1, 16, 82], strides = [1, 1, 1, 1]} : vector<2x1x16x82xf32> to vector<1x1x16x82xf32>
    %253 = vector.shape_cast %252 : vector<1x1x16x82xf32> to vector<1x16x82xf32>
    %c16 = arith.constant 16 : index
    %254 = memref.load %arg1[%c16] : memref<98xf32, #tpu.memory_space<smem>>
    %255 = vector.broadcast %254 : f32 to vector<1x16x82xf32>
    %256 = arith.mulf %253, %255 : vector<1x16x82xf32>
    %257 = arith.addf %250, %256 : vector<1x16x82xf32>
    %258 = vector.extract_strided_slice %251 {offsets = [1, 0, 0, 0], sizes = [1, 1, 16, 82], strides = [1, 1, 1, 1]} : vector<2x1x16x82xf32> to vector<1x1x16x82xf32>
    %259 = vector.shape_cast %258 : vector<1x1x16x82xf32> to vector<1x16x82xf32>
    %c65 = arith.constant 65 : index
    %260 = memref.load %arg1[%c65] : memref<98xf32, #tpu.memory_space<smem>>
    %261 = vector.broadcast %260 : f32 to vector<1x16x82xf32>
    %262 = arith.mulf %259, %261 : vector<1x16x82xf32>
    %263 = arith.addf %257, %262 : vector<1x16x82xf32>
    %c0_97 = arith.constant 0 : index
    %c0_98 = arith.constant 0 : index
    %c2_99 = arith.constant 2 : index
    %c3_100 = arith.constant 3 : index
    %264 = vector.load %arg5[%c0_97, %c0_98, %c2_99, %c3_100] : memref<2x1x22x88xf32, #tpu.memory_space<vmem>>, vector<2x1x16x82xf32>
    %265 = vector.extract_strided_slice %264 {offsets = [0, 0, 0, 0], sizes = [1, 1, 16, 82], strides = [1, 1, 1, 1]} : vector<2x1x16x82xf32> to vector<1x1x16x82xf32>
    %266 = vector.shape_cast %265 : vector<1x1x16x82xf32> to vector<1x16x82xf32>
    %c17 = arith.constant 17 : index
    %267 = memref.load %arg1[%c17] : memref<98xf32, #tpu.memory_space<smem>>
    %268 = vector.broadcast %267 : f32 to vector<1x16x82xf32>
    %269 = arith.mulf %266, %268 : vector<1x16x82xf32>
    %270 = arith.addf %263, %269 : vector<1x16x82xf32>
    %271 = vector.extract_strided_slice %264 {offsets = [1, 0, 0, 0], sizes = [1, 1, 16, 82], strides = [1, 1, 1, 1]} : vector<2x1x16x82xf32> to vector<1x1x16x82xf32>
    %272 = vector.shape_cast %271 : vector<1x1x16x82xf32> to vector<1x16x82xf32>
    %c66 = arith.constant 66 : index
    %273 = memref.load %arg1[%c66] : memref<98xf32, #tpu.memory_space<smem>>
    %274 = vector.broadcast %273 : f32 to vector<1x16x82xf32>
    %275 = arith.mulf %272, %274 : vector<1x16x82xf32>
    %276 = arith.addf %270, %275 : vector<1x16x82xf32>
    %c0_101 = arith.constant 0 : index
    %c0_102 = arith.constant 0 : index
    %c2_103 = arith.constant 2 : index
    %c4_104 = arith.constant 4 : index
    %277 = vector.load %arg5[%c0_101, %c0_102, %c2_103, %c4_104] : memref<2x1x22x88xf32, #tpu.memory_space<vmem>>, vector<2x1x16x82xf32>
    %278 = vector.extract_strided_slice %277 {offsets = [0, 0, 0, 0], sizes = [1, 1, 16, 82], strides = [1, 1, 1, 1]} : vector<2x1x16x82xf32> to vector<1x1x16x82xf32>
    %279 = vector.shape_cast %278 : vector<1x1x16x82xf32> to vector<1x16x82xf32>
    %c18 = arith.constant 18 : index
    %280 = memref.load %arg1[%c18] : memref<98xf32, #tpu.memory_space<smem>>
    %281 = vector.broadcast %280 : f32 to vector<1x16x82xf32>
    %282 = arith.mulf %279, %281 : vector<1x16x82xf32>
    %283 = arith.addf %276, %282 : vector<1x16x82xf32>
    %284 = vector.extract_strided_slice %277 {offsets = [1, 0, 0, 0], sizes = [1, 1, 16, 82], strides = [1, 1, 1, 1]} : vector<2x1x16x82xf32> to vector<1x1x16x82xf32>
    %285 = vector.shape_cast %284 : vector<1x1x16x82xf32> to vector<1x16x82xf32>
    %c67 = arith.constant 67 : index
    %286 = memref.load %arg1[%c67] : memref<98xf32, #tpu.memory_space<smem>>
    %287 = vector.broadcast %286 : f32 to vector<1x16x82xf32>
    %288 = arith.mulf %285, %287 : vector<1x16x82xf32>
    %289 = arith.addf %283, %288 : vector<1x16x82xf32>
    %c0_105 = arith.constant 0 : index
    %c0_106 = arith.constant 0 : index
    %c2_107 = arith.constant 2 : index
    %c5_108 = arith.constant 5 : index
    %290 = vector.load %arg5[%c0_105, %c0_106, %c2_107, %c5_108] : memref<2x1x22x88xf32, #tpu.memory_space<vmem>>, vector<2x1x16x82xf32>
    %291 = vector.extract_strided_slice %290 {offsets = [0, 0, 0, 0], sizes = [1, 1, 16, 82], strides = [1, 1, 1, 1]} : vector<2x1x16x82xf32> to vector<1x1x16x82xf32>
    %292 = vector.shape_cast %291 : vector<1x1x16x82xf32> to vector<1x16x82xf32>
    %c19_109 = arith.constant 19 : index
    %293 = memref.load %arg1[%c19_109] : memref<98xf32, #tpu.memory_space<smem>>
    %294 = vector.broadcast %293 : f32 to vector<1x16x82xf32>
    %295 = arith.mulf %292, %294 : vector<1x16x82xf32>
    %296 = arith.addf %289, %295 : vector<1x16x82xf32>
    %297 = vector.extract_strided_slice %290 {offsets = [1, 0, 0, 0], sizes = [1, 1, 16, 82], strides = [1, 1, 1, 1]} : vector<2x1x16x82xf32> to vector<1x1x16x82xf32>
    %298 = vector.shape_cast %297 : vector<1x1x16x82xf32> to vector<1x16x82xf32>
    %c68 = arith.constant 68 : index
    %299 = memref.load %arg1[%c68] : memref<98xf32, #tpu.memory_space<smem>>
    %300 = vector.broadcast %299 : f32 to vector<1x16x82xf32>
    %301 = arith.mulf %298, %300 : vector<1x16x82xf32>
    %302 = arith.addf %296, %301 : vector<1x16x82xf32>
    %c0_110 = arith.constant 0 : index
    %c0_111 = arith.constant 0 : index
    %c2_112 = arith.constant 2 : index
    %c6_113 = arith.constant 6 : index
    %303 = vector.load %arg5[%c0_110, %c0_111, %c2_112, %c6_113] : memref<2x1x22x88xf32, #tpu.memory_space<vmem>>, vector<2x1x16x82xf32>
    %304 = vector.extract_strided_slice %303 {offsets = [0, 0, 0, 0], sizes = [1, 1, 16, 82], strides = [1, 1, 1, 1]} : vector<2x1x16x82xf32> to vector<1x1x16x82xf32>
    %305 = vector.shape_cast %304 : vector<1x1x16x82xf32> to vector<1x16x82xf32>
    %c20 = arith.constant 20 : index
    %306 = memref.load %arg1[%c20] : memref<98xf32, #tpu.memory_space<smem>>
    %307 = vector.broadcast %306 : f32 to vector<1x16x82xf32>
    %308 = arith.mulf %305, %307 : vector<1x16x82xf32>
    %309 = arith.addf %302, %308 : vector<1x16x82xf32>
    %310 = vector.extract_strided_slice %303 {offsets = [1, 0, 0, 0], sizes = [1, 1, 16, 82], strides = [1, 1, 1, 1]} : vector<2x1x16x82xf32> to vector<1x1x16x82xf32>
    %311 = vector.shape_cast %310 : vector<1x1x16x82xf32> to vector<1x16x82xf32>
    %c69 = arith.constant 69 : index
    %312 = memref.load %arg1[%c69] : memref<98xf32, #tpu.memory_space<smem>>
    %313 = vector.broadcast %312 : f32 to vector<1x16x82xf32>
    %314 = arith.mulf %311, %313 : vector<1x16x82xf32>
    %315 = arith.addf %309, %314 : vector<1x16x82xf32>
    %c0_114 = arith.constant 0 : index
    %c0_115 = arith.constant 0 : index
    %c3_116 = arith.constant 3 : index
    %c0_117 = arith.constant 0 : index
    %316 = vector.load %arg5[%c0_114, %c0_115, %c3_116, %c0_117] : memref<2x1x22x88xf32, #tpu.memory_space<vmem>>, vector<2x1x16x82xf32>
    %317 = vector.extract_strided_slice %316 {offsets = [0, 0, 0, 0], sizes = [1, 1, 16, 82], strides = [1, 1, 1, 1]} : vector<2x1x16x82xf32> to vector<1x1x16x82xf32>
    %318 = vector.shape_cast %317 : vector<1x1x16x82xf32> to vector<1x16x82xf32>
    %c21 = arith.constant 21 : index
    %319 = memref.load %arg1[%c21] : memref<98xf32, #tpu.memory_space<smem>>
    %320 = vector.broadcast %319 : f32 to vector<1x16x82xf32>
    %321 = arith.mulf %318, %320 : vector<1x16x82xf32>
    %322 = arith.addf %315, %321 : vector<1x16x82xf32>
    %323 = vector.extract_strided_slice %316 {offsets = [1, 0, 0, 0], sizes = [1, 1, 16, 82], strides = [1, 1, 1, 1]} : vector<2x1x16x82xf32> to vector<1x1x16x82xf32>
    %324 = vector.shape_cast %323 : vector<1x1x16x82xf32> to vector<1x16x82xf32>
    %c70 = arith.constant 70 : index
    %325 = memref.load %arg1[%c70] : memref<98xf32, #tpu.memory_space<smem>>
    %326 = vector.broadcast %325 : f32 to vector<1x16x82xf32>
    %327 = arith.mulf %324, %326 : vector<1x16x82xf32>
    %328 = arith.addf %322, %327 : vector<1x16x82xf32>
    %c0_118 = arith.constant 0 : index
    %c0_119 = arith.constant 0 : index
    %c3_120 = arith.constant 3 : index
    %c1_121 = arith.constant 1 : index
    %329 = vector.load %arg5[%c0_118, %c0_119, %c3_120, %c1_121] : memref<2x1x22x88xf32, #tpu.memory_space<vmem>>, vector<2x1x16x82xf32>
    %330 = vector.extract_strided_slice %329 {offsets = [0, 0, 0, 0], sizes = [1, 1, 16, 82], strides = [1, 1, 1, 1]} : vector<2x1x16x82xf32> to vector<1x1x16x82xf32>
    %331 = vector.shape_cast %330 : vector<1x1x16x82xf32> to vector<1x16x82xf32>
    %c22 = arith.constant 22 : index
    %332 = memref.load %arg1[%c22] : memref<98xf32, #tpu.memory_space<smem>>
    %333 = vector.broadcast %332 : f32 to vector<1x16x82xf32>
    %334 = arith.mulf %331, %333 : vector<1x16x82xf32>
    %335 = arith.addf %328, %334 : vector<1x16x82xf32>
    %336 = vector.extract_strided_slice %329 {offsets = [1, 0, 0, 0], sizes = [1, 1, 16, 82], strides = [1, 1, 1, 1]} : vector<2x1x16x82xf32> to vector<1x1x16x82xf32>
    %337 = vector.shape_cast %336 : vector<1x1x16x82xf32> to vector<1x16x82xf32>
    %c71 = arith.constant 71 : index
    %338 = memref.load %arg1[%c71] : memref<98xf32, #tpu.memory_space<smem>>
    %339 = vector.broadcast %338 : f32 to vector<1x16x82xf32>
    %340 = arith.mulf %337, %339 : vector<1x16x82xf32>
    %341 = arith.addf %335, %340 : vector<1x16x82xf32>
    %c0_122 = arith.constant 0 : index
    %c0_123 = arith.constant 0 : index
    %c3_124 = arith.constant 3 : index
    %c2_125 = arith.constant 2 : index
    %342 = vector.load %arg5[%c0_122, %c0_123, %c3_124, %c2_125] : memref<2x1x22x88xf32, #tpu.memory_space<vmem>>, vector<2x1x16x82xf32>
    %343 = vector.extract_strided_slice %342 {offsets = [0, 0, 0, 0], sizes = [1, 1, 16, 82], strides = [1, 1, 1, 1]} : vector<2x1x16x82xf32> to vector<1x1x16x82xf32>
    %344 = vector.shape_cast %343 : vector<1x1x16x82xf32> to vector<1x16x82xf32>
    %c23 = arith.constant 23 : index
    %345 = memref.load %arg1[%c23] : memref<98xf32, #tpu.memory_space<smem>>
    %346 = vector.broadcast %345 : f32 to vector<1x16x82xf32>
    %347 = arith.mulf %344, %346 : vector<1x16x82xf32>
    %348 = arith.addf %341, %347 : vector<1x16x82xf32>
    %349 = vector.extract_strided_slice %342 {offsets = [1, 0, 0, 0], sizes = [1, 1, 16, 82], strides = [1, 1, 1, 1]} : vector<2x1x16x82xf32> to vector<1x1x16x82xf32>
    %350 = vector.shape_cast %349 : vector<1x1x16x82xf32> to vector<1x16x82xf32>
    %c72 = arith.constant 72 : index
    %351 = memref.load %arg1[%c72] : memref<98xf32, #tpu.memory_space<smem>>
    %352 = vector.broadcast %351 : f32 to vector<1x16x82xf32>
    %353 = arith.mulf %350, %352 : vector<1x16x82xf32>
    %354 = arith.addf %348, %353 : vector<1x16x82xf32>
    %c0_126 = arith.constant 0 : index
    %c0_127 = arith.constant 0 : index
    %c3_128 = arith.constant 3 : index
    %c3_129 = arith.constant 3 : index
    %355 = vector.load %arg5[%c0_126, %c0_127, %c3_128, %c3_129] : memref<2x1x22x88xf32, #tpu.memory_space<vmem>>, vector<2x1x16x82xf32>
    %356 = vector.extract_strided_slice %355 {offsets = [0, 0, 0, 0], sizes = [1, 1, 16, 82], strides = [1, 1, 1, 1]} : vector<2x1x16x82xf32> to vector<1x1x16x82xf32>
    %357 = vector.shape_cast %356 : vector<1x1x16x82xf32> to vector<1x16x82xf32>
    %c24 = arith.constant 24 : index
    %358 = memref.load %arg1[%c24] : memref<98xf32, #tpu.memory_space<smem>>
    %359 = vector.broadcast %358 : f32 to vector<1x16x82xf32>
    %360 = arith.mulf %357, %359 : vector<1x16x82xf32>
    %361 = arith.addf %354, %360 : vector<1x16x82xf32>
    %362 = vector.extract_strided_slice %355 {offsets = [1, 0, 0, 0], sizes = [1, 1, 16, 82], strides = [1, 1, 1, 1]} : vector<2x1x16x82xf32> to vector<1x1x16x82xf32>
    %363 = vector.shape_cast %362 : vector<1x1x16x82xf32> to vector<1x16x82xf32>
    %c73 = arith.constant 73 : index
    %364 = memref.load %arg1[%c73] : memref<98xf32, #tpu.memory_space<smem>>
    %365 = vector.broadcast %364 : f32 to vector<1x16x82xf32>
    %366 = arith.mulf %363, %365 : vector<1x16x82xf32>
    %367 = arith.addf %361, %366 : vector<1x16x82xf32>
    %c0_130 = arith.constant 0 : index
    %c0_131 = arith.constant 0 : index
    %c3_132 = arith.constant 3 : index
    %c4_133 = arith.constant 4 : index
    %368 = vector.load %arg5[%c0_130, %c0_131, %c3_132, %c4_133] : memref<2x1x22x88xf32, #tpu.memory_space<vmem>>, vector<2x1x16x82xf32>
    %369 = vector.extract_strided_slice %368 {offsets = [0, 0, 0, 0], sizes = [1, 1, 16, 82], strides = [1, 1, 1, 1]} : vector<2x1x16x82xf32> to vector<1x1x16x82xf32>
    %370 = vector.shape_cast %369 : vector<1x1x16x82xf32> to vector<1x16x82xf32>
    %c25 = arith.constant 25 : index
    %371 = memref.load %arg1[%c25] : memref<98xf32, #tpu.memory_space<smem>>
    %372 = vector.broadcast %371 : f32 to vector<1x16x82xf32>
    %373 = arith.mulf %370, %372 : vector<1x16x82xf32>
    %374 = arith.addf %367, %373 : vector<1x16x82xf32>
    %375 = vector.extract_strided_slice %368 {offsets = [1, 0, 0, 0], sizes = [1, 1, 16, 82], strides = [1, 1, 1, 1]} : vector<2x1x16x82xf32> to vector<1x1x16x82xf32>
    %376 = vector.shape_cast %375 : vector<1x1x16x82xf32> to vector<1x16x82xf32>
    %c74 = arith.constant 74 : index
    %377 = memref.load %arg1[%c74] : memref<98xf32, #tpu.memory_space<smem>>
    %378 = vector.broadcast %377 : f32 to vector<1x16x82xf32>
    %379 = arith.mulf %376, %378 : vector<1x16x82xf32>
    %380 = arith.addf %374, %379 : vector<1x16x82xf32>
    %c0_134 = arith.constant 0 : index
    %c0_135 = arith.constant 0 : index
    %c3_136 = arith.constant 3 : index
    %c5_137 = arith.constant 5 : index
    %381 = vector.load %arg5[%c0_134, %c0_135, %c3_136, %c5_137] : memref<2x1x22x88xf32, #tpu.memory_space<vmem>>, vector<2x1x16x82xf32>
    %382 = vector.extract_strided_slice %381 {offsets = [0, 0, 0, 0], sizes = [1, 1, 16, 82], strides = [1, 1, 1, 1]} : vector<2x1x16x82xf32> to vector<1x1x16x82xf32>
    %383 = vector.shape_cast %382 : vector<1x1x16x82xf32> to vector<1x16x82xf32>
    %c26 = arith.constant 26 : index
    %384 = memref.load %arg1[%c26] : memref<98xf32, #tpu.memory_space<smem>>
    %385 = vector.broadcast %384 : f32 to vector<1x16x82xf32>
    %386 = arith.mulf %383, %385 : vector<1x16x82xf32>
    %387 = arith.addf %380, %386 : vector<1x16x82xf32>
    %388 = vector.extract_strided_slice %381 {offsets = [1, 0, 0, 0], sizes = [1, 1, 16, 82], strides = [1, 1, 1, 1]} : vector<2x1x16x82xf32> to vector<1x1x16x82xf32>
    %389 = vector.shape_cast %388 : vector<1x1x16x82xf32> to vector<1x16x82xf32>
    %c75 = arith.constant 75 : index
    %390 = memref.load %arg1[%c75] : memref<98xf32, #tpu.memory_space<smem>>
    %391 = vector.broadcast %390 : f32 to vector<1x16x82xf32>
    %392 = arith.mulf %389, %391 : vector<1x16x82xf32>
    %393 = arith.addf %387, %392 : vector<1x16x82xf32>
    %c0_138 = arith.constant 0 : index
    %c0_139 = arith.constant 0 : index
    %c3_140 = arith.constant 3 : index
    %c6_141 = arith.constant 6 : index
    %394 = vector.load %arg5[%c0_138, %c0_139, %c3_140, %c6_141] : memref<2x1x22x88xf32, #tpu.memory_space<vmem>>, vector<2x1x16x82xf32>
    %395 = vector.extract_strided_slice %394 {offsets = [0, 0, 0, 0], sizes = [1, 1, 16, 82], strides = [1, 1, 1, 1]} : vector<2x1x16x82xf32> to vector<1x1x16x82xf32>
    %396 = vector.shape_cast %395 : vector<1x1x16x82xf32> to vector<1x16x82xf32>
    %c27 = arith.constant 27 : index
    %397 = memref.load %arg1[%c27] : memref<98xf32, #tpu.memory_space<smem>>
    %398 = vector.broadcast %397 : f32 to vector<1x16x82xf32>
    %399 = arith.mulf %396, %398 : vector<1x16x82xf32>
    %400 = arith.addf %393, %399 : vector<1x16x82xf32>
    %401 = vector.extract_strided_slice %394 {offsets = [1, 0, 0, 0], sizes = [1, 1, 16, 82], strides = [1, 1, 1, 1]} : vector<2x1x16x82xf32> to vector<1x1x16x82xf32>
    %402 = vector.shape_cast %401 : vector<1x1x16x82xf32> to vector<1x16x82xf32>
    %c76 = arith.constant 76 : index
    %403 = memref.load %arg1[%c76] : memref<98xf32, #tpu.memory_space<smem>>
    %404 = vector.broadcast %403 : f32 to vector<1x16x82xf32>
    %405 = arith.mulf %402, %404 : vector<1x16x82xf32>
    %406 = arith.addf %400, %405 : vector<1x16x82xf32>
    %c0_142 = arith.constant 0 : index
    %c0_143 = arith.constant 0 : index
    %c4_144 = arith.constant 4 : index
    %c0_145 = arith.constant 0 : index
    %407 = vector.load %arg5[%c0_142, %c0_143, %c4_144, %c0_145] : memref<2x1x22x88xf32, #tpu.memory_space<vmem>>, vector<2x1x16x82xf32>
    %408 = vector.extract_strided_slice %407 {offsets = [0, 0, 0, 0], sizes = [1, 1, 16, 82], strides = [1, 1, 1, 1]} : vector<2x1x16x82xf32> to vector<1x1x16x82xf32>
    %409 = vector.shape_cast %408 : vector<1x1x16x82xf32> to vector<1x16x82xf32>
    %c28 = arith.constant 28 : index
    %410 = memref.load %arg1[%c28] : memref<98xf32, #tpu.memory_space<smem>>
    %411 = vector.broadcast %410 : f32 to vector<1x16x82xf32>
    %412 = arith.mulf %409, %411 : vector<1x16x82xf32>
    %413 = arith.addf %406, %412 : vector<1x16x82xf32>
    %414 = vector.extract_strided_slice %407 {offsets = [1, 0, 0, 0], sizes = [1, 1, 16, 82], strides = [1, 1, 1, 1]} : vector<2x1x16x82xf32> to vector<1x1x16x82xf32>
    %415 = vector.shape_cast %414 : vector<1x1x16x82xf32> to vector<1x16x82xf32>
    %c77 = arith.constant 77 : index
    %416 = memref.load %arg1[%c77] : memref<98xf32, #tpu.memory_space<smem>>
    %417 = vector.broadcast %416 : f32 to vector<1x16x82xf32>
    %418 = arith.mulf %415, %417 : vector<1x16x82xf32>
    %419 = arith.addf %413, %418 : vector<1x16x82xf32>
    %c0_146 = arith.constant 0 : index
    %c0_147 = arith.constant 0 : index
    %c4_148 = arith.constant 4 : index
    %c1_149 = arith.constant 1 : index
    %420 = vector.load %arg5[%c0_146, %c0_147, %c4_148, %c1_149] : memref<2x1x22x88xf32, #tpu.memory_space<vmem>>, vector<2x1x16x82xf32>
    %421 = vector.extract_strided_slice %420 {offsets = [0, 0, 0, 0], sizes = [1, 1, 16, 82], strides = [1, 1, 1, 1]} : vector<2x1x16x82xf32> to vector<1x1x16x82xf32>
    %422 = vector.shape_cast %421 : vector<1x1x16x82xf32> to vector<1x16x82xf32>
    %c29 = arith.constant 29 : index
    %423 = memref.load %arg1[%c29] : memref<98xf32, #tpu.memory_space<smem>>
    %424 = vector.broadcast %423 : f32 to vector<1x16x82xf32>
    %425 = arith.mulf %422, %424 : vector<1x16x82xf32>
    %426 = arith.addf %419, %425 : vector<1x16x82xf32>
    %427 = vector.extract_strided_slice %420 {offsets = [1, 0, 0, 0], sizes = [1, 1, 16, 82], strides = [1, 1, 1, 1]} : vector<2x1x16x82xf32> to vector<1x1x16x82xf32>
    %428 = vector.shape_cast %427 : vector<1x1x16x82xf32> to vector<1x16x82xf32>
    %c78 = arith.constant 78 : index
    %429 = memref.load %arg1[%c78] : memref<98xf32, #tpu.memory_space<smem>>
    %430 = vector.broadcast %429 : f32 to vector<1x16x82xf32>
    %431 = arith.mulf %428, %430 : vector<1x16x82xf32>
    %432 = arith.addf %426, %431 : vector<1x16x82xf32>
    %c0_150 = arith.constant 0 : index
    %c0_151 = arith.constant 0 : index
    %c4_152 = arith.constant 4 : index
    %c2_153 = arith.constant 2 : index
    %433 = vector.load %arg5[%c0_150, %c0_151, %c4_152, %c2_153] : memref<2x1x22x88xf32, #tpu.memory_space<vmem>>, vector<2x1x16x82xf32>
    %434 = vector.extract_strided_slice %433 {offsets = [0, 0, 0, 0], sizes = [1, 1, 16, 82], strides = [1, 1, 1, 1]} : vector<2x1x16x82xf32> to vector<1x1x16x82xf32>
    %435 = vector.shape_cast %434 : vector<1x1x16x82xf32> to vector<1x16x82xf32>
    %c30 = arith.constant 30 : index
    %436 = memref.load %arg1[%c30] : memref<98xf32, #tpu.memory_space<smem>>
    %437 = vector.broadcast %436 : f32 to vector<1x16x82xf32>
    %438 = arith.mulf %435, %437 : vector<1x16x82xf32>
    %439 = arith.addf %432, %438 : vector<1x16x82xf32>
    %440 = vector.extract_strided_slice %433 {offsets = [1, 0, 0, 0], sizes = [1, 1, 16, 82], strides = [1, 1, 1, 1]} : vector<2x1x16x82xf32> to vector<1x1x16x82xf32>
    %441 = vector.shape_cast %440 : vector<1x1x16x82xf32> to vector<1x16x82xf32>
    %c79 = arith.constant 79 : index
    %442 = memref.load %arg1[%c79] : memref<98xf32, #tpu.memory_space<smem>>
    %443 = vector.broadcast %442 : f32 to vector<1x16x82xf32>
    %444 = arith.mulf %441, %443 : vector<1x16x82xf32>
    %445 = arith.addf %439, %444 : vector<1x16x82xf32>
    %c0_154 = arith.constant 0 : index
    %c0_155 = arith.constant 0 : index
    %c4_156 = arith.constant 4 : index
    %c3_157 = arith.constant 3 : index
    %446 = vector.load %arg5[%c0_154, %c0_155, %c4_156, %c3_157] : memref<2x1x22x88xf32, #tpu.memory_space<vmem>>, vector<2x1x16x82xf32>
    %447 = vector.extract_strided_slice %446 {offsets = [0, 0, 0, 0], sizes = [1, 1, 16, 82], strides = [1, 1, 1, 1]} : vector<2x1x16x82xf32> to vector<1x1x16x82xf32>
    %448 = vector.shape_cast %447 : vector<1x1x16x82xf32> to vector<1x16x82xf32>
    %c31 = arith.constant 31 : index
    %449 = memref.load %arg1[%c31] : memref<98xf32, #tpu.memory_space<smem>>
    %450 = vector.broadcast %449 : f32 to vector<1x16x82xf32>
    %451 = arith.mulf %448, %450 : vector<1x16x82xf32>
    %452 = arith.addf %445, %451 : vector<1x16x82xf32>
    %453 = vector.extract_strided_slice %446 {offsets = [1, 0, 0, 0], sizes = [1, 1, 16, 82], strides = [1, 1, 1, 1]} : vector<2x1x16x82xf32> to vector<1x1x16x82xf32>
    %454 = vector.shape_cast %453 : vector<1x1x16x82xf32> to vector<1x16x82xf32>
    %c80 = arith.constant 80 : index
    %455 = memref.load %arg1[%c80] : memref<98xf32, #tpu.memory_space<smem>>
    %456 = vector.broadcast %455 : f32 to vector<1x16x82xf32>
    %457 = arith.mulf %454, %456 : vector<1x16x82xf32>
    %458 = arith.addf %452, %457 : vector<1x16x82xf32>
    %c0_158 = arith.constant 0 : index
    %c0_159 = arith.constant 0 : index
    %c4_160 = arith.constant 4 : index
    %c4_161 = arith.constant 4 : index
    %459 = vector.load %arg5[%c0_158, %c0_159, %c4_160, %c4_161] : memref<2x1x22x88xf32, #tpu.memory_space<vmem>>, vector<2x1x16x82xf32>
    %460 = vector.extract_strided_slice %459 {offsets = [0, 0, 0, 0], sizes = [1, 1, 16, 82], strides = [1, 1, 1, 1]} : vector<2x1x16x82xf32> to vector<1x1x16x82xf32>
    %461 = vector.shape_cast %460 : vector<1x1x16x82xf32> to vector<1x16x82xf32>
    %c32 = arith.constant 32 : index
    %462 = memref.load %arg1[%c32] : memref<98xf32, #tpu.memory_space<smem>>
    %463 = vector.broadcast %462 : f32 to vector<1x16x82xf32>
    %464 = arith.mulf %461, %463 : vector<1x16x82xf32>
    %465 = arith.addf %458, %464 : vector<1x16x82xf32>
    %466 = vector.extract_strided_slice %459 {offsets = [1, 0, 0, 0], sizes = [1, 1, 16, 82], strides = [1, 1, 1, 1]} : vector<2x1x16x82xf32> to vector<1x1x16x82xf32>
    %467 = vector.shape_cast %466 : vector<1x1x16x82xf32> to vector<1x16x82xf32>
    %c81 = arith.constant 81 : index
    %468 = memref.load %arg1[%c81] : memref<98xf32, #tpu.memory_space<smem>>
    %469 = vector.broadcast %468 : f32 to vector<1x16x82xf32>
    %470 = arith.mulf %467, %469 : vector<1x16x82xf32>
    %471 = arith.addf %465, %470 : vector<1x16x82xf32>
    %c0_162 = arith.constant 0 : index
    %c0_163 = arith.constant 0 : index
    %c4_164 = arith.constant 4 : index
    %c5_165 = arith.constant 5 : index
    %472 = vector.load %arg5[%c0_162, %c0_163, %c4_164, %c5_165] : memref<2x1x22x88xf32, #tpu.memory_space<vmem>>, vector<2x1x16x82xf32>
    %473 = vector.extract_strided_slice %472 {offsets = [0, 0, 0, 0], sizes = [1, 1, 16, 82], strides = [1, 1, 1, 1]} : vector<2x1x16x82xf32> to vector<1x1x16x82xf32>
    %474 = vector.shape_cast %473 : vector<1x1x16x82xf32> to vector<1x16x82xf32>
    %c33 = arith.constant 33 : index
    %475 = memref.load %arg1[%c33] : memref<98xf32, #tpu.memory_space<smem>>
    %476 = vector.broadcast %475 : f32 to vector<1x16x82xf32>
    %477 = arith.mulf %474, %476 : vector<1x16x82xf32>
    %478 = arith.addf %471, %477 : vector<1x16x82xf32>
    %479 = vector.extract_strided_slice %472 {offsets = [1, 0, 0, 0], sizes = [1, 1, 16, 82], strides = [1, 1, 1, 1]} : vector<2x1x16x82xf32> to vector<1x1x16x82xf32>
    %480 = vector.shape_cast %479 : vector<1x1x16x82xf32> to vector<1x16x82xf32>
    %c82 = arith.constant 82 : index
    %481 = memref.load %arg1[%c82] : memref<98xf32, #tpu.memory_space<smem>>
    %482 = vector.broadcast %481 : f32 to vector<1x16x82xf32>
    %483 = arith.mulf %480, %482 : vector<1x16x82xf32>
    %484 = arith.addf %478, %483 : vector<1x16x82xf32>
    %c0_166 = arith.constant 0 : index
    %c0_167 = arith.constant 0 : index
    %c4_168 = arith.constant 4 : index
    %c6_169 = arith.constant 6 : index
    %485 = vector.load %arg5[%c0_166, %c0_167, %c4_168, %c6_169] : memref<2x1x22x88xf32, #tpu.memory_space<vmem>>, vector<2x1x16x82xf32>
    %486 = vector.extract_strided_slice %485 {offsets = [0, 0, 0, 0], sizes = [1, 1, 16, 82], strides = [1, 1, 1, 1]} : vector<2x1x16x82xf32> to vector<1x1x16x82xf32>
    %487 = vector.shape_cast %486 : vector<1x1x16x82xf32> to vector<1x16x82xf32>
    %c34 = arith.constant 34 : index
    %488 = memref.load %arg1[%c34] : memref<98xf32, #tpu.memory_space<smem>>
    %489 = vector.broadcast %488 : f32 to vector<1x16x82xf32>
    %490 = arith.mulf %487, %489 : vector<1x16x82xf32>
    %491 = arith.addf %484, %490 : vector<1x16x82xf32>
    %492 = vector.extract_strided_slice %485 {offsets = [1, 0, 0, 0], sizes = [1, 1, 16, 82], strides = [1, 1, 1, 1]} : vector<2x1x16x82xf32> to vector<1x1x16x82xf32>
    %493 = vector.shape_cast %492 : vector<1x1x16x82xf32> to vector<1x16x82xf32>
    %c83 = arith.constant 83 : index
    %494 = memref.load %arg1[%c83] : memref<98xf32, #tpu.memory_space<smem>>
    %495 = vector.broadcast %494 : f32 to vector<1x16x82xf32>
    %496 = arith.mulf %493, %495 : vector<1x16x82xf32>
    %497 = arith.addf %491, %496 : vector<1x16x82xf32>
    %c0_170 = arith.constant 0 : index
    %c0_171 = arith.constant 0 : index
    %c5_172 = arith.constant 5 : index
    %c0_173 = arith.constant 0 : index
    %498 = vector.load %arg5[%c0_170, %c0_171, %c5_172, %c0_173] : memref<2x1x22x88xf32, #tpu.memory_space<vmem>>, vector<2x1x16x82xf32>
    %499 = vector.extract_strided_slice %498 {offsets = [0, 0, 0, 0], sizes = [1, 1, 16, 82], strides = [1, 1, 1, 1]} : vector<2x1x16x82xf32> to vector<1x1x16x82xf32>
    %500 = vector.shape_cast %499 : vector<1x1x16x82xf32> to vector<1x16x82xf32>
    %c35 = arith.constant 35 : index
    %501 = memref.load %arg1[%c35] : memref<98xf32, #tpu.memory_space<smem>>
    %502 = vector.broadcast %501 : f32 to vector<1x16x82xf32>
    %503 = arith.mulf %500, %502 : vector<1x16x82xf32>
    %504 = arith.addf %497, %503 : vector<1x16x82xf32>
    %505 = vector.extract_strided_slice %498 {offsets = [1, 0, 0, 0], sizes = [1, 1, 16, 82], strides = [1, 1, 1, 1]} : vector<2x1x16x82xf32> to vector<1x1x16x82xf32>
    %506 = vector.shape_cast %505 : vector<1x1x16x82xf32> to vector<1x16x82xf32>
    %c84 = arith.constant 84 : index
    %507 = memref.load %arg1[%c84] : memref<98xf32, #tpu.memory_space<smem>>
    %508 = vector.broadcast %507 : f32 to vector<1x16x82xf32>
    %509 = arith.mulf %506, %508 : vector<1x16x82xf32>
    %510 = arith.addf %504, %509 : vector<1x16x82xf32>
    %c0_174 = arith.constant 0 : index
    %c0_175 = arith.constant 0 : index
    %c5_176 = arith.constant 5 : index
    %c1_177 = arith.constant 1 : index
    %511 = vector.load %arg5[%c0_174, %c0_175, %c5_176, %c1_177] : memref<2x1x22x88xf32, #tpu.memory_space<vmem>>, vector<2x1x16x82xf32>
    %512 = vector.extract_strided_slice %511 {offsets = [0, 0, 0, 0], sizes = [1, 1, 16, 82], strides = [1, 1, 1, 1]} : vector<2x1x16x82xf32> to vector<1x1x16x82xf32>
    %513 = vector.shape_cast %512 : vector<1x1x16x82xf32> to vector<1x16x82xf32>
    %c36 = arith.constant 36 : index
    %514 = memref.load %arg1[%c36] : memref<98xf32, #tpu.memory_space<smem>>
    %515 = vector.broadcast %514 : f32 to vector<1x16x82xf32>
    %516 = arith.mulf %513, %515 : vector<1x16x82xf32>
    %517 = arith.addf %510, %516 : vector<1x16x82xf32>
    %518 = vector.extract_strided_slice %511 {offsets = [1, 0, 0, 0], sizes = [1, 1, 16, 82], strides = [1, 1, 1, 1]} : vector<2x1x16x82xf32> to vector<1x1x16x82xf32>
    %519 = vector.shape_cast %518 : vector<1x1x16x82xf32> to vector<1x16x82xf32>
    %c85 = arith.constant 85 : index
    %520 = memref.load %arg1[%c85] : memref<98xf32, #tpu.memory_space<smem>>
    %521 = vector.broadcast %520 : f32 to vector<1x16x82xf32>
    %522 = arith.mulf %519, %521 : vector<1x16x82xf32>
    %523 = arith.addf %517, %522 : vector<1x16x82xf32>
    %c0_178 = arith.constant 0 : index
    %c0_179 = arith.constant 0 : index
    %c5_180 = arith.constant 5 : index
    %c2_181 = arith.constant 2 : index
    %524 = vector.load %arg5[%c0_178, %c0_179, %c5_180, %c2_181] : memref<2x1x22x88xf32, #tpu.memory_space<vmem>>, vector<2x1x16x82xf32>
    %525 = vector.extract_strided_slice %524 {offsets = [0, 0, 0, 0], sizes = [1, 1, 16, 82], strides = [1, 1, 1, 1]} : vector<2x1x16x82xf32> to vector<1x1x16x82xf32>
    %526 = vector.shape_cast %525 : vector<1x1x16x82xf32> to vector<1x16x82xf32>
    %c37 = arith.constant 37 : index
    %527 = memref.load %arg1[%c37] : memref<98xf32, #tpu.memory_space<smem>>
    %528 = vector.broadcast %527 : f32 to vector<1x16x82xf32>
    %529 = arith.mulf %526, %528 : vector<1x16x82xf32>
    %530 = arith.addf %523, %529 : vector<1x16x82xf32>
    %531 = vector.extract_strided_slice %524 {offsets = [1, 0, 0, 0], sizes = [1, 1, 16, 82], strides = [1, 1, 1, 1]} : vector<2x1x16x82xf32> to vector<1x1x16x82xf32>
    %532 = vector.shape_cast %531 : vector<1x1x16x82xf32> to vector<1x16x82xf32>
    %c86 = arith.constant 86 : index
    %533 = memref.load %arg1[%c86] : memref<98xf32, #tpu.memory_space<smem>>
    %534 = vector.broadcast %533 : f32 to vector<1x16x82xf32>
    %535 = arith.mulf %532, %534 : vector<1x16x82xf32>
    %536 = arith.addf %530, %535 : vector<1x16x82xf32>
    %c0_182 = arith.constant 0 : index
    %c0_183 = arith.constant 0 : index
    %c5_184 = arith.constant 5 : index
    %c3_185 = arith.constant 3 : index
    %537 = vector.load %arg5[%c0_182, %c0_183, %c5_184, %c3_185] : memref<2x1x22x88xf32, #tpu.memory_space<vmem>>, vector<2x1x16x82xf32>
    %538 = vector.extract_strided_slice %537 {offsets = [0, 0, 0, 0], sizes = [1, 1, 16, 82], strides = [1, 1, 1, 1]} : vector<2x1x16x82xf32> to vector<1x1x16x82xf32>
    %539 = vector.shape_cast %538 : vector<1x1x16x82xf32> to vector<1x16x82xf32>
    %c38 = arith.constant 38 : index
    %540 = memref.load %arg1[%c38] : memref<98xf32, #tpu.memory_space<smem>>
    %541 = vector.broadcast %540 : f32 to vector<1x16x82xf32>
    %542 = arith.mulf %539, %541 : vector<1x16x82xf32>
    %543 = arith.addf %536, %542 : vector<1x16x82xf32>
    %544 = vector.extract_strided_slice %537 {offsets = [1, 0, 0, 0], sizes = [1, 1, 16, 82], strides = [1, 1, 1, 1]} : vector<2x1x16x82xf32> to vector<1x1x16x82xf32>
    %545 = vector.shape_cast %544 : vector<1x1x16x82xf32> to vector<1x16x82xf32>
    %c87 = arith.constant 87 : index
    %546 = memref.load %arg1[%c87] : memref<98xf32, #tpu.memory_space<smem>>
    %547 = vector.broadcast %546 : f32 to vector<1x16x82xf32>
    %548 = arith.mulf %545, %547 : vector<1x16x82xf32>
    %549 = arith.addf %543, %548 : vector<1x16x82xf32>
    %c0_186 = arith.constant 0 : index
    %c0_187 = arith.constant 0 : index
    %c5_188 = arith.constant 5 : index
    %c4_189 = arith.constant 4 : index
    %550 = vector.load %arg5[%c0_186, %c0_187, %c5_188, %c4_189] : memref<2x1x22x88xf32, #tpu.memory_space<vmem>>, vector<2x1x16x82xf32>
    %551 = vector.extract_strided_slice %550 {offsets = [0, 0, 0, 0], sizes = [1, 1, 16, 82], strides = [1, 1, 1, 1]} : vector<2x1x16x82xf32> to vector<1x1x16x82xf32>
    %552 = vector.shape_cast %551 : vector<1x1x16x82xf32> to vector<1x16x82xf32>
    %c39 = arith.constant 39 : index
    %553 = memref.load %arg1[%c39] : memref<98xf32, #tpu.memory_space<smem>>
    %554 = vector.broadcast %553 : f32 to vector<1x16x82xf32>
    %555 = arith.mulf %552, %554 : vector<1x16x82xf32>
    %556 = arith.addf %549, %555 : vector<1x16x82xf32>
    %557 = vector.extract_strided_slice %550 {offsets = [1, 0, 0, 0], sizes = [1, 1, 16, 82], strides = [1, 1, 1, 1]} : vector<2x1x16x82xf32> to vector<1x1x16x82xf32>
    %558 = vector.shape_cast %557 : vector<1x1x16x82xf32> to vector<1x16x82xf32>
    %c88 = arith.constant 88 : index
    %559 = memref.load %arg1[%c88] : memref<98xf32, #tpu.memory_space<smem>>
    %560 = vector.broadcast %559 : f32 to vector<1x16x82xf32>
    %561 = arith.mulf %558, %560 : vector<1x16x82xf32>
    %562 = arith.addf %556, %561 : vector<1x16x82xf32>
    %c0_190 = arith.constant 0 : index
    %c0_191 = arith.constant 0 : index
    %c5_192 = arith.constant 5 : index
    %c5_193 = arith.constant 5 : index
    %563 = vector.load %arg5[%c0_190, %c0_191, %c5_192, %c5_193] : memref<2x1x22x88xf32, #tpu.memory_space<vmem>>, vector<2x1x16x82xf32>
    %564 = vector.extract_strided_slice %563 {offsets = [0, 0, 0, 0], sizes = [1, 1, 16, 82], strides = [1, 1, 1, 1]} : vector<2x1x16x82xf32> to vector<1x1x16x82xf32>
    %565 = vector.shape_cast %564 : vector<1x1x16x82xf32> to vector<1x16x82xf32>
    %c40 = arith.constant 40 : index
    %566 = memref.load %arg1[%c40] : memref<98xf32, #tpu.memory_space<smem>>
    %567 = vector.broadcast %566 : f32 to vector<1x16x82xf32>
    %568 = arith.mulf %565, %567 : vector<1x16x82xf32>
    %569 = arith.addf %562, %568 : vector<1x16x82xf32>
    %570 = vector.extract_strided_slice %563 {offsets = [1, 0, 0, 0], sizes = [1, 1, 16, 82], strides = [1, 1, 1, 1]} : vector<2x1x16x82xf32> to vector<1x1x16x82xf32>
    %571 = vector.shape_cast %570 : vector<1x1x16x82xf32> to vector<1x16x82xf32>
    %c89 = arith.constant 89 : index
    %572 = memref.load %arg1[%c89] : memref<98xf32, #tpu.memory_space<smem>>
    %573 = vector.broadcast %572 : f32 to vector<1x16x82xf32>
    %574 = arith.mulf %571, %573 : vector<1x16x82xf32>
    %575 = arith.addf %569, %574 : vector<1x16x82xf32>
    %c0_194 = arith.constant 0 : index
    %c0_195 = arith.constant 0 : index
    %c5_196 = arith.constant 5 : index
    %c6_197 = arith.constant 6 : index
    %576 = vector.load %arg5[%c0_194, %c0_195, %c5_196, %c6_197] : memref<2x1x22x88xf32, #tpu.memory_space<vmem>>, vector<2x1x16x82xf32>
    %577 = vector.extract_strided_slice %576 {offsets = [0, 0, 0, 0], sizes = [1, 1, 16, 82], strides = [1, 1, 1, 1]} : vector<2x1x16x82xf32> to vector<1x1x16x82xf32>
    %578 = vector.shape_cast %577 : vector<1x1x16x82xf32> to vector<1x16x82xf32>
    %c41 = arith.constant 41 : index
    %579 = memref.load %arg1[%c41] : memref<98xf32, #tpu.memory_space<smem>>
    %580 = vector.broadcast %579 : f32 to vector<1x16x82xf32>
    %581 = arith.mulf %578, %580 : vector<1x16x82xf32>
    %582 = arith.addf %575, %581 : vector<1x16x82xf32>
    %583 = vector.extract_strided_slice %576 {offsets = [1, 0, 0, 0], sizes = [1, 1, 16, 82], strides = [1, 1, 1, 1]} : vector<2x1x16x82xf32> to vector<1x1x16x82xf32>
    %584 = vector.shape_cast %583 : vector<1x1x16x82xf32> to vector<1x16x82xf32>
    %c90 = arith.constant 90 : index
    %585 = memref.load %arg1[%c90] : memref<98xf32, #tpu.memory_space<smem>>
    %586 = vector.broadcast %585 : f32 to vector<1x16x82xf32>
    %587 = arith.mulf %584, %586 : vector<1x16x82xf32>
    %588 = arith.addf %582, %587 : vector<1x16x82xf32>
    %c0_198 = arith.constant 0 : index
    %c0_199 = arith.constant 0 : index
    %c6_200 = arith.constant 6 : index
    %c0_201 = arith.constant 0 : index
    %589 = vector.load %arg5[%c0_198, %c0_199, %c6_200, %c0_201] : memref<2x1x22x88xf32, #tpu.memory_space<vmem>>, vector<2x1x16x82xf32>
    %590 = vector.extract_strided_slice %589 {offsets = [0, 0, 0, 0], sizes = [1, 1, 16, 82], strides = [1, 1, 1, 1]} : vector<2x1x16x82xf32> to vector<1x1x16x82xf32>
    %591 = vector.shape_cast %590 : vector<1x1x16x82xf32> to vector<1x16x82xf32>
    %c42 = arith.constant 42 : index
    %592 = memref.load %arg1[%c42] : memref<98xf32, #tpu.memory_space<smem>>
    %593 = vector.broadcast %592 : f32 to vector<1x16x82xf32>
    %594 = arith.mulf %591, %593 : vector<1x16x82xf32>
    %595 = arith.addf %588, %594 : vector<1x16x82xf32>
    %596 = vector.extract_strided_slice %589 {offsets = [1, 0, 0, 0], sizes = [1, 1, 16, 82], strides = [1, 1, 1, 1]} : vector<2x1x16x82xf32> to vector<1x1x16x82xf32>
    %597 = vector.shape_cast %596 : vector<1x1x16x82xf32> to vector<1x16x82xf32>
    %c91 = arith.constant 91 : index
    %598 = memref.load %arg1[%c91] : memref<98xf32, #tpu.memory_space<smem>>
    %599 = vector.broadcast %598 : f32 to vector<1x16x82xf32>
    %600 = arith.mulf %597, %599 : vector<1x16x82xf32>
    %601 = arith.addf %595, %600 : vector<1x16x82xf32>
    %c0_202 = arith.constant 0 : index
    %c0_203 = arith.constant 0 : index
    %c6_204 = arith.constant 6 : index
    %c1_205 = arith.constant 1 : index
    %602 = vector.load %arg5[%c0_202, %c0_203, %c6_204, %c1_205] : memref<2x1x22x88xf32, #tpu.memory_space<vmem>>, vector<2x1x16x82xf32>
    %603 = vector.extract_strided_slice %602 {offsets = [0, 0, 0, 0], sizes = [1, 1, 16, 82], strides = [1, 1, 1, 1]} : vector<2x1x16x82xf32> to vector<1x1x16x82xf32>
    %604 = vector.shape_cast %603 : vector<1x1x16x82xf32> to vector<1x16x82xf32>
    %c43 = arith.constant 43 : index
    %605 = memref.load %arg1[%c43] : memref<98xf32, #tpu.memory_space<smem>>
    %606 = vector.broadcast %605 : f32 to vector<1x16x82xf32>
    %607 = arith.mulf %604, %606 : vector<1x16x82xf32>
    %608 = arith.addf %601, %607 : vector<1x16x82xf32>
    %609 = vector.extract_strided_slice %602 {offsets = [1, 0, 0, 0], sizes = [1, 1, 16, 82], strides = [1, 1, 1, 1]} : vector<2x1x16x82xf32> to vector<1x1x16x82xf32>
    %610 = vector.shape_cast %609 : vector<1x1x16x82xf32> to vector<1x16x82xf32>
    %c92 = arith.constant 92 : index
    %611 = memref.load %arg1[%c92] : memref<98xf32, #tpu.memory_space<smem>>
    %612 = vector.broadcast %611 : f32 to vector<1x16x82xf32>
    %613 = arith.mulf %610, %612 : vector<1x16x82xf32>
    %614 = arith.addf %608, %613 : vector<1x16x82xf32>
    %c0_206 = arith.constant 0 : index
    %c0_207 = arith.constant 0 : index
    %c6_208 = arith.constant 6 : index
    %c2_209 = arith.constant 2 : index
    %615 = vector.load %arg5[%c0_206, %c0_207, %c6_208, %c2_209] : memref<2x1x22x88xf32, #tpu.memory_space<vmem>>, vector<2x1x16x82xf32>
    %616 = vector.extract_strided_slice %615 {offsets = [0, 0, 0, 0], sizes = [1, 1, 16, 82], strides = [1, 1, 1, 1]} : vector<2x1x16x82xf32> to vector<1x1x16x82xf32>
    %617 = vector.shape_cast %616 : vector<1x1x16x82xf32> to vector<1x16x82xf32>
    %c44 = arith.constant 44 : index
    %618 = memref.load %arg1[%c44] : memref<98xf32, #tpu.memory_space<smem>>
    %619 = vector.broadcast %618 : f32 to vector<1x16x82xf32>
    %620 = arith.mulf %617, %619 : vector<1x16x82xf32>
    %621 = arith.addf %614, %620 : vector<1x16x82xf32>
    %622 = vector.extract_strided_slice %615 {offsets = [1, 0, 0, 0], sizes = [1, 1, 16, 82], strides = [1, 1, 1, 1]} : vector<2x1x16x82xf32> to vector<1x1x16x82xf32>
    %623 = vector.shape_cast %622 : vector<1x1x16x82xf32> to vector<1x16x82xf32>
    %c93 = arith.constant 93 : index
    %624 = memref.load %arg1[%c93] : memref<98xf32, #tpu.memory_space<smem>>
    %625 = vector.broadcast %624 : f32 to vector<1x16x82xf32>
    %626 = arith.mulf %623, %625 : vector<1x16x82xf32>
    %627 = arith.addf %621, %626 : vector<1x16x82xf32>
    %c0_210 = arith.constant 0 : index
    %c0_211 = arith.constant 0 : index
    %c6_212 = arith.constant 6 : index
    %c3_213 = arith.constant 3 : index
    %628 = vector.load %arg5[%c0_210, %c0_211, %c6_212, %c3_213] : memref<2x1x22x88xf32, #tpu.memory_space<vmem>>, vector<2x1x16x82xf32>
    %629 = vector.extract_strided_slice %628 {offsets = [0, 0, 0, 0], sizes = [1, 1, 16, 82], strides = [1, 1, 1, 1]} : vector<2x1x16x82xf32> to vector<1x1x16x82xf32>
    %630 = vector.shape_cast %629 : vector<1x1x16x82xf32> to vector<1x16x82xf32>
    %c45 = arith.constant 45 : index
    %631 = memref.load %arg1[%c45] : memref<98xf32, #tpu.memory_space<smem>>
    %632 = vector.broadcast %631 : f32 to vector<1x16x82xf32>
    %633 = arith.mulf %630, %632 : vector<1x16x82xf32>
    %634 = arith.addf %627, %633 : vector<1x16x82xf32>
    %635 = vector.extract_strided_slice %628 {offsets = [1, 0, 0, 0], sizes = [1, 1, 16, 82], strides = [1, 1, 1, 1]} : vector<2x1x16x82xf32> to vector<1x1x16x82xf32>
    %636 = vector.shape_cast %635 : vector<1x1x16x82xf32> to vector<1x16x82xf32>
    %c94 = arith.constant 94 : index
    %637 = memref.load %arg1[%c94] : memref<98xf32, #tpu.memory_space<smem>>
    %638 = vector.broadcast %637 : f32 to vector<1x16x82xf32>
    %639 = arith.mulf %636, %638 : vector<1x16x82xf32>
    %640 = arith.addf %634, %639 : vector<1x16x82xf32>
    %c0_214 = arith.constant 0 : index
    %c0_215 = arith.constant 0 : index
    %c6_216 = arith.constant 6 : index
    %c4_217 = arith.constant 4 : index
    %641 = vector.load %arg5[%c0_214, %c0_215, %c6_216, %c4_217] : memref<2x1x22x88xf32, #tpu.memory_space<vmem>>, vector<2x1x16x82xf32>
    %642 = vector.extract_strided_slice %641 {offsets = [0, 0, 0, 0], sizes = [1, 1, 16, 82], strides = [1, 1, 1, 1]} : vector<2x1x16x82xf32> to vector<1x1x16x82xf32>
    %643 = vector.shape_cast %642 : vector<1x1x16x82xf32> to vector<1x16x82xf32>
    %c46 = arith.constant 46 : index
    %644 = memref.load %arg1[%c46] : memref<98xf32, #tpu.memory_space<smem>>
    %645 = vector.broadcast %644 : f32 to vector<1x16x82xf32>
    %646 = arith.mulf %643, %645 : vector<1x16x82xf32>
    %647 = arith.addf %640, %646 : vector<1x16x82xf32>
    %648 = vector.extract_strided_slice %641 {offsets = [1, 0, 0, 0], sizes = [1, 1, 16, 82], strides = [1, 1, 1, 1]} : vector<2x1x16x82xf32> to vector<1x1x16x82xf32>
    %649 = vector.shape_cast %648 : vector<1x1x16x82xf32> to vector<1x16x82xf32>
    %c95 = arith.constant 95 : index
    %650 = memref.load %arg1[%c95] : memref<98xf32, #tpu.memory_space<smem>>
    %651 = vector.broadcast %650 : f32 to vector<1x16x82xf32>
    %652 = arith.mulf %649, %651 : vector<1x16x82xf32>
    %653 = arith.addf %647, %652 : vector<1x16x82xf32>
    %c0_218 = arith.constant 0 : index
    %c0_219 = arith.constant 0 : index
    %c6_220 = arith.constant 6 : index
    %c5_221 = arith.constant 5 : index
    %654 = vector.load %arg5[%c0_218, %c0_219, %c6_220, %c5_221] : memref<2x1x22x88xf32, #tpu.memory_space<vmem>>, vector<2x1x16x82xf32>
    %655 = vector.extract_strided_slice %654 {offsets = [0, 0, 0, 0], sizes = [1, 1, 16, 82], strides = [1, 1, 1, 1]} : vector<2x1x16x82xf32> to vector<1x1x16x82xf32>
    %656 = vector.shape_cast %655 : vector<1x1x16x82xf32> to vector<1x16x82xf32>
    %c47 = arith.constant 47 : index
    %657 = memref.load %arg1[%c47] : memref<98xf32, #tpu.memory_space<smem>>
    %658 = vector.broadcast %657 : f32 to vector<1x16x82xf32>
    %659 = arith.mulf %656, %658 : vector<1x16x82xf32>
    %660 = arith.addf %653, %659 : vector<1x16x82xf32>
    %661 = vector.extract_strided_slice %654 {offsets = [1, 0, 0, 0], sizes = [1, 1, 16, 82], strides = [1, 1, 1, 1]} : vector<2x1x16x82xf32> to vector<1x1x16x82xf32>
    %662 = vector.shape_cast %661 : vector<1x1x16x82xf32> to vector<1x16x82xf32>
    %c96 = arith.constant 96 : index
    %663 = memref.load %arg1[%c96] : memref<98xf32, #tpu.memory_space<smem>>
    %664 = vector.broadcast %663 : f32 to vector<1x16x82xf32>
    %665 = arith.mulf %662, %664 : vector<1x16x82xf32>
    %666 = arith.addf %660, %665 : vector<1x16x82xf32>
    %c0_222 = arith.constant 0 : index
    %c0_223 = arith.constant 0 : index
    %c6_224 = arith.constant 6 : index
    %c6_225 = arith.constant 6 : index
    %667 = vector.load %arg5[%c0_222, %c0_223, %c6_224, %c6_225] : memref<2x1x22x88xf32, #tpu.memory_space<vmem>>, vector<2x1x16x82xf32>
    %668 = vector.extract_strided_slice %667 {offsets = [0, 0, 0, 0], sizes = [1, 1, 16, 82], strides = [1, 1, 1, 1]} : vector<2x1x16x82xf32> to vector<1x1x16x82xf32>
    %669 = vector.shape_cast %668 : vector<1x1x16x82xf32> to vector<1x16x82xf32>
    %c48 = arith.constant 48 : index
    %670 = memref.load %arg1[%c48] : memref<98xf32, #tpu.memory_space<smem>>
    %671 = vector.broadcast %670 : f32 to vector<1x16x82xf32>
    %672 = arith.mulf %669, %671 : vector<1x16x82xf32>
    %673 = arith.addf %666, %672 : vector<1x16x82xf32>
    %674 = vector.extract_strided_slice %667 {offsets = [1, 0, 0, 0], sizes = [1, 1, 16, 82], strides = [1, 1, 1, 1]} : vector<2x1x16x82xf32> to vector<1x1x16x82xf32>
    %675 = vector.shape_cast %674 : vector<1x1x16x82xf32> to vector<1x16x82xf32>
    %c97 = arith.constant 97 : index
    %676 = memref.load %arg1[%c97] : memref<98xf32, #tpu.memory_space<smem>>
    %677 = vector.broadcast %676 : f32 to vector<1x16x82xf32>
    %678 = arith.mulf %675, %677 : vector<1x16x82xf32>
    %679 = arith.addf %673, %678 : vector<1x16x82xf32>
    %c0_226 = arith.constant 0 : index
    %680 = memref.load %arg2[%c0_226] : memref<1xf32, #tpu.memory_space<smem>>
    %681 = vector.broadcast %680 : f32 to vector<1x16x82xf32>
    %682 = arith.addf %679, %681 : vector<1x16x82xf32>
    %683 = arith.negf %682 : vector<1x16x82xf32>
    %684 = math.exp %683 : vector<1x16x82xf32>
    %cst_227 = arith.constant 1.000000e+00 : f32
    %685 = vector.broadcast %cst_227 : f32 to vector<1x16x82xf32>
    %686 = arith.addf %685, %684 : vector<1x16x82xf32>
    %687 = arith.divf %685, %686 : vector<1x16x82xf32>
    %688 = vector.extract_strided_slice %687 {offsets = [0, 0, 0], sizes = [1, 16, 16], strides = [1, 1, 1]} : vector<1x16x82xf32> to vector<1x16x16xf32>
    %689 = vector.extract_strided_slice %687 {offsets = [0, 0, 22], sizes = [1, 16, 16], strides = [1, 1, 1]} : vector<1x16x82xf32> to vector<1x16x16xf32>
    %690 = vector.extract_strided_slice %687 {offsets = [0, 0, 44], sizes = [1, 16, 16], strides = [1, 1, 1]} : vector<1x16x82xf32> to vector<1x16x16xf32>
    %691 = vector.extract_strided_slice %687 {offsets = [0, 0, 66], sizes = [1, 16, 16], strides = [1, 1, 1]} : vector<1x16x82xf32> to vector<1x16x16xf32>
    %692 = vector.shape_cast %688 : vector<1x16x16xf32> to vector<1x1x16x16xf32>
    %693 = vector.shape_cast %689 : vector<1x16x16xf32> to vector<1x1x16x16xf32>
    %694 = vector.shape_cast %690 : vector<1x16x16xf32> to vector<1x1x16x16xf32>
    %695 = vector.shape_cast %691 : vector<1x16x16xf32> to vector<1x1x16x16xf32>
    %696 = tpu.concatenate %692, %693, %694, %695 in 1 : vector<1x1x16x16xf32>, vector<1x1x16x16xf32>, vector<1x1x16x16xf32>, vector<1x1x16x16xf32> -> vector<1x4x16x16xf32>
    %697 = vector.shape_cast %696 : vector<1x4x16x16xf32> to vector<4x16x16xf32>
    %c0_228 = arith.constant 0 : index
    %c0_229 = arith.constant 0 : index
    %c0_230 = arith.constant 0 : index
    %c0_231 = arith.constant 0 : index
    %698 = vector.load %arg3[%c0_228, %c0_229, %c0_230, %c0_231] : memref<4x4x16x16xf32, #tpu.memory_space<vmem>>, vector<4x1x16x16xf32>
    %699 = vector.shape_cast %698 : vector<4x1x16x16xf32> to vector<4x16x16xf32>
    %700 = arith.mulf %699, %697 : vector<4x16x16xf32>
    %c0_232 = arith.constant 0 : index
    %c0_233 = arith.constant 0 : index
    %c0_234 = arith.constant 0 : index
    %c0_235 = arith.constant 0 : index
    %701 = vector.load %arg4[%c0_232, %c0_233, %c0_234, %c0_235] : memref<4x4x16x16xf32, #tpu.memory_space<vmem>>, vector<4x1x16x16xf32>
    %702 = vector.shape_cast %701 : vector<4x1x16x16xf32> to vector<4x16x16xf32>
    %703 = vector.shape_cast %700 : vector<4x16x16xf32> to vector<4x1x16x16xf32>
    tpu.vector_store %arg4[%c0_232, %c0_233, %c0_234, %c0_235], %703 {strides = array<i32>} : memref<4x4x16x16xf32, #tpu.memory_space<vmem>>, vector<4x1x16x16xf32>,
    %c0_236 = arith.constant 0 : index
    %c1_237 = arith.constant 1 : index
    %c0_238 = arith.constant 0 : index
    %c0_239 = arith.constant 0 : index
    %704 = vector.load %arg3[%c0_236, %c1_237, %c0_238, %c0_239] : memref<4x4x16x16xf32, #tpu.memory_space<vmem>>, vector<4x1x16x16xf32>
    %705 = vector.shape_cast %704 : vector<4x1x16x16xf32> to vector<4x16x16xf32>
    %706 = arith.mulf %705, %697 : vector<4x16x16xf32>
    %c0_240 = arith.constant 0 : index
    %c1_241 = arith.constant 1 : index
    %c0_242 = arith.constant 0 : index
    %c0_243 = arith.constant 0 : index
    %707 = vector.load %arg4[%c0_240, %c1_241, %c0_242, %c0_243] : memref<4x4x16x16xf32, #tpu.memory_space<vmem>>, vector<4x1x16x16xf32>
    %708 = vector.shape_cast %707 : vector<4x1x16x16xf32> to vector<4x16x16xf32>
    %709 = vector.shape_cast %706 : vector<4x16x16xf32> to vector<4x1x16x16xf32>
    tpu.vector_store %arg4[%c0_240, %c1_241, %c0_242, %c0_243], %709 {strides = array<i32>} : memref<4x4x16x16xf32, #tpu.memory_space<vmem>>, vector<4x1x16x16xf32>,
    %c0_244 = arith.constant 0 : index
    %c2_245 = arith.constant 2 : index
    %c0_246 = arith.constant 0 : index
    %c0_247 = arith.constant 0 : index
    %710 = vector.load %arg3[%c0_244, %c2_245, %c0_246, %c0_247] : memref<4x4x16x16xf32, #tpu.memory_space<vmem>>, vector<4x1x16x16xf32>
    %711 = vector.shape_cast %710 : vector<4x1x16x16xf32> to vector<4x16x16xf32>
    %712 = arith.mulf %711, %697 : vector<4x16x16xf32>
    %c0_248 = arith.constant 0 : index
    %c2_249 = arith.constant 2 : index
    %c0_250 = arith.constant 0 : index
    %c0_251 = arith.constant 0 : index
    %713 = vector.load %arg4[%c0_248, %c2_249, %c0_250, %c0_251] : memref<4x4x16x16xf32, #tpu.memory_space<vmem>>, vector<4x1x16x16xf32>
    %714 = vector.shape_cast %713 : vector<4x1x16x16xf32> to vector<4x16x16xf32>
    %715 = vector.shape_cast %712 : vector<4x16x16xf32> to vector<4x1x16x16xf32>
    tpu.vector_store %arg4[%c0_248, %c2_249, %c0_250, %c0_251], %715 {strides = array<i32>} : memref<4x4x16x16xf32, #tpu.memory_space<vmem>>, vector<4x1x16x16xf32>,
    %c0_252 = arith.constant 0 : index
    %c3_253 = arith.constant 3 : index
    %c0_254 = arith.constant 0 : index
    %c0_255 = arith.constant 0 : index
    %716 = vector.load %arg3[%c0_252, %c3_253, %c0_254, %c0_255] : memref<4x4x16x16xf32, #tpu.memory_space<vmem>>, vector<4x1x16x16xf32>
    %717 = vector.shape_cast %716 : vector<4x1x16x16xf32> to vector<4x16x16xf32>
    %718 = arith.mulf %717, %697 : vector<4x16x16xf32>
    %c0_256 = arith.constant 0 : index
    %c3_257 = arith.constant 3 : index
    %c0_258 = arith.constant 0 : index
    %c0_259 = arith.constant 0 : index
    %719 = vector.load %arg4[%c0_256, %c3_257, %c0_258, %c0_259] : memref<4x4x16x16xf32, #tpu.memory_space<vmem>>, vector<4x1x16x16xf32>
    %720 = vector.shape_cast %719 : vector<4x1x16x16xf32> to vector<4x16x16xf32>
    %721 = vector.shape_cast %718 : vector<4x16x16xf32> to vector<4x1x16x16xf32>
    tpu.vector_store %arg4[%c0_256, %c3_257, %c0_258, %c0_259], %721 {strides = array<i32>} : memref<4x4x16x16xf32, #tpu.memory_space<vmem>>, vector<4x1x16x16xf32>,
    return
  }
  func.func @transform_0(%arg0: i32) -> i32 {
    %c0_i32 = arith.constant 0 : i32
    %c0_i32_0 = arith.constant 0 : i32
    return %c0_i32 : i32
  }
  func.func @transform_1(%arg0: i32) -> i32 {
    %c0_i32 = arith.constant 0 : i32
    %c0_i32_0 = arith.constant 0 : i32
    return %c0_i32 : i32
  }
  func.func @transform_2(%arg0: i32) -> (i32, i32, i32, i32) {
    %c0_i32 = arith.constant 0 : i32
    %c0_i32_0 = arith.constant 0 : i32
    %c0_i32_1 = arith.constant 0 : i32
    %c0_i32_2 = arith.constant 0 : i32
    return %arg0, %c0_i32, %c0_i32_0, %c0_i32_1 : i32, i32, i32, i32
  }
  func.func @transform_3(%arg0: i32) -> (i32, i32, i32, i32) {
    %c0_i32 = arith.constant 0 : i32
    %c0_i32_0 = arith.constant 0 : i32
    %c0_i32_1 = arith.constant 0 : i32
    %c0_i32_2 = arith.constant 0 : i32
    return %arg0, %c0_i32, %c0_i32_0, %c0_i32_1 : i32, i32, i32, i32
  }
}

</mosaic_0001>

<bundles_post_ra>
// kernel: tpu_custom_call.1
= control target key start
LH: loop header
LB: loop body
LE: loop exit
PB: predicated region body
PF: predicated region fallthrough
CT: control target
= control target key end

     0   :  { %s3272_s0 = inlined_call_operand.vmem [shape: f32[98], index: 0, kind: input, shape index: {}]   ;;  %s3273_s1 = inlined_call_operand.<no memory space> [shape: f32[1], index: 1, kind: input, shape index: {}]   ;;  %s3274_s2 = inlined_call_operand.hbm [shape: f32[8,4,16,16], index: 2, kind: input, shape index: {}]   ;;  %s3275_s3 = inlined_call_operand.hbm [shape: f32[8,4,16,16], index: 3, kind: output, shape index: {}]  }
   0x1   :  { %8 = sst [smem:[#allocation3]] %s3273_s1 }
   0x2   :  { %9 = vsyncpa [#allocation7], 0 }
   0x3   :  { %10 = vsyncpa [#allocation5], 0 }
   0x4   :  { %12 = vsyncpa [#allocation5 + $0x1], 0 }
   0x5   :  { %13 = vsyncpa [#allocation6], 0 }
   0x6   :  { %15 = vsyncpa [#allocation6 + $0x1], 0  ;;  %s2376_s14 = smov 0   ;;  %s2378_s15 = smov 0  }
   0x7   :  { %s2380_s16 = smov 0   ;;  %s2382_s17 = smov 0  }
   0x8 LB: > { %s2397_s1 = sadd.s32 4294967295, %s2330_s17   ;;  %s1943_s18 = sadd.s32 4294967294, %s2330_s17   ;;  %s2330_s17 = sphi %s2382_s17, %s3297_s17   ;;  %s2326_s16 = sphi %s2380_s16, %s3296_s16   ;;  %s2322_s15 = sphi %s2378_s15, %s3295_s15   ;;  %s2318_s14 = sphi %s2376_s14, %s3294_s14  }
   0x9   : > { %s2401_s19 = sadd.s32 1, %s2330_s17   ;;  %s70_s20 = sadd.s32 1, %s2326_s16 }
   0xa   : > { %s67_s21 = ssub.s32 %s2330_s17, %s2401_s19  ;;  %p77_p0 = scmp.ne.s32.totalorder %s2326_s16, %s2322_s15 }
   0xb   : > { %p68_p1 = scmp.eq.s32.totalorder %s67_s21, 0  ;;  %p78_p2 = scmp.eq.s32.totalorder %s2330_s17, 0 }
   0xc   : > { %p83_p3 = scmp.ne.s32.totalorder %s2322_s15, %s2318_s14  ;;  %p3277_p4 = scmp.eq.s32.totalorder %s2397_s1, 0 }
   0xd   : > { %s2413_s22 = scalar_select %p68_p1, %s2326_s16, %s70_s20  }
   0xe   : > { %p2415_p5 = por %p78_p2, %p77_p0  ;;  %p2421_p6 = por %p3277_p4, %p83_p3 }
   0xf   : > { %p107_p7 = scmp.eq.s32.totalorder %s2397_s1, 1  ;;  %p113_p8 = scmp.eq.s32.totalorder %s1943_s18, 1 }
  0x10   : > { %s3281_s24 = scalar_select %p2421_p6, 1, 0 }
  0x11   : > { %p1944_p9 = scmp.ge.s32.totalorder %s2330_s17, 1  ;;  %p120_p10 = scmp.lt.s32.totalorder %s2330_s17, 3 }
  0x12   : > { %p2428_p11 = por %p107_p7, %p77_p0  ;;  %p2432_p12 = por %p113_p8, %p83_p3 }
  0x13   : > { %p2436_p13 = pnand %p1944_p9, %p120_p10  ;;  %s133_s30 = sshll.u32 %s3272_s0, 4  ;;  %s134_s30 = int_to_ptr.vmem [resolvable:$true] %s133_s30 }
  0x14   : > { %s3282_s25 = scalar_select %p2428_p11, 1, 0 }
  0x15   : > { %s3283_s26 = scalar_select %p2432_p12, 1, 0 }
  0x16   : > { %s3284_s27 = scalar_select %p2436_p13, 1, 0 }
  0x17   : > { %p2144_p1 = pneg %p2436_p13  ;;  %p2157_p2 = scmp.lt.s32.totalorder %s2330_s17, 2 }
  0x18   : > { %s147_s5 = sand.u32 1, %s2326_s16   ;;  %s2219_s8 = scalar_lea.vmem %s134_s30, 16 }
  0x19   : > { %p2449_p7 = pnand %p2144_p1, %p3277_p4  ;;  %p2456_p3 = pnand %p2157_p2, %p2415_p5 }
  0x1a   : > { %s1947_s7 = sshll.u32 %s147_s5, 8  ;;  %p2220_p8 = scmp.ne.s32.totalorder %s134_s30, %s2219_s8 }
  0x1b   : > { %p2221_p9 = pneg %p2449_p7  ;;  %p2227_p12 = scmp.lt.s32.totalorder %s134_s30, %s134_s30 }
  0x1c   : > { %p2228_p11 = scmp.lt.s32.totalorder %s2219_s8, %s2219_s8 }
  0x1d   : > { %p2222_p10 = pnand %p2221_p9, %p2220_p8 }
  0x1e   : > { %p2229_p1 = por %p2228_p11, %p2227_p12 }
  0x1f   : > { %p2223_p0 = pneg %p2222_p10 }
  0x21   : > { %p2230_p4 = pnand %p2229_p1, %p2223_p0 }
  0x23   : > { %2233 = shalt.err (!%p2230_p4)
}
  0x24   : > { %s2332_s9 = smov [#allocation4]   ;;  %s2133_s10 = sshll.u32 %s2330_s17, 12 }
  0x25   : > { %2147 = dma.vmem_to_smem (!%p2449_p7), %s134_s30, 16, %s2332_s9, [#allocation7]  }
  0x26   : > { %s151_s11 = scalar_lea.vmem [#allocation8], %s1947_s7  ;;  %s2468_s20 = scalar_lea.hbm %s3274_s2, %s2133_s10 }
  0x27   : > { %s159_s12 = sshll.u32 %s151_s11, 4  ;;  %s2472_s21 = scalar_lea.sflag [#allocation5], %s147_s5  ;;  %s2470_s12 = int_to_ptr.vmem [resolvable:$true] %s159_s12 }
  0x28   : > { %s2234_s23 = scalar_lea.hbm %s2468_s20, 4096  ;;  %p2236_p5 = pneg %p2456_p3 }
  0x29   : > { %p2235_p4 = scmp.ne.s32.totalorder %s2468_s20, %s2234_s23  ;;  %s2239_s30 = scalar_lea.hbm %s3274_s2, 8192 }
  0x2a   : > { %p2240_p0 = scmp.lt.s32.totalorder %s2468_s20, %s3274_s2  ;;  %p2241_p2 = scmp.lt.s32.totalorder %s2239_s30, %s2234_s23 }
  0x2b   : > { %p2237_p11 = pnand %p2236_p5, %p2235_p4 }
  0x2c   : > { %p2242_p7 = por %p2241_p2, %p2240_p0 }
  0x2d   : > { %p2238_p12 = pneg %p2237_p11 }
  0x2f   : > { %p2243_p8 = pnand %p2242_p7, %p2238_p12 }
  0x31   : > { %2246 = shalt.err (!%p2243_p8)
}
  0x32   : > { %s2247_s5 = scalar_lea.vmem %s2470_s12, 4096  ;;  %s2333_s8 = smov [#allocation8]  }
  0x33   : > { %p2248_p9 = scmp.ne.s32.totalorder %s2470_s12, %s2247_s5  ;;  %s2252_s9 = sshll.u32 %s2333_s8, 4  ;;  %s2253_s9 = int_to_ptr.vmem [resolvable:$false] %s2252_s9 }
  0x34   : > { %s2254_s10 = scalar_lea.vmem %s2253_s9, 8192  ;;  %p2255_p4 = scmp.lt.s32.totalorder %s2470_s12, %s2253_s9 }
  0x35   : > { %p2250_p10 = pnand %p2248_p9, %p2236_p5  ;;  %p2256_p11 = scmp.lt.s32.totalorder %s2254_s10, %s2247_s5 }
  0x37   : > { %p2251_p1 = pneg %p2250_p10  ;;  %p2257_p6 = por %p2256_p11, %p2255_p4 }
  0x39   : > { %p2258_p13 = pnand %p2257_p6, %p2251_p1 }
  0x3b   : > { %2261 = shalt.err (!%p2258_p13)
}
  0x3c   : > { %s2334_s11 = smov 128   ;;  %s2335_s13 = smov 8  }
  0x3d   : > { %2151 = dma.hbm_to_vmem [thread:$0]  (!%p2456_p3), %s2468_s20, 4096, %s2470_s12, %s2472_s21, %s2334_s11, %s2334_s11, %s2335_s13  }
  0x3e   : > { %p3287_p5 = scmp.ne.s32.totalorder %s3284_s27, 0 }
  0x3f   : > { %p3288_p12 = scmp.eq.s32.totalorder (!%p3287_p5), %s2397_s1, 0 }
  0x40   : > { %171 = sbr.rel (%p3287_p5) target bundleno = 859 (0x35b), region = 32 }
  0x45   : > { %2305 = dma.done.wait (%p3288_p12), [#allocation7], 16   ;;  %p3289_p0 = pmov %p3288_p12 }
  0x46   : > { %s2500_s18 = sand.u32 1, %s2322_s15   ;;  %p3290_p6 = scmp.ne.s32.totalorder %s3281_s24, 0 }
  0x47   : > { %2307 = vsyncadd (%p3289_p0), [#allocation7], 4294967280  ;;  %s1953_s23 = sshll.u32 %s2500_s18, 8  ;;  %s178_s28 = scalar_lea.sflag [#allocation5], %s2500_s18 }
  0x48   : > { %s2506_s6 = scalar_lea.vmem [#allocation8], %s1953_s23 }
  0x49   : > { %2309 = dma.done.wait (%p3290_p6), %s178_s28, 4096  }
  0x4a   : > { %2311 = vsyncadd (%p3290_p6), %s178_s28, 4294963200 }
  0x4b   : > { %186 = sfence }
  0x4c   : > { %v207_v0 = vld [vmem:[%s2506_s6] sm:$0xff]  ;;  %v1955_v1 = vld [vmem:[%s2506_s6 + $0x10] sm:$0xff]  ;;  %v208_v5 = vld [vmem:[%s2506_s6 + $0x8] sm:$0xff]  ;;  %s2336_s24 = smov 3   ;;  %s2337_s27 = smov 25   ;;  %vm409_vm0 = vcmask 714752  }
  0x4d   : > { %v1963_v2 = vld [vmem:[%s2506_s6 + $0x20] sm:$0xff]  ;;  %v232_v3 = vadd.f32 %v1955_v1, %v207_v0  ;;  %v224_v4 = vmax.f32 %v207_v0, %v1955_v1  ;;  %v1956_v6 = vld [vmem:[%s2506_s6 + $0x18] sm:$0xff]  ;;  %v1971_v7 = vld [vmem:[%s2506_s6 + $0x30] sm:$0xff]  ;;  %s2339_s12 = smov 47   ;;  %s2340_s20 = smov 69   ;;  %vm322_vm1 = vcmask 23552  }
  0x4e   : > { %v233_v8 = vadd.f32 %v1956_v6, %v208_v5  ;;  %v1964_v9 = vld [vmem:[%s2506_s6 + $0x28] sm:$0xff]  ;;  %v225_v10 = vmax.f32 %v208_v5, %v1956_v6  ;;  %v1972_v14 = vld [vmem:[%s2506_s6 + $0x38] sm:$0xff]  ;;  %v209_v20 = vld [vmem:[%s2506_s6 + $0x40] sm:$0xff]  ;;  %vm325_vm2 = vcmask 154624   ;;  %vm328_vm3 = vcmask 179200   ;;  %s1980_s21 = sld [smem:[#allocation4 + $0x1]] }
  0x4f   : > { %v210_v11 = vld [vmem:[%s2506_s6 + $0x48] sm:$0xff]  ;;  %v257_v12 = vadd.f32 %v1963_v2, %v232_v3  ;;  %v249_v13 = vmax.f32 %v224_v4, %v1963_v2  ;;  %v1958_v15 = vld [vmem:[%s2506_s6 + $0x58] sm:$0xff]  ;;  %v1957_v21 = vld [vmem:[%s2506_s6 + $0x50] sm:$0xff]  ;;  %v2338_v2 = vmov 0.0   ;;  %vm331_vm4 = vcmask 203776   ;;  %s2577_s29 = sld [smem:[#allocation4]] }
  0x50   : > { %v1966_v16 = vld [vmem:[%s2506_s6 + $0x68] sm:$0xff]  ;;  %v258_v17 = vadd.f32 %v1964_v9, %v233_v8  ;;  %v250_v18 = vmax.f32 %v225_v10, %v1964_v9  ;;  %v227_v19 = vmax.f32 %v210_v11, %v1958_v15  ;;  %v1965_v22 = vld [vmem:[%s2506_s6 + $0x60] sm:$0xff]  ;;  %v226_v25 = vmax.f32 %v209_v20, %v1957_v21  ;;  %v1974_v27 = vld [vmem:[%s2506_s6 + $0x78] sm:$0xff]  ;;  %410 = vst.msk [vmem:[#allocation2] sm:$0x7] %vm409_vm0, %v2338_v2  ;;  %s1979_s30 = sld [smem:[#allocation4 + $0x31]] }
  0x51   : > { %v282_v23 = vadd.f32 %v1971_v7, %v257_v12  ;;  %v274_v24 = vmax.f32 %v249_v13, %v1971_v7  ;;  %v235_v28 = vadd.f32 %v1958_v15, %v210_v11  ;;  %v234_v29 = vadd.f32 %v1957_v21, %v209_v20  ;;  %v212_v33 = vld [vmem:[%s2506_s6 + $0x88] sm:$0xff]  ;;  %v1960_v34 = vld [vmem:[%s2506_s6 + $0x98] sm:$0xff]  ;;  %v1973_v35 = vld [vmem:[%s2506_s6 + $0x70] sm:$0xff]  ;;  %411 = vst.msk [vmem:[#allocation2 + $0x18] sm:$0x7] %vm409_vm0, %v2338_v2  ;;  %s1981_s4 = sld [smem:[#allocation4 + $0x32]] }
  0x52   : > { %v283_v26 = vadd.f32 %v1972_v14, %v258_v17  ;;  %v275_v30 = vmax.f32 %v250_v18, %v1972_v14  ;;  %v252_v31 = vmax.f32 %v227_v19, %v1966_v16  ;;  %v251_v32 = vmax.f32 %v226_v25, %v1965_v22  ;;  %v211_v36 = vld [vmem:[%s2506_s6 + $0x80] sm:$0xff]  ;;  %v1959_v37 = vld [vmem:[%s2506_s6 + $0x90] sm:$0xff]  ;;  %v1968_v43 = vld [vmem:[%s2506_s6 + $0xa8] sm:$0xff]  ;;  %417 = vst.msk [vmem:[#allocation2 + $0x13] sm:$0x7] %vm409_vm0, %v2338_v2  ;;  %s1982_s7 = sld [smem:[#allocation4 + $0x2]] }
  0x53   : > { %357 = vrot.lane.b32.xlu1 %v282_v23, %s2336_s24  ;;  %292 = vrot.lane.b32.xlu0 %v274_v24, %s2336_s24  ;;  %v260_v38 = vadd.f32 %v1966_v16, %v235_v28  ;;  %v259_v39 = vadd.f32 %v1965_v22, %v234_v29  ;;  %v229_v40 = vmax.f32 %v212_v33, %v1960_v34  ;;  %v1967_v45 = vld [vmem:[%s2506_s6 + $0xa0] sm:$0xff]  ;;  %v1976_v47 = vld [vmem:[%s2506_s6 + $0xb8] sm:$0xff]  ;;  %vm334_vm5 = vcmask 334848   ;;  %s1983_s5 = sld [smem:[#allocation4 + $0x33]]  ;;  %s2341_s8 = smov 127  }
  0x54   : > { %v277_v41 = vmax.f32 %v252_v31, %v1974_v27  ;;  %v276_v42 = vmax.f32 %v251_v32, %v1973_v35  ;;  %v228_v44 = vmax.f32 %v211_v36, %v1959_v37  ;;  %v237_v48 = vadd.f32 %v1960_v34, %v212_v33  ;;  %v214_v53 = vld [vmem:[%s2506_s6 + $0xc8] sm:$0xff]  ;;  %v1962_v54 = vld [vmem:[%s2506_s6 + $0xd8] sm:$0xff]  ;;  %v1975_v55 = vld [vmem:[%s2506_s6 + $0xb0] sm:$0xff]  ;;  %418 = vst.msk [vmem:[#allocation2 + $0x2b] sm:$0x7] %vm409_vm0, %v2338_v2  ;;  %s1984_s9 = sld [smem:[#allocation4 + $0x3]] }
  0x55   : > { %v254_v46 = vmax.f32 %v229_v40, %v1968_v43  ;;  %v236_v49 = vadd.f32 %v1959_v37, %v211_v36  ;;  %v285_v50 = vadd.f32 %v1974_v27, %v260_v38  ;;  %v284_v51 = vadd.f32 %v1973_v35, %v259_v39  ;;  %v213_v56 = vld [vmem:[%s2506_s6 + $0xc0] sm:$0xff]  ;;  %v1961_v57 = vld [vmem:[%s2506_s6 + $0xd0] sm:$0xff]  ;;  %v1970_v63 = vld [vmem:[%s2506_s6 + $0xe8] sm:$0xff]  ;;  %s1985_s10 = sld [smem:[#allocation4 + $0x34]]  ;;  %s2342_s11 = smov 126  }
  0x56   : > { %v253_v52 = vmax.f32 %v228_v44, %v1967_v45  ;;  %v262_v59 = vadd.f32 %v1968_v43, %v237_v48  ;;  %v231_v61 = vmax.f32 %v214_v53, %v1962_v54  ;;  %v230_v0 = vmax.f32 %v213_v56, %v1961_v57  ;;  %v1969_v1 = vld [vmem:[%s2506_s6 + $0xe0] sm:$0xff]  ;;  %v1978_v9 = vld [vmem:[%s2506_s6 + $0xf8] sm:$0xff]  ;;  %v1977_v10 = vld [vmem:[%s2506_s6 + $0xf0] sm:$0xff]  ;;  %s1986_s13 = sld [smem:[#allocation4 + $0x4]]  ;;  %p3291_p3 = scmp.ne.s32.totalorder %s3282_s25, 0 }
  0x57   : > { %359 = vrot.lane.b32.xlu1 %v283_v26, %s2336_s24  ;;  %294 = vrot.lane.b32.xlu0 %v275_v30, %s2336_s24  ;;  %v279_v58 = vmax.f32 %v254_v46, %v1976_v47  ;;  %v261_v60 = vadd.f32 %v1967_v45, %v236_v49  ;;  %v239_v5 = vadd.f32 %v1962_v54, %v214_v53  ;;  %vm337_vm6 = vcmask 359424   ;;  %s1987_s28 = sld [smem:[#allocation4 + $0x35]]  ;;  %s2343_s24 = smov 125  }
  0x58   : > { %v278_v62 = vmax.f32 %v253_v52, %v1975_v55  ;;  %v287_v3 = vadd.f32 %v1976_v47, %v262_v59  ;;  %v256_v4 = vmax.f32 %v231_v61, %v1970_v63  ;;  %v255_v7 = vmax.f32 %v230_v0, %v1969_v1 }
  0x59   : > { %v286_v6 = vadd.f32 %v1975_v55, %v261_v60  ;;  %v238_v8 = vadd.f32 %v1961_v57, %v213_v56  ;;  %v264_v11 = vadd.f32 %v1970_v63, %v239_v5  ;;  %vm340_vm7 = vcmask 384000  }
  0x5a   : > { %v281_v12 = vmax.f32 %v256_v4, %v1978_v9  ;;  %v280_v13 = vmax.f32 %v255_v7, %v1977_v10  ;;  %vm343_vm8 = vcmask 515072   ;;  %vm346_vm9 = vcmask 539648  }
  0x5b   : > { %302 = vrot.lane.b32.xlu1 %v277_v41, %s2337_s27  ;;  %300 = vrot.lane.b32.xlu0 %v276_v42, %s2337_s27  ;;  %v263_v14 = vadd.f32 %v1969_v1, %v238_v8  ;;  %v289_v15 = vadd.f32 %v1978_v9, %v264_v11  ;;  %vm349_vm10 = vcmask 564224   ;;  %vm352_vm11 = vcmask 695296  }
  0x5c   : > { %vm412_vm12 = vcmask 719872   ;;  %vm1759_vm13 = vcmask 130048  }
  0x5d   : > { %v288_v16 = vadd.f32 %v1977_v10, %v263_v14 }
  0x5f   : > { %367 = vrot.lane.b32.xlu1 %v285_v50, %s2337_s27  ;;  %365 = vrot.lane.b32.xlu0 %v284_v51, %s2337_s27  ;;  %s1988_s27 = sld [smem:[#allocation4 + $0x5]] }
  0x63   : > { %310 = vrot.lane.b32.xlu1 %v279_v58, %s2339_s12  ;;  %308 = vrot.lane.b32.xlu0 %v278_v62, %s2339_s12 }
  0x67   : > { %375 = vrot.lane.b32.xlu1 %v287_v3, %s2339_s12  ;;  %373 = vrot.lane.b32.xlu0 %v286_v6, %s2339_s12  ;;  %s1989_s12 = sld [smem:[#allocation4 + $0x36]] }
  0x6b   : > { %318 = vrot.lane.b32.xlu1 %v281_v12, %s2340_s20  ;;  %316 = vrot.lane.b32.xlu0 %v280_v13, %s2340_s20  ;;  %v436_v13 = vstv %s1980_s21  ;;  %s1990_s21 = sld [smem:[#allocation4 + $0x6]] }
  0x6f   : > { %383 = vrot.lane.b32.xlu1 %v289_v15, %s2340_s20  ;;  %381 = vrot.lane.b32.xlu0 %v288_v16, %s2340_s20  ;;  %v424_v16 = vstv %s2577_s29  ;;  %s2344_s20 = smov 124   ;;  %s1991_s29 = sld [smem:[#allocation4 + $0x37]] }
  0xc5   : > { %v358_v17 = vpop.permute.xlu1 %357  ;;  %v293_v18 = vpop.permute.xlu0 %292 }
  0xc6   : > { %v323_v19 = vsel %vm322_vm1, 0.0, %v293_v18  ;;  %v387_v25 = vsel %vm322_vm1, 0.0, %v358_v17  ;;  %v430_v18 = vstv %s1979_s30  ;;  %s2345_s30 = smov 123  }
  0xc7   : > { %v326_v24 = vsel %vm325_vm2, %v323_v19, 0.0  ;;  %v389_v31 = vsel %vm325_vm2, %v387_v25, 0.0 }
  0xc8   : > { %v329_v30 = vsel %vm328_vm3, %v326_v24, 0.0  ;;  %v391_v37 = vsel %vm328_vm3, %v389_v31, 0.0 }
  0xc9   : > { %v360_v20 = vpop.permute.xlu1 %359  ;;  %v295_v21 = vpop.permute.xlu0 %294 }
  0xca   : > { %v324_v22 = vsel %vm322_vm1, 0.0, %v295_v21  ;;  %v388_v26 = vsel %vm322_vm1, 0.0, %v360_v20  ;;  %v450_v20 = vstv %s1981_s4  ;;  %s1994_s4 = sld [smem:[#allocation4 + $0x8]] }
  0xcb   : > { %v327_v23 = vsel %vm325_vm2, %v324_v22, 0.0  ;;  %v390_v32 = vsel %vm325_vm2, %v388_v26, 0.0 }
  0xcc   : > { %v330_v27 = vsel %vm328_vm3, %v327_v23, 0.0  ;;  %v392_v38 = vsel %vm328_vm3, %v390_v32, 0.0 }
  0xcd   : > { %v303_v28 = vpop.permute.xlu1 %302  ;;  %v301_v29 = vpop.permute.xlu0 %300 }
  0xce   : > { %v333_v33 = vsel %vm331_vm4, %v330_v27, %v303_v28  ;;  %v332_v34 = vsel %vm331_vm4, %v329_v30, %v301_v29  ;;  %v464_v29 = vstv %s1982_s7  ;;  %s1995_s7 = sld [smem:[#allocation4 + $0x39]] }
  0xcf   : > { %v336_v39 = vsel %vm334_vm5, %v333_v33, 0.0  ;;  %v335_v40 = vsel %vm334_vm5, %v332_v34, 0.0  ;;  %v478_v34 = vstv %s1983_s5  ;;  %s2346_s5 = smov 122  }
  0xd0   : > { %v339_v45 = vsel %vm337_vm6, %v336_v39, 0.0  ;;  %v338_v46 = vsel %vm337_vm6, %v335_v40, 0.0  ;;  %v506_v40 = vstv %s1985_s10  ;;  %s1997_s10 = sld [smem:[#allocation4 + $0x3a]] }
  0xd1   : > { %v368_v35 = vpop.permute.xlu1 %367  ;;  %v366_v36 = vpop.permute.xlu0 %365 }
  0xd2   : > { %v394_v41 = vsel %vm331_vm4, %v392_v38, %v368_v35  ;;  %v393_v42 = vsel %vm331_vm4, %v391_v37, %v366_v36  ;;  %v492_v37 = vstv %s1984_s9  ;;  %s1996_s9 = sld [smem:[#allocation4 + $0x9]] }
  0xd3   : > { %v396_v47 = vsel %vm334_vm5, %v394_v41, 0.0  ;;  %v395_v48 = vsel %vm334_vm5, %v393_v42, 0.0 }
  0xd4   : > { %v398_v53 = vsel %vm337_vm6, %v396_v47, 0.0  ;;  %v397_v54 = vsel %vm337_vm6, %v395_v48, 0.0 }
  0xd5   : > { %v311_v43 = vpop.permute.xlu1 %310  ;;  %v309_v44 = vpop.permute.xlu0 %308 }
  0xd6   : > { %v342_v49 = vsel %vm340_vm7, %v339_v45, %v311_v43  ;;  %v341_v50 = vsel %vm340_vm7, %v338_v46, %v309_v44  ;;  %v520_v43 = vstv %s1986_s13  ;;  %v534_v46 = vstv %s1987_s28  ;;  %s1998_s13 = sld [smem:[#allocation4 + $0xa]] }
  0xd7   : > { %v345_v55 = vsel %vm343_vm8, %v342_v49, 0.0  ;;  %v344_v56 = vsel %vm343_vm8, %v341_v50, 0.0  ;;  %v548_v49 = vstv %s1988_s27  ;;  %s1999_s28 = sld [smem:[#allocation4 + $0x3b]] }
  0xd8   : > { %v348_v59 = vsel %vm346_vm9, %v345_v55, 0.0  ;;  %v347_v60 = vsel %vm346_vm9, %v344_v56, 0.0  ;;  %v576_v55 = vstv %s1990_s21  ;;  %s2000_s27 = sld [smem:[#allocation4 + $0xb]] }
  0xd9   : > { %v376_v51 = vpop.permute.xlu1 %375  ;;  %v374_v52 = vpop.permute.xlu0 %373  ;;  %s2002_s21 = sld [smem:[#allocation4 + $0xc]] }
  0xda   : > { %v400_v57 = vsel %vm340_vm7, %v398_v53, %v376_v51  ;;  %v399_v58 = vsel %vm340_vm7, %v397_v54, %v374_v52  ;;  %v562_v52 = vstv %s1989_s12  ;;  %s2001_s12 = sld [smem:[#allocation4 + $0x3c]] }
  0xdb   : > { %v402_v63 = vsel %vm343_vm8, %v400_v57, 0.0  ;;  %v401_v0 = vsel %vm343_vm8, %v399_v58, 0.0  ;;  %v590_v58 = vstv %s1991_s29  ;;  %s2003_s29 = sld [smem:[#allocation4 + $0x3d]] }
  0xdc   : > { %v404_v5 = vsel %vm346_vm9, %v402_v63, 0.0  ;;  %v403_v6 = vsel %vm346_vm9, %v401_v0, 0.0 }
  0xdd   : > { %v319_v61 = vpop.permute.xlu1 %318  ;;  %v317_v62 = vpop.permute.xlu0 %316 }
  0xde   : > { %v351_v1 = vsel %vm349_vm10, %v348_v59, %v319_v61  ;;  %v350_v2 = vsel %vm349_vm10, %v347_v60, %v317_v62  ;;  %v620_v62 = vstv %s1994_s4  ;;  %s2004_s4 = sld [smem:[#allocation4 + $0xd]] }
  0xdf   : > { %v354_v3 = vsel %vm352_vm11, %v351_v1, 0.0  ;;  %v353_v4 = vsel %vm352_vm11, %v350_v2, 0.0 }
  0xe0   : > { %414 = vst.msk [vmem:[#allocation2 + $0xb] sm:$0xff] %vm412_vm12, %v354_v3  ;;  %413 = vst.msk [vmem:[#allocation2 + $0x3] sm:$0xff] %vm412_vm12, %v353_v4  ;;  %v634_v3 = vstv %s1995_s7  ;;  %s2005_s7 = sld [smem:[#allocation4 + $0x3e]] }
  0xe1   : > { %v384_v7 = vpop.permute.xlu1 %383  ;;  %v382_v8 = vpop.permute.xlu0 %381 }
  0xe2   : > { %v406_v9 = vsel %vm349_vm10, %v404_v5, %v384_v7  ;;  %v405_v10 = vsel %vm349_vm10, %v403_v6, %v382_v8  ;;  %v648_v7 = vstv %s1996_s9  ;;  %s2008_s9 = sld [smem:[#allocation4 + $0xf]] }
  0xe3   : > { %v408_v11 = vsel %vm352_vm11, %v406_v9, 0.0  ;;  %v407_v12 = vsel %vm352_vm11, %v405_v10, 0.0  ;;  %v662_v10 = vstv %s1997_s10  ;;  %s2009_s10 = sld [smem:[#allocation4 + $0x40]] }
  0xe4   : > { %416 = vst.msk [vmem:[#allocation2 + $0x23] sm:$0xff] %vm412_vm12, %v408_v11  ;;  %415 = vst.msk [vmem:[#allocation2 + $0x1b] sm:$0xff] %vm412_vm12, %v407_v12 }
  0xe7   : > { %v2590_v14 = vld [vmem:[#allocation2] sm:$0xff]  ;;  %v2592_v15 = vld [vmem:[#allocation2 + $0x8] sm:$0xff] }
  0xe8   : > { %v438_v17 = vmul.f32 %v436_v13, %v2592_v15  ;;  %v437_v19 = vmul.f32 %v436_v13, %v2590_v14  ;;  %v425_v21 = vmul.f32 %v424_v16, %v2590_v14  ;;  %v426_v24 = vmul.f32 %v424_v16, %v2592_v15  ;;  %v2652_v60 = vld [vmem:[#allocation2 + $0x9] sm:$0xff]  ;;  %v2655_v63 = vld [vmem:[#allocation2 + $0x1] sm:$0xff] }
  0xe9   : > { %v466_v32 = vmul.f32 %v464_v29, %v2592_v15  ;;  %v465_v33 = vmul.f32 %v464_v29, %v2590_v14  ;;  %v494_v38 = vmul.f32 %v492_v37, %v2592_v15  ;;  %v493_v39 = vmul.f32 %v492_v37, %v2590_v14 }
  0xea   : > { %443 = vrot.lane.b32.xlu1 %v438_v17, %s2341_s8  ;;  %441 = vrot.lane.b32.xlu0 %v437_v19, %s2341_s8  ;;  %v522_v44 = vmul.f32 %v520_v43, %v2592_v15  ;;  %v521_v45 = vmul.f32 %v520_v43, %v2590_v14  ;;  %v550_v50 = vmul.f32 %v548_v49, %v2592_v15  ;;  %v676_v13 = vstv %s1998_s13  ;;  %s2010_s13 = sld [smem:[#allocation4 + $0x10]] }
  0xeb   : > { %v2599_v22 = vld [vmem:[#allocation2 + $0x18] sm:$0xff]  ;;  %v2601_v23 = vld [vmem:[#allocation2 + $0x20] sm:$0xff]  ;;  %v549_v51 = vmul.f32 %v548_v49, %v2590_v14  ;;  %v578_v56 = vmul.f32 %v576_v55, %v2592_v15  ;;  %v577_v57 = vmul.f32 %v576_v55, %v2590_v14  ;;  %v622_v0 = vmul.f32 %v620_v62, %v2652_v60 }
  0xec   : > { %v431_v25 = vmul.f32 %v430_v18, %v2599_v22  ;;  %v432_v26 = vmul.f32 %v430_v18, %v2601_v23  ;;  %v452_v27 = vmul.f32 %v450_v20, %v2601_v23  ;;  %v451_v28 = vmul.f32 %v450_v20, %v2599_v22  ;;  %v2660_v1 = vld [vmem:[#allocation2 + $0x21] sm:$0xff]  ;;  %v2663_v4 = vld [vmem:[#allocation2 + $0x19] sm:$0xff] }
  0xed   : > { %v480_v35 = vmul.f32 %v478_v34, %v2601_v23  ;;  %v479_v36 = vmul.f32 %v478_v34, %v2599_v22  ;;  %v508_v41 = vmul.f32 %v506_v40, %v2601_v23  ;;  %v507_v42 = vmul.f32 %v506_v40, %v2599_v22  ;;  %v2716_v43 = vld [vmem:[#allocation2 + $0x22] sm:$0xff] }
  0xee   : > { %v2609_v30 = vadd.f32 %v431_v25, %v425_v21  ;;  %v2611_v31 = vadd.f32 %v432_v26, %v426_v24  ;;  %457 = vrot.lane.b32.xlu1 %v452_v27, %s2341_s8  ;;  %455 = vrot.lane.b32.xlu0 %v451_v28, %s2341_s8  ;;  %v536_v47 = vmul.f32 %v534_v46, %v2601_v23  ;;  %v690_v16 = vstv %s1999_s28  ;;  %s2011_s28 = sld [smem:[#allocation4 + $0x41]] }
  0xef   : > { %v535_v48 = vmul.f32 %v534_v46, %v2599_v22  ;;  %v564_v53 = vmul.f32 %v562_v52, %v2601_v23  ;;  %v563_v54 = vmul.f32 %v562_v52, %v2599_v22  ;;  %v592_v59 = vmul.f32 %v590_v58, %v2601_v23  ;;  %v2719_v46 = vld [vmem:[#allocation2 + $0x1a] sm:$0xff] }
  0xf0   : > { %v591_v61 = vmul.f32 %v590_v58, %v2599_v22  ;;  %v621_v2 = vmul.f32 %v620_v62, %v2655_v63  ;;  %v636_v5 = vmul.f32 %v634_v3, %v2660_v1  ;;  %v635_v6 = vmul.f32 %v634_v3, %v2663_v4 }
  0xf1   : > { %v650_v8 = vmul.f32 %v648_v7, %v2652_v60  ;;  %v649_v9 = vmul.f32 %v648_v7, %v2655_v63  ;;  %v664_v11 = vmul.f32 %v662_v10, %v2660_v1  ;;  %v663_v12 = vmul.f32 %v662_v10, %v2663_v4 }
  0xf2   : > { %471 = vrot.lane.b32.xlu1 %v466_v32, %s2342_s11  ;;  %469 = vrot.lane.b32.xlu0 %v465_v33, %s2342_s11  ;;  %v678_v14 = vmul.f32 %v676_v13, %v2652_v60  ;;  %v677_v15 = vmul.f32 %v676_v13, %v2655_v63  ;;  %v692_v17 = vmul.f32 %v690_v16, %v2660_v1  ;;  %v704_v19 = vstv %s2000_s27  ;;  %s2012_s27 = sld [smem:[#allocation4 + $0x11]] }
  0xf3   : > { %v691_v18 = vmul.f32 %v690_v16, %v2663_v4  ;;  %v706_v20 = vmul.f32 %v704_v19, %v2652_v60  ;;  %v705_v21 = vmul.f32 %v704_v19, %v2655_v63  ;;  %v718_v22 = vstv %s2001_s12  ;;  %s2013_s12 = sld [smem:[#allocation4 + $0x42]] }
  0xf4   : > { %v720_v23 = vmul.f32 %v718_v22, %v2660_v1  ;;  %v719_v24 = vmul.f32 %v718_v22, %v2663_v4  ;;  %v732_v25 = vstv %s2002_s21  ;;  %v746_v28 = vstv %s2003_s29  ;;  %s2014_s21 = sld [smem:[#allocation4 + $0x12]] }
  0xf5   : > { %v734_v26 = vmul.f32 %v732_v25, %v2652_v60  ;;  %v733_v27 = vmul.f32 %v732_v25, %v2655_v63  ;;  %v748_v29 = vmul.f32 %v746_v28, %v2660_v1  ;;  %v747_v32 = vmul.f32 %v746_v28, %v2663_v4  ;;  %s2015_s29 = sld [smem:[#allocation4 + $0x43]] }
  0xf6   : > { %485 = vrot.lane.b32.xlu1 %v480_v35, %s2342_s11  ;;  %483 = vrot.lane.b32.xlu0 %v479_v36, %s2342_s11  ;;  %v760_v33 = vstv %s2004_s4  ;;  %v774_v36 = vstv %s2005_s7  ;;  %s2016_s4 = sld [smem:[#allocation4 + $0x13]] }
  0xf7   : > { %v762_v34 = vmul.f32 %v760_v33, %v2652_v60  ;;  %v761_v35 = vmul.f32 %v760_v33, %v2655_v63  ;;  %v776_v37 = vmul.f32 %v774_v36, %v2660_v1  ;;  %v804_v40 = vstv %s2008_s9  ;;  %s2017_s7 = sld [smem:[#allocation4 + $0x44]] }
  0xf8   : > { %v832_v49 = vstv %s2010_s13  ;;  %v846_v52 = vstv %s2011_s28  ;;  %v860_v55 = vstv %s2012_s27  ;;  %s2018_s9 = sld [smem:[#allocation4 + $0x14]] }
  0xf9   : > { %v874_v58 = vstv %s2013_s12  ;;  %s2757_s13 = sld [smem:[#allocation4 + $0x16]] }
  0xfa   : > { %499 = vrot.lane.b32.xlu1 %v494_v38, %s2343_s24  ;;  %497 = vrot.lane.b32.xlu0 %v493_v39, %s2343_s24  ;;  %v2708_v38 = vld [vmem:[#allocation2 + $0xa] sm:$0xff]  ;;  %v775_v39 = vmul.f32 %v774_v36, %v2663_v4  ;;  %s2763_s28 = sld [smem:[#allocation4 + $0x47]] }
  0xfb   : > { %s2774_s27 = sld [smem:[#allocation4 + $0x17]] }
  0xfc   : > { %v916_v13 = vstv %s2016_s4  ;;  %s2785_s12 = sld [smem:[#allocation4 + $0x48]] }
  0xfd   : > { %s2800_s4 = sld [smem:[#allocation4 + $0x38]] }
  0xfe   : > { %513 = vrot.lane.b32.xlu1 %v508_v41, %s2343_s24  ;;  %511 = vrot.lane.b32.xlu0 %v507_v42, %s2343_s24  ;;  %v2711_v41 = vld [vmem:[#allocation2 + $0x2] sm:$0xff]  ;;  %v806_v42 = vmul.f32 %v804_v40, %v2708_v38 }
 0x102   : > { %527 = vrot.lane.b32.xlu1 %v522_v44, %s2344_s20  ;;  %525 = vrot.lane.b32.xlu0 %v521_v45, %s2344_s20  ;;  %v805_v44 = vmul.f32 %v804_v40, %v2711_v41  ;;  %v818_v45 = vstv %s2009_s10  ;;  %s2019_s10 = sld [smem:[#allocation4 + $0x45]]  ;;  %v988_v40 = vstv %s2757_s13 }
 0x103   : > { %s2030_s13 = sld [smem:[#allocation4 + $0x1a]] }
 0x106   : > { %541 = vrot.lane.b32.xlu1 %v536_v47, %s2344_s20  ;;  %539 = vrot.lane.b32.xlu0 %v535_v48, %s2344_s20  ;;  %v820_v47 = vmul.f32 %v818_v45, %v2716_v43  ;;  %v819_v48 = vmul.f32 %v818_v45, %v2719_v46 }
 0x108   : > { %v958_v28 = vstv %s2019_s10  ;;  %s2029_s10 = sld [smem:[#allocation4 + $0x4a]] }
 0x10a   : > { %555 = vrot.lane.b32.xlu1 %v550_v50, %s2345_s30  ;;  %553 = vrot.lane.b32.xlu0 %v549_v51, %s2345_s30  ;;  %v834_v50 = vmul.f32 %v832_v49, %v2708_v38  ;;  %v833_v51 = vmul.f32 %v832_v49, %v2711_v41 }
 0x10e   : > { %569 = vrot.lane.b32.xlu1 %v564_v53, %s2345_s30  ;;  %567 = vrot.lane.b32.xlu0 %v563_v54, %s2345_s30  ;;  %v848_v53 = vmul.f32 %v846_v52, %v2716_v43  ;;  %v847_v54 = vmul.f32 %v846_v52, %v2719_v46  ;;  %v1002_v52 = vstv %s2763_s28  ;;  %s2031_s28 = sld [smem:[#allocation4 + $0x4b]] }
 0x112   : > { %583 = vrot.lane.b32.xlu1 %v578_v56, %s2346_s5  ;;  %581 = vrot.lane.b32.xlu0 %v577_v57, %s2346_s5  ;;  %v862_v56 = vmul.f32 %v860_v55, %v2708_v38  ;;  %v861_v57 = vmul.f32 %v860_v55, %v2711_v41 }
 0x116   : > { %597 = vrot.lane.b32.xlu1 %v592_v59, %s2346_s5  ;;  %595 = vrot.lane.b32.xlu0 %v591_v61, %s2346_s5  ;;  %v876_v61 = vmul.f32 %v874_v58, %v2716_v43 }
 0x11a   : > { %627 = vrot.lane.b32.xlu1 %v622_v0, %s2341_s8  ;;  %625 = vrot.lane.b32.xlu0 %v621_v2, %s2341_s8  ;;  %v875_v0 = vmul.f32 %v874_v58, %v2719_v46  ;;  %v888_v2 = vstv %s2014_s21  ;;  %s2794_s21 = sld [smem:[#allocation4 + $0x18]] }
 0x11b   : > { %v889_v7 = vmul.f32 %v888_v2, %v2711_v41 }
 0x11e   : > { %641 = vrot.lane.b32.xlu1 %v636_v5, %s2341_s8  ;;  %639 = vrot.lane.b32.xlu0 %v635_v6, %s2341_s8  ;;  %v890_v5 = vmul.f32 %v888_v2, %v2708_v38 }
 0x122   : > { %655 = vrot.lane.b32.xlu1 %v650_v8, %s2342_s11  ;;  %653 = vrot.lane.b32.xlu0 %v649_v9, %s2342_s11  ;;  %v902_v8 = vstv %s2015_s29  ;;  %s2796_s29 = sld [smem:[#allocation4 + $0x7]] }
 0x123   : > { %v904_v10 = vmul.f32 %v902_v8, %v2716_v43 }
 0x126   : > { %669 = vrot.lane.b32.xlu1 %v664_v11, %s2342_s11  ;;  %667 = vrot.lane.b32.xlu0 %v663_v12, %s2342_s11  ;;  %v903_v12 = vmul.f32 %v902_v8, %v2719_v46 }
 0x12a   : > { %683 = vrot.lane.b32.xlu1 %v678_v14, %s2343_s24  ;;  %681 = vrot.lane.b32.xlu0 %v677_v15, %s2343_s24  ;;  %v918_v15 = vmul.f32 %v916_v13, %v2708_v38 }
 0x12e   : > { %697 = vrot.lane.b32.xlu1 %v692_v17, %s2343_s24  ;;  %695 = vrot.lane.b32.xlu0 %v691_v18, %s2343_s24  ;;  %v917_v17 = vmul.f32 %v916_v13, %v2711_v41  ;;  %v930_v18 = vstv %s2017_s7  ;;  %s2805_s7 = sld [smem:[#allocation4 + $0x49]] }
 0x12f   : > { %v931_v22 = vmul.f32 %v930_v18, %v2719_v46 }
 0x132   : > { %711 = vrot.lane.b32.xlu1 %v706_v20, %s2344_s20  ;;  %709 = vrot.lane.b32.xlu0 %v705_v21, %s2344_s20  ;;  %v932_v20 = vmul.f32 %v930_v18, %v2716_v43 }
 0x136   : > { %725 = vrot.lane.b32.xlu1 %v720_v23, %s2344_s20  ;;  %723 = vrot.lane.b32.xlu0 %v719_v24, %s2344_s20  ;;  %v944_v23 = vstv %s2018_s9  ;;  %s2812_s9 = sld [smem:[#allocation4 + $0x19]] }
 0x137   : > { %v946_v25 = vmul.f32 %v944_v23, %v2708_v38 }
 0x13a   : > { %739 = vrot.lane.b32.xlu1 %v734_v26, %s2345_s30  ;;  %737 = vrot.lane.b32.xlu0 %v733_v27, %s2345_s30  ;;  %v945_v27 = vmul.f32 %v944_v23, %v2711_v41 }
 0x13e   : > { %753 = vrot.lane.b32.xlu1 %v748_v29, %s2345_s30  ;;  %751 = vrot.lane.b32.xlu0 %v747_v32, %s2345_s30 }
 0x142   : > { %767 = vrot.lane.b32.xlu1 %v762_v34, %s2346_s5  ;;  %765 = vrot.lane.b32.xlu0 %v761_v35, %s2346_s5  ;;  %v960_v34 = vmul.f32 %v958_v28, %v2716_v43  ;;  %v2770_v35 = vld [vmem:[#allocation2 + $0xb] sm:$0xff] }
 0x146   : > { %781 = vrot.lane.b32.xlu1 %v776_v37, %s2346_s5  ;;  %779 = vrot.lane.b32.xlu0 %v775_v39, %s2346_s5  ;;  %v959_v39 = vmul.f32 %v958_v28, %v2719_v46 }
 0x14a   : > { %811 = vrot.lane.b32.xlu1 %v806_v42, %s2341_s8  ;;  %809 = vrot.lane.b32.xlu0 %v805_v44, %s2341_s8  ;;  %v2776_v42 = vld [vmem:[#allocation2 + $0x3] sm:$0xff] }
 0x14e   : > { %825 = vrot.lane.b32.xlu1 %v820_v47, %s2341_s8  ;;  %823 = vrot.lane.b32.xlu0 %v819_v48, %s2341_s8  ;;  %v990_v47 = vmul.f32 %v988_v40, %v2770_v35 }
 0x152   : > { %839 = vrot.lane.b32.xlu1 %v834_v50, %s2342_s11  ;;  %837 = vrot.lane.b32.xlu0 %v833_v51, %s2342_s11  ;;  %v989_v50 = vmul.f32 %v988_v40, %v2776_v42  ;;  %v2782_v51 = vld [vmem:[#allocation2 + $0x23] sm:$0xff] }
 0x153   : > { %v1004_v58 = vmul.f32 %v1002_v52, %v2782_v51 }
 0x156   : > { %853 = vrot.lane.b32.xlu1 %v848_v53, %s2342_s11  ;;  %851 = vrot.lane.b32.xlu0 %v847_v54, %s2342_s11  ;;  %v2788_v54 = vld [vmem:[#allocation2 + $0x1b] sm:$0xff] }
 0x15a   : > { %867 = vrot.lane.b32.xlu1 %v862_v56, %s2343_s24  ;;  %865 = vrot.lane.b32.xlu0 %v861_v57, %s2343_s24 }
 0x15c   : > { %v444_v59 = vpop.permute.xlu1 %443  ;;  %v442_v62 = vpop.permute.xlu0 %441 }
 0x15d   : > { %v448_v29 = vadd.f32 %v444_v59, %v2611_v31  ;;  %v447_v32 = vadd.f32 %v442_v62, %v2609_v30  ;;  %v1003_v62 = vmul.f32 %v1002_v52, %v2788_v54 }
 0x15e   : > { %881 = vrot.lane.b32.xlu1 %v876_v61, %s2343_s24  ;;  %879 = vrot.lane.b32.xlu0 %v875_v0, %s2343_s24  ;;  %v1016_v0 = vstv %s2774_s27  ;;  %s2032_s27 = sld [smem:[#allocation4 + $0x1b]] }
 0x160   : > { %v458_v3 = vpop.permute.xlu1 %457  ;;  %v456_v6 = vpop.permute.xlu0 %455 }
 0x161   : > { %v462_v36 = vadd.f32 %v458_v3, %v448_v29  ;;  %v461_v31 = vadd.f32 %v456_v6, %v447_v32 }
 0x162   : > { %895 = vrot.lane.b32.xlu1 %v890_v5, %s2344_s20  ;;  %893 = vrot.lane.b32.xlu0 %v889_v7, %s2344_s20  ;;  %v1018_v7 = vmul.f32 %v1016_v0, %v2770_v35 }
 0x164   : > { %v472_v9 = vpop.permute.xlu1 %471  ;;  %v470_v11 = vpop.permute.xlu0 %469 }
 0x165   : > { %v476_v44 = vadd.f32 %v472_v9, %v462_v36  ;;  %v475_v30 = vadd.f32 %v470_v11, %v461_v31  ;;  %v1030_v11 = vstv %s2785_s12  ;;  %s2033_s12 = sld [smem:[#allocation4 + $0x4c]] }
 0x166   : > { %909 = vrot.lane.b32.xlu1 %v904_v10, %s2344_s20  ;;  %907 = vrot.lane.b32.xlu0 %v903_v12, %s2344_s20  ;;  %v1017_v10 = vmul.f32 %v1016_v0, %v2776_v42 }
 0x168   : > { %v486_v14 = vpop.permute.xlu1 %485  ;;  %v484_v16 = vpop.permute.xlu0 %483 }
 0x169   : > { %v490_v48 = vadd.f32 %v486_v14, %v476_v44  ;;  %v489_v53 = vadd.f32 %v484_v16, %v475_v30  ;;  %v1032_v16 = vmul.f32 %v1030_v11, %v2782_v51 }
 0x16a   : > { %923 = vrot.lane.b32.xlu1 %v918_v15, %s2345_s30  ;;  %921 = vrot.lane.b32.xlu0 %v917_v17, %s2345_s30 }
 0x16c   : > { %v500_v19 = vpop.permute.xlu1 %499  ;;  %v498_v21 = vpop.permute.xlu0 %497 }
 0x16d   : > { %v504_v55 = vadd.f32 %v500_v19, %v490_v48  ;;  %v503_v56 = vadd.f32 %v498_v21, %v489_v53  ;;  %v1031_v19 = vmul.f32 %v1030_v11, %v2788_v54  ;;  %v608_v21 = vstv %s2796_s29  ;;  %s2852_s29 = sld [smem:[#allocation4 + $0x4e]] }
 0x16e   : > { %937 = vrot.lane.b32.xlu1 %v932_v20, %s2345_s30  ;;  %935 = vrot.lane.b32.xlu0 %v931_v22, %s2345_s30  ;;  %v1044_v20 = vstv %s2794_s21  ;;  %v610_v28 = vmul.f32 %v608_v21, %v2652_v60  ;;  %v609_v36 = vmul.f32 %v608_v21, %v2655_v63  ;;  %v1086_v53 = vstv %s2029_s10  ;;  %s2846_s21 = sld [smem:[#allocation4 + $0x1d]] }
 0x16f   : > { %s2883_s10 = sld [smem:[#allocation4 + $0xe]] }
 0x170   : > { %v514_v24 = vpop.permute.xlu1 %513  ;;  %v512_v26 = vpop.permute.xlu0 %511 }
 0x171   : > { %v518_v59 = vadd.f32 %v514_v24, %v504_v55  ;;  %v517_v2 = vadd.f32 %v512_v26, %v503_v56  ;;  %v614_v24 = vstv %s2800_s4  ;;  %v1088_v56 = vmul.f32 %v1086_v53, %v2782_v51  ;;  %s2861_s4 = sld [smem:[#allocation4 + $0x1e]] }
 0x172   : > { %951 = vrot.lane.b32.xlu1 %v946_v25, %s2346_s5  ;;  %949 = vrot.lane.b32.xlu0 %v945_v27, %s2346_s5  ;;  %v1046_v27 = vmul.f32 %v1044_v20, %v2770_v35  ;;  %v615_v31 = vmul.f32 %v614_v24, %v2663_v4 }
 0x174   : > { %v528_v33 = vpop.permute.xlu1 %527  ;;  %v526_v37 = vpop.permute.xlu0 %525 }
 0x175   : > { %v532_v3 = vadd.f32 %v528_v33, %v518_v59  ;;  %v531_v5 = vadd.f32 %v526_v37, %v517_v2  ;;  %v1045_v33 = vmul.f32 %v1044_v20, %v2776_v42  ;;  %v1100_v59 = vstv %s2030_s13  ;;  %s2887_s13 = sld [smem:[#allocation4 + $0x3f]] }
 0x176   : > { %965 = vrot.lane.b32.xlu1 %v960_v34, %s2346_s5  ;;  %963 = vrot.lane.b32.xlu0 %v959_v39, %s2346_s5  ;;  %v1058_v34 = vstv %s2805_s7  ;;  %v616_v39 = vmul.f32 %v614_v24, %v2660_v1  ;;  %v1101_v2 = vmul.f32 %v1100_v59, %v2776_v42  ;;  %s2872_s7 = sld [smem:[#allocation4 + $0x4f]] }
 0x177   : > { %v1060_v30 = vmul.f32 %v1058_v34, %v2782_v51  ;;  %v1059_v48 = vmul.f32 %v1058_v34, %v2788_v54 }
 0x178   : > { %v542_v45 = vpop.permute.xlu1 %541  ;;  %v540_v49 = vpop.permute.xlu0 %539 }
 0x179   : > { %v546_v8 = vadd.f32 %v542_v45, %v532_v3  ;;  %v545_v12 = vadd.f32 %v540_v49, %v531_v5  ;;  %v1072_v49 = vstv %s2812_s9  ;;  %v1114_v3 = vstv %s2031_s28  ;;  %s2881_s9 = sld [smem:[#allocation4 + $0x1f]] }
 0x17a   : > { %995 = vrot.lane.b32.xlu1 %v990_v47, %s2341_s8  ;;  %993 = vrot.lane.b32.xlu0 %v989_v50, %s2341_s8  ;;  %v1074_v50 = vmul.f32 %v1072_v49, %v2770_v35  ;;  %v1073_v4 = vmul.f32 %v1072_v49, %v2776_v42  ;;  %v1200_v49 = vstv %s2861_s4  ;;  %s2892_s28 = sld [smem:[#allocation4 + $0x50]] }
 0x17b   : > { %s2046_s4 = sld [smem:[#allocation4 + $0x22]] }
 0x17c   : > { %v556_v57 = vpop.permute.xlu1 %555  ;;  %v554_v61 = vpop.permute.xlu0 %553 }
 0x17d   : > { %v560_v13 = vadd.f32 %v556_v57, %v546_v8  ;;  %v559_v14 = vadd.f32 %v554_v61, %v545_v12  ;;  %v1115_v8 = vmul.f32 %v1114_v3, %v2788_v54 }
 0x17e   : > { %1009 = vrot.lane.b32.xlu1 %v1004_v58, %s2341_s8  ;;  %1007 = vrot.lane.b32.xlu0 %v1003_v62, %s2341_s8  ;;  %v1087_v58 = vmul.f32 %v1086_v53, %v2788_v54  ;;  %v1102_v62 = vmul.f32 %v1100_v59, %v2770_v35 }
 0x180   : > { %v570_v6 = vpop.permute.xlu1 %569  ;;  %v568_v9 = vpop.permute.xlu0 %567 }
 0x181   : > { %v574_v17 = vadd.f32 %v570_v6, %v560_v13  ;;  %v573_v22 = vadd.f32 %v568_v9, %v559_v14  ;;  %v1116_v6 = vmul.f32 %v1114_v3, %v2782_v51  ;;  %v1128_v9 = vstv %s2032_s27  ;;  %s2899_s27 = sld [smem:[#allocation4 + $0x20]] }
 0x182   : > { %1023 = vrot.lane.b32.xlu1 %v1018_v7, %s2342_s11  ;;  %1021 = vrot.lane.b32.xlu0 %v1017_v10, %s2342_s11  ;;  %v1130_v11 = vmul.f32 %v1128_v9, %v2770_v35  ;;  %v1129_v14 = vmul.f32 %v1128_v9, %v2776_v42 }
 0x184   : > { %v584_v15 = vpop.permute.xlu1 %583  ;;  %v582_v18 = vpop.permute.xlu0 %581 }
 0x185   : > { %v588_v23 = vadd.f32 %v584_v15, %v574_v17  ;;  %v587_v25 = vadd.f32 %v582_v18, %v573_v22  ;;  %v1142_v15 = vstv %s2033_s12  ;;  %v2858_v22 = vld [vmem:[#allocation2 + $0xc] sm:$0xff]  ;;  %s2043_s12 = sld [smem:[#allocation4 + $0x51]] }
 0x186   : > { %1037 = vrot.lane.b32.xlu1 %v1032_v16, %s2342_s11  ;;  %1035 = vrot.lane.b32.xlu0 %v1031_v19, %s2342_s11  ;;  %v1144_v18 = vmul.f32 %v1142_v15, %v2782_v51  ;;  %v1143_v21 = vmul.f32 %v1142_v15, %v2788_v54 }
 0x188   : > { %v598_v26 = vpop.permute.xlu1 %597  ;;  %v596_v32 = vpop.permute.xlu0 %595 }
 0x189   : > { %v602_v29 = vadd.f32 %v598_v26, %v588_v23  ;;  %v601_v37 = vadd.f32 %v596_v32, %v587_v25  ;;  %v1172_v23 = vstv %s2846_s21  ;;  %v2864_v25 = vld [vmem:[#allocation2 + $0x4] sm:$0xff]  ;;  %s2044_s21 = sld [smem:[#allocation4 + $0x21]] }
 0x18a   : > { %1051 = vrot.lane.b32.xlu1 %v1046_v27, %s2343_s24  ;;  %1049 = vrot.lane.b32.xlu0 %v1045_v33, %s2343_s24  ;;  %v1173_v34 = vmul.f32 %v1172_v23, %v2864_v25 }
 0x18b   : > { %v612_v40 = vadd.f32 %v610_v28, %v602_v29  ;;  %v611_v60 = vadd.f32 %v609_v36, %v601_v37  ;;  %v1174_v29 = vmul.f32 %v1172_v23, %v2858_v22  ;;  %v2869_v36 = vld [vmem:[#allocation2 + $0x24] sm:$0xff]  ;;  %v1186_v37 = vstv %s2852_s29  ;;  %s2045_s29 = sld [smem:[#allocation4 + $0x52]] }
 0x18c   : > { %v628_v44 = vpop.permute.xlu1 %627  ;;  %v626_v47 = vpop.permute.xlu0 %625 }
 0x18d   : > { %v618_v45 = vadd.f32 %v616_v39, %v612_v40  ;;  %v617_v63 = vadd.f32 %v615_v31, %v611_v60  ;;  %v2875_v40 = vld [vmem:[#allocation2 + $0x1c] sm:$0xff] }
 0x18e   : > { %1065 = vrot.lane.b32.xlu1 %v1060_v30, %s2343_s24  ;;  %1063 = vrot.lane.b32.xlu0 %v1059_v48, %s2343_s24  ;;  %v1188_v30 = vmul.f32 %v1186_v37, %v2869_v36  ;;  %v1187_v48 = vmul.f32 %v1186_v37, %v2875_v40 }
 0x18f   : > { %v632_v12 = vadd.f32 %v628_v44, %v618_v45  ;;  %v631_v16 = vadd.f32 %v626_v47, %v617_v63 }
 0x190   : > { %v642_v1 = vpop.permute.xlu1 %641  ;;  %v640_v52 = vpop.permute.xlu0 %639 }
 0x191   : > { %v646_v19 = vadd.f32 %v642_v1, %v632_v12  ;;  %v645_v24 = vadd.f32 %v640_v52, %v631_v16 }
 0x192   : > { %1079 = vrot.lane.b32.xlu1 %v1074_v50, %s2344_s20  ;;  %1077 = vrot.lane.b32.xlu0 %v1073_v4, %s2344_s20  ;;  %v1202_v4 = vmul.f32 %v1200_v49, %v2858_v22 }
 0x194   : > { %v656_v55 = vpop.permute.xlu1 %655  ;;  %v654_v57 = vpop.permute.xlu0 %653 }
 0x195   : > { %v660_v26 = vadd.f32 %v656_v55, %v646_v19  ;;  %v659_v27 = vadd.f32 %v654_v57, %v645_v24  ;;  %v1214_v57 = vstv %s2872_s7  ;;  %s2047_s7 = sld [smem:[#allocation4 + $0x53]] }
 0x196   : > { %1093 = vrot.lane.b32.xlu1 %v1088_v56, %s2344_s20  ;;  %1091 = vrot.lane.b32.xlu0 %v1087_v58, %s2344_s20  ;;  %v1201_v56 = vmul.f32 %v1200_v49, %v2864_v25 }
 0x198   : > { %v670_v61 = vpop.permute.xlu1 %669  ;;  %v668_v0 = vpop.permute.xlu0 %667 }
 0x199   : > { %v674_v32 = vadd.f32 %v670_v61, %v660_v26  ;;  %v673_v39 = vadd.f32 %v668_v0, %v659_v27  ;;  %v1216_v0 = vmul.f32 %v1214_v57, %v2869_v36 }
 0x19a   : > { %1107 = vrot.lane.b32.xlu1 %v1102_v62, %s2345_s30  ;;  %1105 = vrot.lane.b32.xlu0 %v1101_v2, %s2345_s30 }
 0x19c   : > { %v684_v5 = vpop.permute.xlu1 %683  ;;  %v682_v7 = vpop.permute.xlu0 %681 }
 0x19d   : > { %v688_v31 = vadd.f32 %v684_v5, %v674_v32  ;;  %v687_v60 = vadd.f32 %v682_v7, %v673_v39  ;;  %v1215_v5 = vmul.f32 %v1214_v57, %v2875_v40  ;;  %v792_v7 = vstv %s2883_s10  ;;  %s2939_s10 = sld [smem:[#allocation4 + $0x55]] }
 0x19e   : > { %1121 = vrot.lane.b32.xlu1 %v1116_v6, %s2345_s30  ;;  %1119 = vrot.lane.b32.xlu0 %v1115_v8, %s2345_s30  ;;  %v1228_v6 = vstv %s2881_s9  ;;  %v793_v19 = vmul.f32 %v792_v7, %v2711_v41  ;;  %v1270_v39 = vstv %s2043_s12  ;;  %s2933_s9 = sld [smem:[#allocation4 + $0x24]] }
 0x19f   : > { %s2970_s12 = sld [smem:[#allocation4 + $0x15]] }
 0x1a0   : > { %v698_v10 = vpop.permute.xlu1 %697  ;;  %v696_v13 = vpop.permute.xlu0 %695 }
 0x1a1   : > { %v702_v45 = vadd.f32 %v698_v10, %v688_v31  ;;  %v701_v63 = vadd.f32 %v696_v13, %v687_v60  ;;  %v798_v10 = vstv %s2887_s13  ;;  %v1230_v13 = vmul.f32 %v1228_v6, %v2858_v22  ;;  %s2948_s13 = sld [smem:[#allocation4 + $0x25]] }
 0x1a2   : > { %1135 = vrot.lane.b32.xlu1 %v1130_v11, %s2346_s5  ;;  %1133 = vrot.lane.b32.xlu0 %v1129_v14, %s2346_s5  ;;  %v794_v14 = vmul.f32 %v792_v7, %v2708_v38  ;;  %v799_v24 = vmul.f32 %v798_v10, %v2719_v46  ;;  %v1272_v60 = vmul.f32 %v1270_v39, %v2869_v36 }
 0x1a4   : > { %v712_v17 = vpop.permute.xlu1 %711  ;;  %v710_v20 = vpop.permute.xlu0 %709 }
 0x1a5   : > { %v716_v1 = vadd.f32 %v712_v17, %v702_v45  ;;  %v715_v50 = vadd.f32 %v710_v20, %v701_v63  ;;  %v1229_v17 = vmul.f32 %v1228_v6, %v2864_v25  ;;  %v1284_v45 = vstv %s2044_s21  ;;  %s2975_s21 = sld [smem:[#allocation4 + $0x46]] }
 0x1a6   : > { %1149 = vrot.lane.b32.xlu1 %v1144_v18, %s2346_s5  ;;  %1147 = vrot.lane.b32.xlu0 %v1143_v21, %s2346_s5  ;;  %v1242_v18 = vstv %s2892_s28  ;;  %v800_v21 = vmul.f32 %v798_v10, %v2716_v43  ;;  %v1285_v63 = vmul.f32 %v1284_v45, %v2864_v25  ;;  %s2959_s28 = sld [smem:[#allocation4 + $0x56]] }
 0x1a7   : > { %v1244_v27 = vmul.f32 %v1242_v18, %v2869_v36  ;;  %v1243_v32 = vmul.f32 %v1242_v18, %v2875_v40 }
 0x1a8   : > { %v726_v28 = vpop.permute.xlu1 %725  ;;  %v724_v33 = vpop.permute.xlu0 %723 }
 0x1a9   : > { %v730_v53 = vadd.f32 %v726_v28, %v716_v1  ;;  %v729_v58 = vadd.f32 %v724_v33, %v715_v50  ;;  %v1256_v33 = vstv %s2899_s27  ;;  %v1298_v1 = vstv %s2045_s29  ;;  %s2968_s27 = sld [smem:[#allocation4 + $0x26]] }
 0x1aa   : > { %1179 = vrot.lane.b32.xlu1 %v1174_v29, %s2341_s8  ;;  %1177 = vrot.lane.b32.xlu0 %v1173_v34, %s2341_s8  ;;  %v1258_v34 = vmul.f32 %v1256_v33, %v2858_v22  ;;  %v1257_v46 = vmul.f32 %v1256_v33, %v2864_v25  ;;  %v1384_v33 = vstv %s2948_s13  ;;  %s2979_s29 = sld [smem:[#allocation4 + $0x57]] }
 0x1ab   : > { %s2060_s13 = sld [smem:[#allocation4 + $0x29]] }
 0x1ac   : > { %v740_v44 = vpop.permute.xlu1 %739  ;;  %v738_v47 = vpop.permute.xlu0 %737 }
 0x1ad   : > { %v744_v59 = vadd.f32 %v740_v44, %v730_v53  ;;  %v743_v61 = vadd.f32 %v738_v47, %v729_v58  ;;  %v1299_v53 = vmul.f32 %v1298_v1, %v2875_v40 }
 0x1ae   : > { %1193 = vrot.lane.b32.xlu1 %v1188_v30, %s2341_s8  ;;  %1191 = vrot.lane.b32.xlu0 %v1187_v48, %s2341_s8  ;;  %v1271_v30 = vmul.f32 %v1270_v39, %v2875_v40  ;;  %v1286_v48 = vmul.f32 %v1284_v45, %v2858_v22 }
 0x1b0   : > { %v754_v52 = vpop.permute.xlu1 %753  ;;  %v752_v55 = vpop.permute.xlu0 %751 }
 0x1b1   : > { %v758_v2 = vadd.f32 %v754_v52, %v744_v59  ;;  %v757_v8 = vadd.f32 %v752_v55, %v743_v61  ;;  %v1300_v52 = vmul.f32 %v1298_v1, %v2869_v36  ;;  %v1312_v55 = vstv %s2046_s4  ;;  %s2986_s4 = sld [smem:[#allocation4 + $0x27]] }
 0x1b2   : > { %1207 = vrot.lane.b32.xlu1 %v1202_v4, %s2342_s11  ;;  %1205 = vrot.lane.b32.xlu0 %v1201_v56, %s2342_s11  ;;  %v1314_v57 = vmul.f32 %v1312_v55, %v2858_v22  ;;  %v1313_v61 = vmul.f32 %v1312_v55, %v2864_v25 }
 0x1b4   : > { %v768_v62 = vpop.permute.xlu1 %767  ;;  %v766_v3 = vpop.permute.xlu0 %765 }
 0x1b5   : > { %v772_v9 = vadd.f32 %v768_v62, %v758_v2  ;;  %v771_v11 = vadd.f32 %v766_v3, %v757_v8  ;;  %v1326_v62 = vstv %s2047_s7  ;;  %v2945_v8 = vld [vmem:[#allocation2 + $0xd] sm:$0xff]  ;;  %s2996_s7 = sld [smem:[#allocation4 + $0x58]] }
 0x1b6   : > { %1221 = vrot.lane.b32.xlu1 %v1216_v0, %s2342_s11  ;;  %1219 = vrot.lane.b32.xlu0 %v1215_v5, %s2342_s11  ;;  %v1328_v3 = vmul.f32 %v1326_v62, %v2869_v36  ;;  %v1327_v7 = vmul.f32 %v1326_v62, %v2875_v40 }
 0x1b8   : > { %v782_v12 = vpop.permute.xlu1 %781  ;;  %v780_v16 = vpop.permute.xlu0 %779 }
 0x1b9   : > { %v786_v15 = vadd.f32 %v782_v12, %v772_v9  ;;  %v785_v20 = vadd.f32 %v780_v16, %v771_v11  ;;  %v1356_v9 = vstv %s2933_s9  ;;  %v2951_v11 = vld [vmem:[#allocation2 + $0x5] sm:$0xff]  ;;  %s2058_s9 = sld [smem:[#allocation4 + $0x28]] }
 0x1ba   : > { %1235 = vrot.lane.b32.xlu1 %v1230_v13, %s2343_s24  ;;  %1233 = vrot.lane.b32.xlu0 %v1229_v17, %s2343_s24  ;;  %v1357_v18 = vmul.f32 %v1356_v9, %v2951_v11 }
 0x1bb   : > { %v796_v23 = vadd.f32 %v794_v14, %v786_v15  ;;  %v795_v38 = vadd.f32 %v793_v19, %v785_v20  ;;  %v1358_v15 = vmul.f32 %v1356_v9, %v2945_v8  ;;  %v2956_v19 = vld [vmem:[#allocation2 + $0x25] sm:$0xff]  ;;  %v1370_v20 = vstv %s2939_s10  ;;  %s2059_s10 = sld [smem:[#allocation4 + $0x59]] }
 0x1bc   : > { %v812_v26 = vpop.permute.xlu1 %811  ;;  %v810_v29 = vpop.permute.xlu0 %809 }
 0x1bd   : > { %v802_v28 = vadd.f32 %v800_v21, %v796_v23  ;;  %v801_v41 = vadd.f32 %v799_v24, %v795_v38  ;;  %v2962_v23 = vld [vmem:[#allocation2 + $0x1d] sm:$0xff] }
 0x1be   : > { %1249 = vrot.lane.b32.xlu1 %v1244_v27, %s2343_s24  ;;  %1247 = vrot.lane.b32.xlu0 %v1243_v32, %s2343_s24  ;;  %v1372_v27 = vmul.f32 %v1370_v20, %v2956_v19  ;;  %v1371_v32 = vmul.f32 %v1370_v20, %v2962_v23 }
 0x1bf   : > { %v816_v58 = vadd.f32 %v812_v26, %v802_v28  ;;  %v815_v0 = vadd.f32 %v810_v29, %v801_v41 }
 0x1c0   : > { %v826_v43 = vpop.permute.xlu1 %825  ;;  %v824_v37 = vpop.permute.xlu0 %823 }
 0x1c1   : > { %v830_v5 = vadd.f32 %v826_v43, %v816_v58  ;;  %v829_v10 = vadd.f32 %v824_v37, %v815_v0 }
 0x1c2   : > { %1263 = vrot.lane.b32.xlu1 %v1258_v34, %s2344_s20  ;;  %1261 = vrot.lane.b32.xlu0 %v1257_v46, %s2344_s20  ;;  %v1386_v46 = vmul.f32 %v1384_v33, %v2945_v8 }
 0x1c4   : > { %v840_v31 = vpop.permute.xlu1 %839  ;;  %v838_v44 = vpop.permute.xlu0 %837 }
 0x1c5   : > { %v844_v12 = vadd.f32 %v840_v31, %v830_v5  ;;  %v843_v13 = vadd.f32 %v838_v44, %v829_v10  ;;  %v1398_v44 = vstv %s2959_s28  ;;  %s2061_s28 = sld [smem:[#allocation4 + $0x5a]] }
 0x1c6   : > { %1277 = vrot.lane.b32.xlu1 %v1272_v60, %s2344_s20  ;;  %1275 = vrot.lane.b32.xlu0 %v1271_v30, %s2344_s20  ;;  %v1385_v60 = vmul.f32 %v1384_v33, %v2951_v11 }
 0x1c8   : > { %v854_v47 = vpop.permute.xlu1 %853  ;;  %v852_v49 = vpop.permute.xlu0 %851 }
 0x1c9   : > { %v858_v16 = vadd.f32 %v854_v47, %v844_v12  ;;  %v857_v21 = vadd.f32 %v852_v49, %v843_v13  ;;  %v1400_v49 = vmul.f32 %v1398_v44, %v2956_v19 }
 0x1ca   : > { %1291 = vrot.lane.b32.xlu1 %v1286_v48, %s2345_s30  ;;  %1289 = vrot.lane.b32.xlu0 %v1285_v63, %s2345_s30 }
 0x1cc   : > { %v868_v50 = vpop.permute.xlu1 %867  ;;  %v866_v4 = vpop.permute.xlu0 %865 }
 0x1cd   : > { %v872_v24 = vadd.f32 %v868_v50, %v858_v16  ;;  %v871_v38 = vadd.f32 %v866_v4, %v857_v21  ;;  %v1399_v50 = vmul.f32 %v1398_v44, %v2962_v23  ;;  %v976_v4 = vstv %s2970_s12  ;;  %s3027_s12 = sld [smem:[#allocation4 + $0x5c]] }
 0x1ce   : > { %1305 = vrot.lane.b32.xlu1 %v1300_v52, %s2345_s30  ;;  %1303 = vrot.lane.b32.xlu0 %v1299_v53, %s2345_s30  ;;  %v1412_v52 = vstv %s2968_s27  ;;  %v977_v5 = vmul.f32 %v976_v4, %v2776_v42  ;;  %v1440_v42 = vstv %s2986_s4  ;;  %s2064_s27 = sld [smem:[#allocation4 + $0x2b]] }
 0x1cf   : > { %v1482_v44 = vstv %s2059_s10  ;;  %s3053_s4 = sld [smem:[#allocation4 + $0x2d]] }
 0x1d0   : > { %v882_v56 = vpop.permute.xlu1 %881  ;;  %v880_v59 = vpop.permute.xlu0 %879  ;;  %s3063_s10 = sld [smem:[#allocation4 + $0x5e]] }
 0x1d1   : > { %v886_v28 = vadd.f32 %v882_v56, %v872_v24  ;;  %v885_v41 = vadd.f32 %v880_v59, %v871_v38  ;;  %v1414_v59 = vmul.f32 %v1412_v52, %v2945_v8  ;;  %v1441_v24 = vmul.f32 %v1440_v42, %v2951_v11 }
 0x1d2   : > { %1319 = vrot.lane.b32.xlu1 %v1314_v57, %s2346_s5  ;;  %1317 = vrot.lane.b32.xlu0 %v1313_v61, %s2346_s5  ;;  %v982_v57 = vstv %s2975_s21  ;;  %v978_v61 = vmul.f32 %v976_v4, %v2770_v35  ;;  %v1454_v38 = vstv %s2996_s7  ;;  %s3035_s21 = sld [smem:[#allocation4 + $0x2c]] }
 0x1d3   : > { %v983_v35 = vmul.f32 %v982_v57, %v2788_v54  ;;  %v1442_v54 = vmul.f32 %v1440_v42, %v2945_v8  ;;  %v3047_v42 = vld [vmem:[#allocation2 + $0x1e] sm:$0xff]  ;;  %s3056_s7 = sld [smem:[#allocation4 + $0x1c]] }
 0x1d4   : > { %v896_v2 = vpop.permute.xlu1 %895  ;;  %v894_v6 = vpop.permute.xlu0 %893 }
 0x1d5   : > { %v900_v43 = vadd.f32 %v896_v2, %v886_v28  ;;  %v899_v34 = vadd.f32 %v894_v6, %v885_v41  ;;  %v1413_v2 = vmul.f32 %v1412_v52, %v2951_v11  ;;  %v1455_v41 = vmul.f32 %v1454_v38, %v2962_v23 }
 0x1d6   : > { %1333 = vrot.lane.b32.xlu1 %v1328_v3, %s2346_s5  ;;  %1331 = vrot.lane.b32.xlu0 %v1327_v7, %s2346_s5  ;;  %v1426_v3 = vstv %s2979_s29  ;;  %v984_v7 = vmul.f32 %v982_v57, %v2782_v51  ;;  %v1510_v57 = vstv %s2061_s28  ;;  %s2067_s29 = sld [smem:[#allocation4 + $0x5d]] }
 0x1d7   : > { %v1428_v13 = vmul.f32 %v1426_v3, %v2956_v19  ;;  %v1427_v16 = vmul.f32 %v1426_v3, %v2962_v23  ;;  %v3033_v3 = vld [vmem:[#allocation2 + $0xe] sm:$0xff]  ;;  %s2073_s28 = sld [smem:[#allocation4 + $0x60]] }
 0x1d8   : > { %v910_v14 = vpop.permute.xlu1 %909  ;;  %v908_v17 = vpop.permute.xlu0 %907 }
 0x1d9   : > { %v914_v39 = vadd.f32 %v910_v14, %v900_v43  ;;  %v913_v30 = vadd.f32 %v908_v17, %v899_v34  ;;  %v1468_v43 = vstv %s2058_s9  ;;  %s3060_s9 = sld [smem:[#allocation4 + $0x4d]] }
 0x1da   : > { %1363 = vrot.lane.b32.xlu1 %v1358_v15, %s2341_s8  ;;  %1361 = vrot.lane.b32.xlu0 %v1357_v18, %s2341_s8 }
 0x1dc   : > { %v924_v26 = vpop.permute.xlu1 %923  ;;  %v922_v29 = vpop.permute.xlu0 %921 }
 0x1dd   : > { %v928_v45 = vadd.f32 %v924_v26, %v914_v39  ;;  %v927_v47 = vadd.f32 %v922_v29, %v913_v30  ;;  %v1456_v29 = vmul.f32 %v1454_v38, %v2956_v19 }
 0x1de   : > { %1377 = vrot.lane.b32.xlu1 %v1372_v27, %s2341_s8  ;;  %1375 = vrot.lane.b32.xlu0 %v1371_v32, %s2341_s8 }
 0x1e0   : > { %v938_v37 = vpop.permute.xlu1 %937  ;;  %v936_v31 = vpop.permute.xlu0 %935 }
 0x1e1   : > { %v942_v63 = vadd.f32 %v938_v37, %v928_v45  ;;  %v941_v53 = vadd.f32 %v936_v31, %v927_v47  ;;  %v1484_v47 = vmul.f32 %v1482_v44, %v2956_v19 }
 0x1e2   : > { %1391 = vrot.lane.b32.xlu1 %v1386_v46, %s2342_s11  ;;  %1389 = vrot.lane.b32.xlu0 %v1385_v60, %s2342_s11  ;;  %v1470_v46 = vmul.f32 %v1468_v43, %v2945_v8  ;;  %v1469_v60 = vmul.f32 %v1468_v43, %v2951_v11 }
 0x1e4   : > { %v952_v48 = vpop.permute.xlu1 %951  ;;  %v950_v1 = vpop.permute.xlu0 %949 }
 0x1e5   : > { %v956_v55 = vadd.f32 %v952_v48, %v942_v63  ;;  %v955_v56 = vadd.f32 %v950_v1, %v941_v53  ;;  %v1483_v63 = vmul.f32 %v1482_v44, %v2962_v23  ;;  %v1496_v1 = vstv %s2060_s13  ;;  %s2071_s13 = sld [smem:[#allocation4 + $0x5f]] }
 0x1e6   : > { %1405 = vrot.lane.b32.xlu1 %v1400_v49, %s2342_s11  ;;  %1403 = vrot.lane.b32.xlu0 %v1399_v50, %s2342_s11  ;;  %v1498_v4 = vmul.f32 %v1496_v1, %v2945_v8  ;;  %v1166_v44 = vstv %s3060_s9  ;;  %s2135_s9 = sshll.u32 %s2397_s1, 12 }
 0x1e8   : > { %v966_v58 = vpop.permute.xlu1 %965  ;;  %v964_v0 = vpop.permute.xlu0 %963 }
 0x1e9   : > { %v970_v62 = vadd.f32 %v966_v58, %v956_v55  ;;  %v969_v6 = vadd.f32 %v964_v0, %v955_v56  ;;  %v1497_v56 = vmul.f32 %v1496_v1, %v2951_v11  ;;  %v1610_v1 = vstv %s3063_s10 }
 0x1ea   : > { %1419 = vrot.lane.b32.xlu1 %v1414_v59, %s2343_s24  ;;  %1417 = vrot.lane.b32.xlu0 %v1413_v2, %s2343_s24  ;;  %v1511_v2 = vmul.f32 %v1510_v57, %v2962_v23 }
 0x1eb   : > { %v980_v9 = vadd.f32 %v978_v61, %v970_v62  ;;  %v979_v10 = vadd.f32 %v977_v5, %v969_v6  ;;  %v1512_v61 = vmul.f32 %v1510_v57, %v2956_v19  ;;  %v1540_v5 = vstv %s2064_s27  ;;  %s2075_s27 = sld [smem:[#allocation4 + $0x61]] }
 0x1ec   : > { %v996_v12 = vpop.permute.xlu1 %995  ;;  %v994_v15 = vpop.permute.xlu0 %993 }
 0x1ed   : > { %v986_v14 = vadd.f32 %v984_v7, %v980_v9  ;;  %v985_v17 = vadd.f32 %v983_v35, %v979_v10  ;;  %v3038_v7 = vld [vmem:[#allocation2 + $0x6] sm:$0xff]  ;;  %v1542_v35 = vmul.f32 %v1540_v5, %v3033_v3 }
 0x1ee   : > { %1433 = vrot.lane.b32.xlu1 %v1428_v13, %s2343_s24  ;;  %1431 = vrot.lane.b32.xlu0 %v1427_v16, %s2343_s24  ;;  %v1541_v13 = vmul.f32 %v1540_v5, %v3038_v7  ;;  %v1638_v5 = vstv %s2071_s13  ;;  %s1844_s13 = scalar_lea.sflag [#allocation6], %s2500_s18 }
 0x1ef   : > { %v1000_v51 = vadd.f32 %v996_v12, %v986_v14  ;;  %v999_v18 = vadd.f32 %v994_v15, %v985_v17  ;;  %v3043_v14 = vld [vmem:[#allocation2 + $0x26] sm:$0xff]  ;;  %v1554_v15 = vstv %s3027_s12  ;;  %s2063_s12 = sld [smem:[#allocation4 + $0x5b]] }
 0x1f0   : > { %v1010_v20 = vpop.permute.xlu1 %1009  ;;  %v1008_v21 = vpop.permute.xlu0 %1007  ;;  %v1612_v57 = vmul.f32 %v1610_v1, %v3043_v14 }
 0x1f1   : > { %v1014_v26 = vadd.f32 %v1010_v20, %v1000_v51  ;;  %v1013_v27 = vadd.f32 %v1008_v21, %v999_v18  ;;  %v1556_v51 = vmul.f32 %v1554_v15, %v3043_v14  ;;  %v1568_v21 = vstv %s3035_s21  ;;  %s1707_s21 = sld [smem:[#allocation3]] }
 0x1f2   : > { %1447 = vrot.lane.b32.xlu1 %v1442_v54, %s2344_s20  ;;  %1445 = vrot.lane.b32.xlu0 %v1441_v24, %s2344_s20  ;;  %v1555_v54 = vmul.f32 %v1554_v15, %v3047_v42 }
 0x1f4   : > { %v1024_v28 = vpop.permute.xlu1 %1023  ;;  %v1022_v33 = vpop.permute.xlu0 %1021 }
 0x1f5   : > { %v1028_v32 = vadd.f32 %v1024_v28, %v1014_v26  ;;  %v1027_v34 = vadd.f32 %v1022_v33, %v1013_v27  ;;  %v1570_v26 = vmul.f32 %v1568_v21, %v3033_v3 }
 0x1f6   : > { %1461 = vrot.lane.b32.xlu1 %v1456_v29, %s2344_s20  ;;  %1459 = vrot.lane.b32.xlu0 %v1455_v41, %s2344_s20  ;;  %v1569_v29 = vmul.f32 %v1568_v21, %v3038_v7 }
 0x1f8   : > { %v1038_v37 = vpop.permute.xlu1 %1037  ;;  %v1036_v31 = vpop.permute.xlu0 %1035 }
 0x1f9   : > { %v1042_v39 = vadd.f32 %v1038_v37, %v1028_v32  ;;  %v1041_v30 = vadd.f32 %v1036_v31, %v1027_v34  ;;  %v1582_v32 = vstv %s2067_s29  ;;  %s2347_s29 = smov 106  }
 0x1fa   : > { %1475 = vrot.lane.b32.xlu1 %v1470_v46, %s2345_s30  ;;  %1473 = vrot.lane.b32.xlu0 %v1469_v60, %s2345_s30  ;;  %v1584_v43 = vmul.f32 %v1582_v32, %v3043_v14  ;;  %v1583_v37 = vmul.f32 %v1582_v32, %v3047_v42  ;;  %v1596_v46 = vstv %s3053_s4  ;;  %v1694_v32 = vstv %s2075_s27  ;;  %s3132_s4 = scalar_lea.vmem [#allocation9], %s1953_s23  ;;  %s2348_s23 = smov 84  }
 0x1fb   : > { %s1858_s10 = sshll.u32 %s3132_s4, 4  ;;  %s3213_s10 = int_to_ptr.vmem [resolvable:$true] %s1858_s10 }
 0x1fc   : > { %v1052_v45 = vpop.permute.xlu1 %1051  ;;  %v1050_v49 = vpop.permute.xlu0 %1049 }
 0x1fd   : > { %v1056_v48 = vadd.f32 %v1052_v45, %v1042_v39  ;;  %v1055_v50 = vadd.f32 %v1050_v49, %v1041_v30  ;;  %v1160_v39 = vstv %s3056_s7  ;;  %v1598_v45 = vmul.f32 %v1596_v46, %v3033_v3  ;;  %s2349_s7 = smov 62  }
 0x1fe   : > { %1489 = vrot.lane.b32.xlu1 %v1484_v47, %s2345_s30  ;;  %1487 = vrot.lane.b32.xlu0 %v1483_v63, %s2345_s30  ;;  %v1162_v47 = vmul.f32 %v1160_v39, %v2858_v22  ;;  %v1597_v63 = vmul.f32 %v1596_v46, %v3038_v7  ;;  %v1695_v46 = vmul.f32 %v1694_v32, %v3047_v42 }
 0x200   : > { %v1066_v52 = vpop.permute.xlu1 %1065  ;;  %v1064_v55 = vpop.permute.xlu0 %1063 }
 0x201   : > { %v1070_v53 = vadd.f32 %v1066_v52, %v1056_v48  ;;  %v1069_v58 = vadd.f32 %v1064_v55, %v1055_v50  ;;  %v1161_v50 = vmul.f32 %v1160_v39, %v2864_v25  ;;  %v1167_v55 = vmul.f32 %v1166_v44, %v2875_v40 }
 0x202   : > { %1503 = vrot.lane.b32.xlu1 %v1498_v4, %s2346_s5  ;;  %1501 = vrot.lane.b32.xlu0 %v1497_v56, %s2346_s5  ;;  %v1168_v4 = vmul.f32 %v1166_v44, %v2869_v36 }
 0x204   : > { %v1080_v59 = vpop.permute.xlu1 %1079  ;;  %v1078_v0 = vpop.permute.xlu0 %1077 }
 0x205   : > { %v1084_v62 = vadd.f32 %v1080_v59, %v1070_v53  ;;  %v1083_v6 = vadd.f32 %v1078_v0, %v1069_v58 }
 0x206   : > { %1517 = vrot.lane.b32.xlu1 %v1512_v61, %s2346_s5  ;;  %1515 = vrot.lane.b32.xlu0 %v1511_v2, %s2346_s5  ;;  %v1611_v61 = vmul.f32 %v1610_v1, %v3047_v42 }
 0x208   : > { %v1094_v9 = vpop.permute.xlu1 %1093  ;;  %v1092_v12 = vpop.permute.xlu0 %1091 }
 0x209   : > { %v1098_v10 = vadd.f32 %v1094_v9, %v1084_v62  ;;  %v1097_v16 = vadd.f32 %v1092_v12, %v1083_v6  ;;  %v1640_v9 = vmul.f32 %v1638_v5, %v3043_v14 }
 0x20a   : > { %1547 = vrot.lane.b32.xlu1 %v1542_v35, %s2341_s8  ;;  %1545 = vrot.lane.b32.xlu0 %v1541_v13, %s2341_s8 }
 0x20c   : > { %v1108_v17 = vpop.permute.xlu1 %1107  ;;  %v1106_v20 = vpop.permute.xlu0 %1105 }
 0x20d   : > { %v1112_v18 = vadd.f32 %v1108_v17, %v1098_v10  ;;  %v1111_v24 = vadd.f32 %v1106_v20, %v1097_v16  ;;  %v1639_v10 = vmul.f32 %v1638_v5, %v3047_v42 }
 0x20e   : > { %1561 = vrot.lane.b32.xlu1 %v1556_v51, %s2341_s8  ;;  %1559 = vrot.lane.b32.xlu0 %v1555_v54, %s2341_s8  ;;  %s3070_s8 = sld [smem:[#allocation4 + $0x2e]]  ;;  %v1666_v51 = vstv %s2073_s28  ;;  %s2350_s28 = smov [#allocation9]  }
 0x20f   : > { %v1668_v20 = vmul.f32 %v1666_v51, %v3043_v14  ;;  %v1667_v21 = vmul.f32 %v1666_v51, %v3047_v42 }
 0x210   : > { %v1122_v38 = vpop.permute.xlu1 %1121  ;;  %v1120_v28 = vpop.permute.xlu0 %1119 }
 0x211   : > { %v1126_v27 = vadd.f32 %v1122_v38, %v1112_v18  ;;  %v1125_v33 = vadd.f32 %v1120_v28, %v1111_v24 }
 0x212   : > { %1575 = vrot.lane.b32.xlu1 %v1570_v26, %s2342_s11  ;;  %1573 = vrot.lane.b32.xlu0 %v1569_v29, %s2342_s11 }
 0x214   : > { %v1136_v41 = vpop.permute.xlu1 %1135  ;;  %v1134_v34 = vpop.permute.xlu0 %1133  ;;  %v1624_v62 = vstv %s3070_s8  ;;  %s3211_s8 = scalar_lea.hbm %s3275_s3, %s2135_s9 }
 0x215   : > { %v1140_v31 = vadd.f32 %v1136_v41, %v1126_v27  ;;  %v1139_v60 = vadd.f32 %v1134_v34, %v1125_v33  ;;  %v1626_v0 = vmul.f32 %v1624_v62, %v3033_v3  ;;  %v1625_v40 = vmul.f32 %v1624_v62, %v3038_v7 }
 0x216   : > { %1589 = vrot.lane.b32.xlu1 %v1584_v43, %s2342_s11  ;;  %1587 = vrot.lane.b32.xlu0 %v1583_v37, %s2342_s11  ;;  %s2072_s11 = sld [smem:[#allocation4 + $0x2f]]  ;;  %v1696_v43 = vmul.f32 %v1694_v32, %v3043_v14 }
 0x218   : > { %v1150_v30 = vpop.permute.xlu1 %1149  ;;  %v1148_v49 = vpop.permute.xlu0 %1147 }
 0x219   : > { %v1154_v48 = vadd.f32 %v1150_v30, %v1140_v31  ;;  %v1153_v52 = vadd.f32 %v1148_v49, %v1139_v60 }
 0x21a   : > { %1603 = vrot.lane.b32.xlu1 %v1598_v45, %s2343_s24  ;;  %1601 = vrot.lane.b32.xlu0 %v1597_v63, %s2343_s24 }
 0x21b   : > { %v1164_v53 = vadd.f32 %v1162_v47, %v1154_v48  ;;  %v1163_v22 = vadd.f32 %v1161_v50, %v1153_v52 }
 0x21c   : > { %v1180_v56 = vpop.permute.xlu1 %1179  ;;  %v1178_v59 = vpop.permute.xlu0 %1177  ;;  %v1652_v12 = vstv %s2072_s11  ;;  %s2262_s11 = scalar_lea.vmem %s3213_s10, 4096 }
 0x21d   : > { %v1170_v58 = vadd.f32 %v1168_v4, %v1164_v53  ;;  %v1169_v25 = vadd.f32 %v1167_v55, %v1163_v22  ;;  %v1654_v15 = vmul.f32 %v1652_v12, %v3033_v3  ;;  %v1653_v17 = vmul.f32 %v1652_v12, %v3038_v7  ;;  %p2263_p13 = scmp.ne.s32.totalorder %s3213_s10, %s2262_s11 }
 0x21e   : > { %1617 = vrot.lane.b32.xlu1 %v1612_v57, %s2343_s24  ;;  %1615 = vrot.lane.b32.xlu0 %v1611_v61, %s2343_s24  ;;  %s2074_s24 = sld [smem:[#allocation4 + $0x30]] }
 0x21f   : > { %v1184_v27 = vadd.f32 %v1180_v56, %v1170_v58  ;;  %v1183_v33 = vadd.f32 %v1178_v59, %v1169_v25  ;;  %p2264_p2 = pnand %p2263_p13, %p3291_p3 }
 0x220   : > { %v1194_v36 = vpop.permute.xlu1 %1193  ;;  %v1192_v2 = vpop.permute.xlu0 %1191 }
 0x221   : > { %v1198_v34 = vadd.f32 %v1194_v36, %v1184_v27  ;;  %v1197_v39 = vadd.f32 %v1192_v2, %v1183_v33  ;;  %p2265_p7 = pneg %p2264_p2 }
 0x222   : > { %1631 = vrot.lane.b32.xlu1 %v1626_v0, %s2344_s20  ;;  %1629 = vrot.lane.b32.xlu0 %v1625_v40, %s2344_s20 }
 0x224   : > { %v1208_v6 = vpop.permute.xlu1 %1207  ;;  %v1206_v35 = vpop.permute.xlu0 %1205  ;;  %v1680_v24 = vstv %s2074_s24  ;;  %s2266_s24 = sshll.u32 %s2350_s28, 4  ;;  %s2267_s24 = int_to_ptr.vmem [resolvable:$false] %s2266_s24 }
 0x225   : > { %v1682_v26 = vmul.f32 %v1680_v24, %v3033_v3  ;;  %v1681_v29 = vmul.f32 %v1680_v24, %v3038_v7  ;;  %v1212_v31 = vadd.f32 %v1208_v6, %v1198_v34  ;;  %v1211_v60 = vadd.f32 %v1206_v35, %v1197_v39  ;;  %s2268_s27 = scalar_lea.vmem %s2267_s24, 8192  ;;  %p2269_p8 = scmp.lt.s32.totalorder %s3213_s10, %s2267_s24 }
 0x226   : > { %1645 = vrot.lane.b32.xlu1 %v1640_v9, %s2344_s20  ;;  %1643 = vrot.lane.b32.xlu0 %v1639_v10, %s2344_s20  ;;  %s2048_s20 = sld [smem:[#allocation4 + $0x23]]  ;;  %p2270_p9 = scmp.lt.s32.totalorder %s2268_s27, %s2262_s11 }
 0x228   : > { %v1222_v13 = vpop.permute.xlu1 %1221  ;;  %v1220_v16 = vpop.permute.xlu0 %1219  ;;  %p2271_p10 = por %p2270_p9, %p2269_p8 }
 0x229   : > { %v1226_v30 = vadd.f32 %v1222_v13, %v1212_v31  ;;  %v1225_v47 = vadd.f32 %v1220_v16, %v1211_v60 }
 0x22a   : > { %1659 = vrot.lane.b32.xlu1 %v1654_v15, %s2345_s30  ;;  %1657 = vrot.lane.b32.xlu0 %v1653_v17, %s2345_s30  ;;  %p2272_p1 = pnand %p2271_p10, %p2265_p7 }
 0x22c   : > { %v1236_v18 = vpop.permute.xlu1 %1235  ;;  %v1234_v54 = vpop.permute.xlu0 %1233  ;;  %v1344_v0 = vstv %s2048_s20 }
 0x22d   : > { %v1240_v48 = vadd.f32 %v1236_v18, %v1226_v30  ;;  %v1239_v49 = vadd.f32 %v1234_v54, %v1225_v47  ;;  %v1346_v9 = vmul.f32 %v1344_v0, %v2945_v8  ;;  %v1345_v12 = vmul.f32 %v1344_v0, %v2951_v11 }
 0x22e   : > { %1673 = vrot.lane.b32.xlu1 %v1668_v20, %s2345_s30  ;;  %1671 = vrot.lane.b32.xlu0 %v1667_v21, %s2345_s30  ;;  %s2049_s30 = sld [smem:[#allocation4 + $0x54]] }
 0x230   : > { %v1250_v38 = vpop.permute.xlu1 %1249  ;;  %v1248_v28 = vpop.permute.xlu0 %1247 }
 0x231   : > { %v1254_v1 = vadd.f32 %v1250_v38, %v1240_v48  ;;  %v1253_v52 = vadd.f32 %v1248_v28, %v1239_v49 }
 0x232   : > { %1687 = vrot.lane.b32.xlu1 %v1682_v26, %s2346_s5  ;;  %1685 = vrot.lane.b32.xlu0 %v1681_v29, %s2346_s5 }
 0x234   : > { %v1264_v41 = vpop.permute.xlu1 %1263  ;;  %v1262_v37 = vpop.permute.xlu0 %1261  ;;  %v1350_v6 = vstv %s2049_s30 }
 0x235   : > { %v1268_v4 = vadd.f32 %v1264_v41, %v1254_v1  ;;  %v1267_v53 = vadd.f32 %v1262_v37, %v1253_v52  ;;  %v1352_v16 = vmul.f32 %v1350_v6, %v2956_v19  ;;  %v1351_v18 = vmul.f32 %v1350_v6, %v2962_v23 }
 0x236   : > { %1701 = vrot.lane.b32.xlu1 %v1696_v43, %s2346_s5  ;;  %1699 = vrot.lane.b32.xlu0 %v1695_v46, %s2346_s5  ;;  %s2062_s5 = sld [smem:[#allocation4 + $0x2a]] }
 0x238   : > { %v1278_v44 = vpop.permute.xlu1 %1277  ;;  %v1276_v45 = vpop.permute.xlu0 %1275 }
 0x239   : > { %v1282_v22 = vadd.f32 %v1278_v44, %v1268_v4  ;;  %v1281_v57 = vadd.f32 %v1276_v45, %v1267_v53 }
 0x23c   : > { %v1292_v63 = vpop.permute.xlu1 %1291  ;;  %v1290_v50 = vpop.permute.xlu0 %1289 }
 0x23d   : > { %v1296_v58 = vadd.f32 %v1292_v63, %v1282_v22  ;;  %v1295_v59 = vadd.f32 %v1290_v50, %v1281_v57 }
 0x240   : > { %v1306_v55 = vpop.permute.xlu1 %1305  ;;  %v1304_v56 = vpop.permute.xlu0 %1303 }
 0x241   : > { %v1310_v62 = vadd.f32 %v1306_v55, %v1296_v58  ;;  %v1309_v36 = vadd.f32 %v1304_v56, %v1295_v59 }
 0x244   : > { %v1320_v61 = vpop.permute.xlu1 %1319  ;;  %v1318_v25 = vpop.permute.xlu0 %1317 }
 0x245   : > { %v1324_v2 = vadd.f32 %v1320_v61, %v1310_v62  ;;  %v1323_v40 = vadd.f32 %v1318_v25, %v1309_v36  ;;  %v1528_v25 = vstv %s2062_s5 }
 0x248   : > { %v1334_v5 = vpop.permute.xlu1 %1333  ;;  %v1332_v10 = vpop.permute.xlu0 %1331 }
 0x249   : > { %v1338_v35 = vadd.f32 %v1334_v5, %v1324_v2  ;;  %v1337_v13 = vadd.f32 %v1332_v10, %v1323_v40  ;;  %v1534_v40 = vstv %s2063_s12  ;;  %v1530_v5 = vmul.f32 %v1528_v25, %v3033_v3 }
 0x24b   : > { %v1348_v15 = vadd.f32 %v1346_v9, %v1338_v35  ;;  %v1347_v17 = vadd.f32 %v1345_v12, %v1337_v13  ;;  %v1529_v35 = vmul.f32 %v1528_v25, %v3038_v7  ;;  %v1536_v13 = vmul.f32 %v1534_v40, %v3043_v14 }
 0x24c   : > { %v1364_v51 = vpop.permute.xlu1 %1363  ;;  %v1362_v54 = vpop.permute.xlu0 %1361 }
 0x24d   : > { %v1354_v20 = vadd.f32 %v1352_v16, %v1348_v15  ;;  %v1353_v21 = vadd.f32 %v1351_v18, %v1347_v17  ;;  %v1535_v17 = vmul.f32 %v1534_v40, %v3047_v42 }
 0x24f   : > { %v1368_v33 = vadd.f32 %v1364_v51, %v1354_v20  ;;  %v1367_v43 = vadd.f32 %v1362_v54, %v1353_v21 }
 0x250   : > { %v1378_v24 = vpop.permute.xlu1 %1377  ;;  %v1376_v38 = vpop.permute.xlu0 %1375 }
 0x251   : > { %v1382_v34 = vadd.f32 %v1378_v24, %v1368_v33  ;;  %v1381_v46 = vadd.f32 %v1376_v38, %v1367_v43 }
 0x254   : > { %v1392_v26 = vpop.permute.xlu1 %1391  ;;  %v1390_v27 = vpop.permute.xlu0 %1389 }
 0x255   : > { %v1396_v23 = vadd.f32 %v1392_v26, %v1382_v34  ;;  %v1395_v39 = vadd.f32 %v1390_v27, %v1381_v46 }
 0x258   : > { %v1406_v8 = vpop.permute.xlu1 %1405  ;;  %v1404_v28 = vpop.permute.xlu0 %1403 }
 0x259   : > { %v1410_v60 = vadd.f32 %v1406_v8, %v1396_v23  ;;  %v1409_v30 = vadd.f32 %v1404_v28, %v1395_v39 }
 0x25c   : > { %v1420_v29 = vpop.permute.xlu1 %1419  ;;  %v1418_v32 = vpop.permute.xlu0 %1417 }
 0x25d   : > { %v1424_v45 = vadd.f32 %v1420_v29, %v1410_v60  ;;  %v1423_v47 = vadd.f32 %v1418_v32, %v1409_v30 }
 0x260   : > { %v1434_v11 = vpop.permute.xlu1 %1433  ;;  %v1432_v41 = vpop.permute.xlu0 %1431 }
 0x261   : > { %v1438_v49 = vadd.f32 %v1434_v11, %v1424_v45  ;;  %v1437_v1 = vadd.f32 %v1432_v41, %v1423_v47 }
 0x264   : > { %v1448_v19 = vpop.permute.xlu1 %1447  ;;  %v1446_v37 = vpop.permute.xlu0 %1445 }
 0x265   : > { %v1452_v50 = vadd.f32 %v1448_v19, %v1438_v49  ;;  %v1451_v52 = vadd.f32 %v1446_v37, %v1437_v1 }
 0x268   : > { %v1462_v31 = vpop.permute.xlu1 %1461  ;;  %v1460_v44 = vpop.permute.xlu0 %1459 }
 0x269   : > { %v1466_v53 = vadd.f32 %v1462_v31, %v1452_v50  ;;  %v1465_v22 = vadd.f32 %v1460_v44, %v1451_v52 }
 0x26c   : > { %v1476_v48 = vpop.permute.xlu1 %1475  ;;  %v1474_v63 = vpop.permute.xlu0 %1473 }
 0x26d   : > { %v1480_v56 = vadd.f32 %v1476_v48, %v1466_v53  ;;  %v1479_v57 = vadd.f32 %v1474_v63, %v1465_v22 }
 0x270   : > { %v1490_v4 = vpop.permute.xlu1 %1489  ;;  %v1488_v55 = vpop.permute.xlu0 %1487 }
 0x271   : > { %v1494_v59 = vadd.f32 %v1490_v4, %v1480_v56  ;;  %v1493_v62 = vadd.f32 %v1488_v55, %v1479_v57 }
 0x274   : > { %v1504_v58 = vpop.permute.xlu1 %1503  ;;  %v1502_v61 = vpop.permute.xlu0 %1501 }
 0x275   : > { %v1508_v36 = vadd.f32 %v1504_v58, %v1494_v59  ;;  %v1507_v0 = vadd.f32 %v1502_v61, %v1493_v62  ;;  %v1708_v58 = vstv %s1707_s21 }
 0x278   : > { %v1518_v2 = vpop.permute.xlu1 %1517  ;;  %v1516_v9 = vpop.permute.xlu0 %1515 }
 0x279   : > { %v1522_v6 = vadd.f32 %v1518_v2, %v1508_v36  ;;  %v1521_v10 = vadd.f32 %v1516_v9, %v1507_v0 }
 0x27b   : > { %v1532_v12 = vadd.f32 %v1530_v5, %v1522_v6  ;;  %v1531_v15 = vadd.f32 %v1529_v35, %v1521_v10  ;;  %v1744_v10 = vld [vmem:[%s2506_s6 + $0x8] sm:$0xff] }
 0x27c   : > { %v1548_v16 = vpop.permute.xlu1 %1547  ;;  %v1546_v18 = vpop.permute.xlu0 %1545 }
 0x27d   : > { %v1538_v51 = vadd.f32 %v1536_v13, %v1532_v12  ;;  %v1537_v20 = vadd.f32 %v1535_v17, %v1531_v15  ;;  %v2079_v12 = vld [vmem:[%s2506_s6 + $0x18] sm:$0xff]  ;;  %v2095_v13 = vld [vmem:[%s2506_s6 + $0x28] sm:$0xff]  ;;  %v2078_v17 = vld [vmem:[%s2506_s6 + $0x10] sm:$0xff] }
 0x27e   : > { %v2111_v15 = vld [vmem:[%s2506_s6 + $0x38] sm:$0xff] }
 0x27f   : > { %v1552_v28 = vadd.f32 %v1548_v16, %v1538_v51  ;;  %v1551_v32 = vadd.f32 %v1546_v18, %v1537_v20  ;;  %v1743_v16 = vld [vmem:[%s2506_s6] sm:$0xff]  ;;  %v2110_v18 = vld [vmem:[%s2506_s6 + $0x30] sm:$0xff] }
 0x280   : > { %v1562_v54 = vpop.permute.xlu1 %1561  ;;  %v1560_v21 = vpop.permute.xlu0 %1559  ;;  %v2094_v51 = vld [vmem:[%s2506_s6 + $0x20] sm:$0xff] }
 0x281   : > { %v1566_v11 = vadd.f32 %v1562_v54, %v1552_v28  ;;  %v1565_v41 = vadd.f32 %v1560_v21, %v1551_v32  ;;  %v1746_v28 = vld [vmem:[%s2506_s6 + $0x48] sm:$0xff] }
 0x282   : > { %v2097_v32 = vld [vmem:[%s2506_s6 + $0x68] sm:$0xff] }
 0x284   : > { %v1576_v24 = vpop.permute.xlu1 %1575  ;;  %v1574_v38 = vpop.permute.xlu0 %1573 }
 0x285   : > { %v1580_v42 = vadd.f32 %v1576_v24, %v1566_v11  ;;  %v1579_v43 = vadd.f32 %v1574_v38, %v1565_v41  ;;  %v1745_v11 = vld [vmem:[%s2506_s6 + $0x40] sm:$0xff] }
 0x286   : > { %v2096_v41 = vld [vmem:[%s2506_s6 + $0x60] sm:$0xff] }
 0x288   : > { %v1590_v3 = vpop.permute.xlu1 %1589  ;;  %v1588_v26 = vpop.permute.xlu0 %1587 }
 0x289   : > { %v1594_v34 = vadd.f32 %v1590_v3, %v1580_v42  ;;  %v1593_v46 = vadd.f32 %v1588_v26, %v1579_v43  ;;  %v2112_v42 = vld [vmem:[%s2506_s6 + $0x70] sm:$0xff] }
 0x28c   : > { %v1604_v27 = vpop.permute.xlu1 %1603  ;;  %v1602_v8 = vpop.permute.xlu0 %1601 }
 0x28d   : > { %v1608_v23 = vadd.f32 %v1604_v27, %v1594_v34  ;;  %v1607_v39 = vadd.f32 %v1602_v8, %v1593_v46 }
 0x290   : > { %v1618_v7 = vpop.permute.xlu1 %1617  ;;  %v1616_v29 = vpop.permute.xlu0 %1615 }
 0x291   : > { %v1622_v60 = vadd.f32 %v1618_v7, %v1608_v23  ;;  %v1621_v30 = vadd.f32 %v1616_v29, %v1607_v39  ;;  %v2081_v29 = vld [vmem:[%s2506_s6 + $0x58] sm:$0xff]  ;;  %v1748_v39 = vld [vmem:[%s2506_s6 + $0x88] sm:$0xff] }
 0x294   : > { %v1632_v14 = vpop.permute.xlu1 %1631  ;;  %v1630_v33 = vpop.permute.xlu0 %1629 }
 0x295   : > { %v1636_v45 = vadd.f32 %v1632_v14, %v1622_v60  ;;  %v1635_v47 = vadd.f32 %v1630_v33, %v1621_v30  ;;  %v2113_v14 = vld [vmem:[%s2506_s6 + $0x78] sm:$0xff]  ;;  %v2080_v33 = vld [vmem:[%s2506_s6 + $0x50] sm:$0xff] }
 0x298   : > { %v1646_v19 = vpop.permute.xlu1 %1645  ;;  %v1644_v37 = vpop.permute.xlu0 %1643 }
 0x299   : > { %v1650_v49 = vadd.f32 %v1646_v19, %v1636_v45  ;;  %v1649_v1 = vadd.f32 %v1644_v37, %v1635_v47  ;;  %v2099_v47 = vld [vmem:[%s2506_s6 + $0xa8] sm:$0xff] }
 0x29c   : > { %v1660_v31 = vpop.permute.xlu1 %1659  ;;  %v1658_v44 = vpop.permute.xlu0 %1657 }
 0x29d   : > { %v1664_v50 = vadd.f32 %v1660_v31, %v1650_v49  ;;  %v1663_v52 = vadd.f32 %v1658_v44, %v1649_v1  ;;  %v2083_v31 = vld [vmem:[%s2506_s6 + $0x98] sm:$0xff]  ;;  %v1747_v49 = vld [vmem:[%s2506_s6 + $0x80] sm:$0xff] }
 0x29e   : > { %v2098_v1 = vld [vmem:[%s2506_s6 + $0xa0] sm:$0xff] }
 0x2a0   : > { %v1674_v48 = vpop.permute.xlu1 %1673  ;;  %v1672_v63 = vpop.permute.xlu0 %1671 }
 0x2a1   : > { %v1678_v53 = vadd.f32 %v1674_v48, %v1664_v50  ;;  %v1677_v22 = vadd.f32 %v1672_v63, %v1663_v52  ;;  %v2115_v48 = vld [vmem:[%s2506_s6 + $0xb8] sm:$0xff]  ;;  %v2082_v63 = vld [vmem:[%s2506_s6 + $0x90] sm:$0xff] }
 0x2a2   : > { %v2114_v50 = vld [vmem:[%s2506_s6 + $0xb0] sm:$0xff] }
 0x2a4   : > { %v1688_v4 = vpop.permute.xlu1 %1687  ;;  %v1686_v55 = vpop.permute.xlu0 %1685 }
 0x2a5   : > { %v1692_v56 = vadd.f32 %v1688_v4, %v1678_v53  ;;  %v1691_v57 = vadd.f32 %v1686_v55, %v1677_v22 }
 0x2a8   : > { %v1702_v59 = vpop.permute.xlu1 %1701  ;;  %v1700_v62 = vpop.permute.xlu0 %1699 }
 0x2a9   : > { %v1706_v61 = vadd.f32 %v1702_v59, %v1692_v56  ;;  %v1705_v25 = vadd.f32 %v1700_v62, %v1691_v57  ;;  %v1750_v57 = vld [vmem:[%s2506_s6 + $0xc8] sm:$0xff] }
 0x2ab   : > { %v1710_v36 = vadd.f32 %v1708_v58, %v1706_v61  ;;  %v1709_v0 = vadd.f32 %v1708_v58, %v1705_v25  ;;  %v2085_v58 = vld [vmem:[%s2506_s6 + $0xd8] sm:$0xff] }
 0x2ad   : > { %v2077_v2 = vmul.f32 -1.442695, %v1710_v36  ;;  %v2076_v40 = vmul.f32 -1.442695, %v1709_v0  ;;  %v2101_v36 = vld [vmem:[%s2506_s6 + $0xe8] sm:$0xff]  ;;  %v2117_v0 = vld [vmem:[%s2506_s6 + $0xf8] sm:$0xff] }
 0x2af   : > { %2211 = vpow2.f32 %v2077_v2  ;;  %v1749_v2 = vld [vmem:[%s2506_s6 + $0xc0] sm:$0xff] }
 0x2b0   : > { %2213 = vpow2.f32 %v2076_v40  ;;  %v2084_v40 = vld [vmem:[%s2506_s6 + $0xd0] sm:$0xff] }
 0x2bc   : > { %v2212_v5 = vpop.eup %2211 }
 0x2bd   : > { %v2214_v6 = vpop.eup %2213  ;;  %v1718_v9 = vadd.f32 1.0, %v2212_v5  ;;  %v2100_v5 = vld [vmem:[%s2506_s6 + $0xe0] sm:$0xff] }
 0x2be   : > { %v1717_v35 = vadd.f32 1.0, %v2214_v6  ;;  %v2116_v6 = vld [vmem:[%s2506_s6 + $0xf0] sm:$0xff] }
 0x2bf   : > { %2215 = vrcp.f32 %v1718_v9 }
 0x2c0   : > { %2217 = vrcp.f32 %v1717_v35 }
 0x2cc   : > { %v2216_v20 = vpop.eup %2215 }
 0x2cd   : > { %v2218_v54 = vpop.eup %2217  ;;  %v1752_v21 = vmul.f32 %v2216_v20, %v1744_v10  ;;  %v1777_v24 = vmul.f32 %v2216_v20, %v2079_v12  ;;  %v1802_v38 = vmul.f32 %v2216_v20, %v2095_v13  ;;  %v1827_v3 = vmul.f32 %v2216_v20, %v2111_v15  ;;  %1727 = vrot.lane.b32.xlu1 %v2216_v20, %s2347_s29 }
 0x2ce   : > { %v1751_v26 = vmul.f32 %v2218_v54, %v1743_v16  ;;  %v1776_v27 = vmul.f32 %v2218_v54, %v2078_v17  ;;  %v1801_v8 = vmul.f32 %v2218_v54, %v2094_v51  ;;  %v1826_v7 = vmul.f32 %v2218_v54, %v2110_v18  ;;  %1725 = vrot.lane.b32.xlu0 %v2218_v54, %s2347_s29 }
 0x2cf   : > { %1761 = vst.msk [vmem:[%s3132_s4 + $0x8] sm:$0xff] %vm1759_vm13, %v1752_v21  ;;  %2087 = vst.msk [vmem:[%s3132_s4 + $0x18] sm:$0xff] %vm1759_vm13, %v1777_v24 }
 0x2d0   : > { %2103 = vst.msk [vmem:[%s3132_s4 + $0x28] sm:$0xff] %vm1759_vm13, %v1802_v38  ;;  %2119 = vst.msk [vmem:[%s3132_s4 + $0x38] sm:$0xff] %vm1759_vm13, %v1827_v3 }
 0x2d1   : > { %1760 = vst.msk [vmem:[%s3132_s4] sm:$0xff] %vm1759_vm13, %v1751_v26  ;;  %2086 = vst.msk [vmem:[%s3132_s4 + $0x10] sm:$0xff] %vm1759_vm13, %v1776_v27  ;;  %1733 = vrot.lane.b32.xlu1 %v2216_v20, %s2348_s23 }
 0x2d2   : > { %2102 = vst.msk [vmem:[%s3132_s4 + $0x20] sm:$0xff] %vm1759_vm13, %v1801_v8  ;;  %2118 = vst.msk [vmem:[%s3132_s4 + $0x30] sm:$0xff] %vm1759_vm13, %v1826_v7  ;;  %1731 = vrot.lane.b32.xlu0 %v2218_v54, %s2348_s23 }
 0x2d5   : > { %1739 = vrot.lane.b32.xlu1 %v2216_v20, %s2349_s7 }
 0x2d6   : > { %1737 = vrot.lane.b32.xlu0 %v2218_v54, %s2349_s7 }
 0x33f   : > { %v1728_v43 = vpop.permute.xlu1 %1727 }
 0x340   : > { %v1754_v19 = vmul.f32 %v1746_v28, %v1728_v43  ;;  %v1779_v34 = vmul.f32 %v2081_v29, %v1728_v43  ;;  %v1804_v37 = vmul.f32 %v2097_v32, %v1728_v43  ;;  %v1829_v46 = vmul.f32 %v2113_v14, %v1728_v43  ;;  %v1726_v23 = vpop.permute.xlu0 %1725 }
 0x341   : > { %v1753_v60 = vmul.f32 %v1745_v11, %v1726_v23  ;;  %v1778_v44 = vmul.f32 %v2080_v33, %v1726_v23  ;;  %v1803_v30 = vmul.f32 %v2096_v41, %v1726_v23  ;;  %v1828_v45 = vmul.f32 %v2112_v42, %v1726_v23 }
 0x342   : > { %1763 = vst.msk [vmem:[%s3132_s4 + $0x48] sm:$0xff] %vm1759_vm13, %v1754_v19  ;;  %2089 = vst.msk [vmem:[%s3132_s4 + $0x58] sm:$0xff] %vm1759_vm13, %v1779_v34 }
 0x343   : > { %2105 = vst.msk [vmem:[%s3132_s4 + $0x68] sm:$0xff] %vm1759_vm13, %v1804_v37  ;;  %2121 = vst.msk [vmem:[%s3132_s4 + $0x78] sm:$0xff] %vm1759_vm13, %v1829_v46  ;;  %v1734_v52 = vpop.permute.xlu1 %1733 }
 0x344   : > { %1762 = vst.msk [vmem:[%s3132_s4 + $0x40] sm:$0xff] %vm1759_vm13, %v1753_v60  ;;  %2088 = vst.msk [vmem:[%s3132_s4 + $0x50] sm:$0xff] %vm1759_vm13, %v1778_v44  ;;  %v1756_v4 = vmul.f32 %v1748_v39, %v1734_v52  ;;  %v1781_v53 = vmul.f32 %v2083_v31, %v1734_v52  ;;  %v1806_v55 = vmul.f32 %v2099_v47, %v1734_v52  ;;  %v1732_v56 = vpop.permute.xlu0 %1731 }
 0x345   : > { %2104 = vst.msk [vmem:[%s3132_s4 + $0x60] sm:$0xff] %vm1759_vm13, %v1803_v30  ;;  %2120 = vst.msk [vmem:[%s3132_s4 + $0x70] sm:$0xff] %vm1759_vm13, %v1828_v45  ;;  %v1831_v22 = vmul.f32 %v2115_v48, %v1734_v52  ;;  %v1755_v59 = vmul.f32 %v1747_v49, %v1732_v56  ;;  %v1780_v61 = vmul.f32 %v2082_v63, %v1732_v56 }
 0x346   : > { %v1805_v62 = vmul.f32 %v2098_v1, %v1732_v56  ;;  %v1830_v25 = vmul.f32 %v2114_v50, %v1732_v56  ;;  %1765 = vst.msk [vmem:[%s3132_s4 + $0x88] sm:$0xff] %vm1759_vm13, %v1756_v4  ;;  %2091 = vst.msk [vmem:[%s3132_s4 + $0x98] sm:$0xff] %vm1759_vm13, %v1781_v53 }
 0x347   : > { %2107 = vst.msk [vmem:[%s3132_s4 + $0xa8] sm:$0xff] %vm1759_vm13, %v1806_v55  ;;  %2123 = vst.msk [vmem:[%s3132_s4 + $0xb8] sm:$0xff] %vm1759_vm13, %v1831_v22  ;;  %v1740_v9 = vpop.permute.xlu1 %1739 }
 0x348   : > { %1764 = vst.msk [vmem:[%s3132_s4 + $0x80] sm:$0xff] %vm1759_vm13, %v1755_v59  ;;  %2090 = vst.msk [vmem:[%s3132_s4 + $0x90] sm:$0xff] %vm1759_vm13, %v1780_v61  ;;  %v1758_v35 = vmul.f32 %v1750_v57, %v1740_v9  ;;  %v1783_v10 = vmul.f32 %v2085_v58, %v1740_v9  ;;  %v1808_v12 = vmul.f32 %v2101_v36, %v1740_v9  ;;  %v1738_v15 = vpop.permute.xlu0 %1737 }
 0x349   : > { %2106 = vst.msk [vmem:[%s3132_s4 + $0xa0] sm:$0xff] %vm1759_vm13, %v1805_v62  ;;  %2122 = vst.msk [vmem:[%s3132_s4 + $0xb0] sm:$0xff] %vm1759_vm13, %v1830_v25  ;;  %v1833_v13 = vmul.f32 %v2117_v0, %v1740_v9  ;;  %v1757_v16 = vmul.f32 %v1749_v2, %v1738_v15  ;;  %v1782_v17 = vmul.f32 %v2084_v40, %v1738_v15 }
 0x34a   : > { %v1807_v51 = vmul.f32 %v2100_v5, %v1738_v15  ;;  %v1832_v18 = vmul.f32 %v2116_v6, %v1738_v15  ;;  %1767 = vst.msk [vmem:[%s3132_s4 + $0xc8] sm:$0xff] %vm1759_vm13, %v1758_v35  ;;  %2093 = vst.msk [vmem:[%s3132_s4 + $0xd8] sm:$0xff] %vm1759_vm13, %v1783_v10 }
 0x34b   : > { %2109 = vst.msk [vmem:[%s3132_s4 + $0xe8] sm:$0xff] %vm1759_vm13, %v1808_v12  ;;  %2125 = vst.msk [vmem:[%s3132_s4 + $0xf8] sm:$0xff] %vm1759_vm13, %v1833_v13 }
 0x34c   : > { %1766 = vst.msk [vmem:[%s3132_s4 + $0xc0] sm:$0xff] %vm1759_vm13, %v1757_v16  ;;  %2092 = vst.msk [vmem:[%s3132_s4 + $0xd0] sm:$0xff] %vm1759_vm13, %v1782_v17 }
 0x34d   : > { %2108 = vst.msk [vmem:[%s3132_s4 + $0xe0] sm:$0xff] %vm1759_vm13, %v1807_v51  ;;  %2124 = vst.msk [vmem:[%s3132_s4 + $0xf0] sm:$0xff] %vm1759_vm13, %v1832_v18 }
 0x34e   : > { %2275 = shalt.err (!%p2272_p1)
}
 0x34f   : > { %s2276_s20 = scalar_lea.hbm %s3211_s8, 4096  ;;  %s2280_s12 = scalar_lea.hbm %s3275_s3, 8192 }
 0x350   : > { %p2277_p4 = scmp.ne.s32.totalorder %s3211_s8, %s2276_s20  ;;  %p2281_p12 = scmp.lt.s32.totalorder %s3211_s8, %s3275_s3 }
 0x351   : > { %p2282_p0 = scmp.lt.s32.totalorder %s2280_s12, %s2276_s20 }
 0x352   : > { %p2278_p11 = pnand %p2277_p4, %p3291_p3 }
 0x353   : > { %p2283_p6 = por %p2282_p0, %p2281_p12 }
 0x354   : > { %p2279_p5 = pneg %p2278_p11 }
 0x356   : > { %p2284_p13 = pnand %p2283_p6, %p2279_p5 }
 0x358   : > { %2287 = shalt.err (!%p2284_p13)
}
 0x359   : > { %s2351_s4 = smov 128   ;;  %s2352_s23 = smov 8  }
 0x35a   : > { %2142 = dma.vmem_to_hbm [thread:$0]  (%p3291_p3), %s3213_s10, 4096, %s3211_s8, %s1844_s13, %s2351_s4, %s2351_s4, %s2352_s23  }
 0x35b PF: > { %s1873_s7 = sand.u32 1, %s2318_s14   ;;  %p3292_p2 = scmp.ne.s32.totalorder %s3283_s26, 0 }
 0x35c   : > { %p3293_p7 = scmp.ge.s32.totalorder %s2330_s17, 2  ;;  %s1874_s9 = scalar_lea.sflag [#allocation6], %s1873_s7 }
 0x35e   : > { %p2153_p8 = pnand %p3293_p7, %p3292_p2 }
 0x360   : > { %p2154_p9 = pneg %p2153_p8 }
 0x362   : > { %2313 = dma.done.wait (%p2154_p9), %s1874_s9, 4096  }
 0x363   : > { %2315 = vsyncadd (%p2154_p9), %s1874_s9, 4294963200  ;;  %p18_p10 = scmp.ge.s32.totalorder %s2401_s19, 4   ;;  %s3294_s14 = smov %s2322_s15 }
 0x364   : > { %s3295_s15 = smov %s2326_s16  ;;  %s3296_s16 = smov %s2413_s22 }
 0x365   : > { %s3297_s17 = smov %s2401_s19  ;;  %20 = sbr.rel (!%p18_p10) target bundleno = 8 (0x8), region = 88 }
 0x36a   :  { %1879 = vsyncpa [#allocation5], 1 }
 0x36b   :  { %1881 = vsyncpa [#allocation5 + $0x1], 1 }
 0x36c   :  { %1882 = vsyncpa [#allocation6], 1 }
 0x36d   :  { %1884 = vsyncpa [#allocation6 + $0x1], 1 }
 0x36e   :  { %1885 = vsyncpa [#allocation7], 1 }
 0x36f   :  { %1887 = vsyncpa [#allocation7 + $0x1], 1 }

</bundles_post_ra>
